<compile_context>
chip_gen: v6e
topology: v6e:2x2x1
jax: 0.10.0
libtpu: 0.0.40
codegen_flags: <defaults>
</compile_context>

<pallas_src>
import jax
import jax.numpy as jnp
from jax.experimental import pallas as pl
from jax.experimental.pallas import tpu as pltpu

IN_DIM = 128
HID_DIM = 1024
OUT_DIM = 784
OUT_PAD = 896  # 7 * 128 -> lane-dense output stores
TM_MAX = 512   # max batch-tile rows (intermediates ~8-10 MiB at TM=512)


def _mlp_kernel(x_ref, w1_ref, b1_ref, w2_ref, b2_ref, w3_ref, b3_ref, o_ref):
    # Layer 1: Linear(128 -> 1024) + ReLU  (bf16 operands, f32 MXU accumulation)
    h1 = jnp.dot(x_ref[...], w1_ref[...], preferred_element_type=jnp.float32)
    h1 = jnp.maximum(h1 + b1_ref[...], 0.0).astype(jnp.bfloat16)  # fused bias+ReLU+downcast
    # Layer 2: Linear(1024 -> 1024) + ReLU
    h2 = jnp.dot(h1, w2_ref[...], preferred_element_type=jnp.float32)
    h2 = jnp.maximum(h2 + b2_ref[...], 0.0).astype(jnp.bfloat16)
    # Layer 3: Linear(1024 -> 896 padded) + Tanh
    h3 = jnp.dot(h2, w3_ref[...], preferred_element_type=jnp.float32)
    o_ref[...] = jnp.tanh(h3 + b3_ref[...]).astype(o_ref.dtype)


def _round_up(x, m):
    return ((x + m - 1) // m) * m


def prepare_params(params):
    """One-time prep: pad the last layer 784 -> 896 so it is NOT re-padded per call."""
    w1, b1, w2, b2, w3, b3 = params
    w3p = jnp.pad(w3, ((0, 0), (0, OUT_PAD - OUT_DIM)))
    b3p = jnp.pad(b3, ((0, 0), (0, OUT_PAD - OUT_DIM)))
    return (w1, b1, w2, b2, w3p, b3p)


def generator_forward(x, kernel_params):
    """x: [B, 128] float32. kernel_params: output of prepare_params. Returns [B, 784] f32."""
    w1, b1, w2, b2, w3p, b3p = kernel_params  # bf16 weights [in,out], f32 biases [1,out]
    B = x.shape[0]

    # Batch tile: multiple of 16 (bf16 sublane packing). Target TM_MAX rows, but cap at
    # cdiv(B, 2) so the grid has >= 2 "parallel" steps whenever B permits -> both v7x TCs busy.
    if B <= 16:
        TM = 16
    else:
        TM = min(TM_MAX, _round_up(pl.cdiv(B, 2), 16))
    B_pad = _round_up(B, TM)
    grid = (B_pad // TM,)

    # bf16 input: halves the per-tile x DMA and drops the in-kernel cast.
    xp = x.astype(jnp.bfloat16)
    if B_pad != B:
        xp = jnp.pad(xp, ((0, B_pad - B), (0, 0)))

    def resident(shape):
        # Constant index map -> fetched once and kept VMEM-resident; single-buffered
        # (no need for a second pipeline buffer since the block never changes).
        nd = len(shape)
        return pl.BlockSpec(shape, lambda i, _nd=nd: (0,) * _nd,
                            pipeline_mode=pl.Buffered(1))

    cost = pl.CostEstimate(
        flops=2 * B_pad * (IN_DIM * HID_DIM + HID_DIM * HID_DIM + HID_DIM * OUT_PAD),
        transcendentals=B_pad * OUT_PAD,
        bytes_accessed=(w1.size + w2.size + w3p.size) * 2
        + (b1.size + b2.size + b3p.size) * 4
        + xp.size * 2
        + B_pad * OUT_PAD * 4,
    )

    out = pl.pallas_call(
        _mlp_kernel,
        out_shape=jax.ShapeDtypeStruct((B_pad, OUT_PAD), jnp.float32),
        grid=grid,
        in_specs=[
            pl.BlockSpec((TM, IN_DIM), lambda i: (i, 0)),
            resident(w1.shape), resident(b1.shape),
            resident(w2.shape), resident(b2.shape),
            resident(w3p.shape), resident(b3p.shape),
        ],
        out_specs=pl.BlockSpec((TM, OUT_PAD), lambda i: (i, 0)),
        compiler_params=pltpu.CompilerParams(
            dimension_semantics=("parallel",),  # shard batch tiles across v7x's 2 TCs
            # VMEM budget @ TM=512: ~4 MiB single-buffered weights + ~0.25 MiB x blocks
            # + ~3.5 MiB out blocks + ~10 MiB intermediates -> well under 32 MiB
            # (and under v7x's 64 MiB/TC physical VMEM).
            vmem_limit_bytes=32 << 20,
        ),
        cost_estimate=cost,
    )(xp, w1, b1, w2, b2, w3p, b3p)

    # Slice off batch/feature padding. (For large B a consumer that tolerates the padded
    # (B_pad, 896) buffer or a bf16 output could skip this extra HBM copy.)
    return out[:B, :OUT_DIM]


def init_params(key):
    """Deterministic init mimicking PyTorch nn.Linear default (U[-1/sqrt(fan_in), +1/sqrt(fan_in)]).
    Weights are stored transposed relative to PyTorch ([in, out]) and cast to bf16;
    biases stay f32."""
    dims = [(IN_DIM, HID_DIM), (HID_DIM, HID_DIM), (HID_DIM, OUT_DIM)]
    params = []
    for i, (fan_in, fan_out) in enumerate(dims):
        kw, kb = jax.random.split(jax.random.fold_in(key, i))
        bound = 1.0 / (fan_in ** 0.5)
        w = jax.random.uniform(kw, (fan_in, fan_out), jnp.float32, -bound, bound)
        b = jax.random.uniform(kb, (1, fan_out), jnp.float32, -bound, bound)
        params += [w.astype(jnp.bfloat16), b]
    return tuple(params)


def reference_forward(x, params):
    """Pure-JAX reference using the same bf16 weights + f32 accumulation."""
    w1, b1, w2, b2, w3, b3 = params
    f32 = jnp.float32
    h = jnp.dot(x.astype(jnp.bfloat16), w1, preferred_element_type=f32) + b1
    h = jnp.maximum(h, 0.0)
    h = jnp.dot(h.astype(jnp.bfloat16), w2, preferred_element_type=f32) + b2
    h = jnp.maximum(h, 0.0)
    return jnp.tanh(jnp.dot(h.astype(jnp.bfloat16), w3, preferred_element_type=f32) + b3)


if __name__ == "__main__":
    key = jax.random.PRNGKey(0)
    params = init_params(key)
    kernel_params = prepare_params(params)  # pad w3/b3 once, not per call
    x = jax.random.normal(jax.random.fold_in(key, 100), (8, IN_DIM), jnp.float32)

    out = generator_forward(x, kernel_params)
    out = jax.block_until_ready(out)

    ref = reference_forward(x, params)
    assert out.shape == (8, OUT_DIM), out.shape
    assert jnp.allclose(out, ref, atol=1e-2, rtol=1e-2), "mismatch vs pure-JAX reference"

    print("KERNEL_OK")
</pallas_src>

<mosaic_0001>
module attributes {stable_mosaic.version = 11 : i64} {
  func.func @_mlp_kernel(%arg0: i32, %arg1: memref<16x128xbf16, #tpu.memory_space<vmem>>, %arg2: memref<128x1024xbf16, #tpu.memory_space<vmem>>, %arg3: memref<1x1024xf32, #tpu.memory_space<vmem>>, %arg4: memref<1024x1024xbf16, #tpu.memory_space<vmem>>, %arg5: memref<1x1024xf32, #tpu.memory_space<vmem>>, %arg6: memref<1024x896xbf16, #tpu.memory_space<vmem>>, %arg7: memref<1x896xf32, #tpu.memory_space<vmem>>, %arg8: memref<16x896xf32, #tpu.memory_space<vmem>>) attributes {dimension_semantics = [#tpu.dimension_semantics<parallel>], iteration_bounds = array<i64: 1>, scalar_prefetch = 0 : i64, scratch_operands = 0 : i64, tpu.core_type = #tpu.core_type<tc>, window_params = [{transform_indices = @transform_0, window_bounds = array<i64: 16, 128>}, {pipeline_mode = #tpu.pipeline_mode<synchronous>, transform_indices = @transform_1, window_bounds = array<i64: 128, 1024>}, {pipeline_mode = #tpu.pipeline_mode<synchronous>, transform_indices = @transform_2, window_bounds = array<i64: 1, 1024>}, {pipeline_mode = #tpu.pipeline_mode<synchronous>, transform_indices = @transform_3, window_bounds = array<i64: 1024, 1024>}, {pipeline_mode = #tpu.pipeline_mode<synchronous>, transform_indices = @transform_4, window_bounds = array<i64: 1, 1024>}, {pipeline_mode = #tpu.pipeline_mode<synchronous>, transform_indices = @transform_5, window_bounds = array<i64: 1024, 896>}, {pipeline_mode = #tpu.pipeline_mode<synchronous>, transform_indices = @transform_6, window_bounds = array<i64: 1, 896>}, {transform_indices = @transform_7, window_bounds = array<i64: 16, 896>}]} {
    %c0 = arith.constant 0 : index
    %c0_0 = arith.constant 0 : index
    %0 = vector.load %arg1[%c0, %c0_0] : memref<16x128xbf16, #tpu.memory_space<vmem>>, vector<16x128xbf16>
    %c0_1 = arith.constant 0 : index
    %c0_2 = arith.constant 0 : index
    %1 = vector.load %arg2[%c0_1, %c0_2] : memref<128x1024xbf16, #tpu.memory_space<vmem>>, vector<128x1024xbf16>
    %cst = arith.constant dense<0.000000e+00> : vector<16x1024xf32>
    %2 = tpu.matmul %0, %1, %cst {dimension_numbers = #tpu.dot_dimension_numbers<[1], [0], [0], [1], [0, 0, 1, 1], [], []>} : vector<16x128xbf16>, vector<128x1024xbf16>, vector<16x1024xf32> -> vector<16x1024xf32>
    %c0_3 = arith.constant 0 : index
    %c0_4 = arith.constant 0 : index
    %3 = vector.load %arg3[%c0_3, %c0_4] : memref<1x1024xf32, #tpu.memory_space<vmem>>, vector<1x1024xf32>
    %4 = vector.broadcast %3 : vector<1x1024xf32> to vector<16x1024xf32>
    %5 = arith.addf %2, %4 : vector<16x1024xf32>
    %cst_5 = arith.constant 0.000000e+00 : f32
    %6 = vector.broadcast %cst_5 : f32 to vector<16x1024xf32>
    %7 = arith.maximumf %5, %6 : vector<16x1024xf32>
    %8 = arith.truncf %7 : vector<16x1024xf32> to vector<16x1024xbf16>
    %c0_6 = arith.constant 0 : index
    %c0_7 = arith.constant 0 : index
    %9 = vector.load %arg4[%c0_6, %c0_7] : memref<1024x1024xbf16, #tpu.memory_space<vmem>>, vector<1024x1024xbf16>
    %cst_8 = arith.constant dense<0.000000e+00> : vector<16x1024xf32>
    %10 = tpu.matmul %8, %9, %cst_8 {dimension_numbers = #tpu.dot_dimension_numbers<[1], [0], [0], [1], [0, 0, 1, 1], [], []>} : vector<16x1024xbf16>, vector<1024x1024xbf16>, vector<16x1024xf32> -> vector<16x1024xf32>
    %c0_9 = arith.constant 0 : index
    %c0_10 = arith.constant 0 : index
    %11 = vector.load %arg5[%c0_9, %c0_10] : memref<1x1024xf32, #tpu.memory_space<vmem>>, vector<1x1024xf32>
    %12 = vector.broadcast %11 : vector<1x1024xf32> to vector<16x1024xf32>
    %13 = arith.addf %10, %12 : vector<16x1024xf32>
    %cst_11 = arith.constant 0.000000e+00 : f32
    %14 = vector.broadcast %cst_11 : f32 to vector<16x1024xf32>
    %15 = arith.maximumf %13, %14 : vector<16x1024xf32>
    %16 = arith.truncf %15 : vector<16x1024xf32> to vector<16x1024xbf16>
    %c0_12 = arith.constant 0 : index
    %c0_13 = arith.constant 0 : index
    %17 = vector.load %arg6[%c0_12, %c0_13] : memref<1024x896xbf16, #tpu.memory_space<vmem>>, vector<1024x896xbf16>
    %cst_14 = arith.constant dense<0.000000e+00> : vector<16x896xf32>
    %18 = tpu.matmul %16, %17, %cst_14 {dimension_numbers = #tpu.dot_dimension_numbers<[1], [0], [0], [1], [0, 0, 1, 1], [], []>} : vector<16x1024xbf16>, vector<1024x896xbf16>, vector<16x896xf32> -> vector<16x896xf32>
    %c0_15 = arith.constant 0 : index
    %c0_16 = arith.constant 0 : index
    %19 = vector.load %arg7[%c0_15, %c0_16] : memref<1x896xf32, #tpu.memory_space<vmem>>, vector<1x896xf32>
    %20 = vector.broadcast %19 : vector<1x896xf32> to vector<16x896xf32>
    %21 = arith.addf %18, %20 : vector<16x896xf32>
    %22 = math.tanh %21 : vector<16x896xf32>
    %c0_17 = arith.constant 0 : index
    %c0_18 = arith.constant 0 : index
    %23 = vector.load %arg8[%c0_17, %c0_18] : memref<16x896xf32, #tpu.memory_space<vmem>>, vector<16x896xf32>
    tpu.vector_store %arg8[%c0_17, %c0_18], %22 {strides = array<i32>} : memref<16x896xf32, #tpu.memory_space<vmem>>, vector<16x896xf32>,
    return
  }
  func.func @transform_0(%arg0: i32) -> (i32, i32) {
    %c0_i32 = arith.constant 0 : i32
    %c0_i32_0 = arith.constant 0 : i32
    return %arg0, %c0_i32 : i32, i32
  }
  func.func @transform_1(%arg0: i32) -> (i32, i32) {
    %c0_i32 = arith.constant 0 : i32
    %c0_i32_0 = arith.constant 0 : i32
    %c0_i32_1 = arith.constant 0 : i32
    return %c0_i32, %c0_i32_0 : i32, i32
  }
  func.func @transform_2(%arg0: i32) -> (i32, i32) {
    %c0_i32 = arith.constant 0 : i32
    %c0_i32_0 = arith.constant 0 : i32
    %c0_i32_1 = arith.constant 0 : i32
    return %c0_i32, %c0_i32_0 : i32, i32
  }
  func.func @transform_3(%arg0: i32) -> (i32, i32) {
    %c0_i32 = arith.constant 0 : i32
    %c0_i32_0 = arith.constant 0 : i32
    %c0_i32_1 = arith.constant 0 : i32
    return %c0_i32, %c0_i32_0 : i32, i32
  }
  func.func @transform_4(%arg0: i32) -> (i32, i32) {
    %c0_i32 = arith.constant 0 : i32
    %c0_i32_0 = arith.constant 0 : i32
    %c0_i32_1 = arith.constant 0 : i32
    return %c0_i32, %c0_i32_0 : i32, i32
  }
  func.func @transform_5(%arg0: i32) -> (i32, i32) {
    %c0_i32 = arith.constant 0 : i32
    %c0_i32_0 = arith.constant 0 : i32
    %c0_i32_1 = arith.constant 0 : i32
    return %c0_i32, %c0_i32_0 : i32, i32
  }
  func.func @transform_6(%arg0: i32) -> (i32, i32) {
    %c0_i32 = arith.constant 0 : i32
    %c0_i32_0 = arith.constant 0 : i32
    %c0_i32_1 = arith.constant 0 : i32
    return %c0_i32, %c0_i32_0 : i32, i32
  }
  func.func @transform_7(%arg0: i32) -> (i32, i32) {
    %c0_i32 = arith.constant 0 : i32
    %c0_i32_0 = arith.constant 0 : i32
    return %arg0, %c0_i32 : i32, i32
  }
}

</mosaic_0001>

<bundles_post_ra>
// kernel: tpu_custom_call.1
= control target key start
LH: loop header
LB: loop body
LE: loop exit
PB: predicated region body
PF: predicated region fallthrough
CT: control target
= control target key end

     0   :  { %12 = vsyncpa [#allocation3], 0  ;;  %s10503_s0 = inlined_call_operand.hbm [shape: bf16[16,128], index: 0, kind: input, shape index: {}]   ;;  %s10504_s1 = inlined_call_operand.hbm [shape: bf16[128,1024], index: 1, kind: input, shape index: {}]   ;;  %s10505_s2 = inlined_call_operand.hbm [shape: f32[1,1024], index: 2, kind: input, shape index: {}]   ;;  %s10506_s3 = inlined_call_operand.hbm [shape: bf16[1024,1024], index: 3, kind: input, shape index: {}]   ;;  %s10507_s4 = inlined_call_operand.hbm [shape: f32[1,1024], index: 4, kind: input, shape index: {}]   ;;  %s10508_s5 = inlined_call_operand.hbm [shape: bf16[1024,896], index: 5, kind: input, shape index: {}]   ;;  %s10509_s6 = inlined_call_operand.hbm [shape: f32[1,896], index: 6, kind: input, shape index: {}]   ;;  %s10510_s7 = inlined_call_operand.hbm [shape: f32[16,896], index: 7, kind: output, shape index: {}]  }
   0x1   :  { %13 = vsyncpa [#allocation6], 0 }
   0x2   :  { %14 = vsyncpa [#allocation9], 0 }
   0x3   :  { %15 = vsyncpa [#allocation12], 0 }
   0x4   :  { %16 = vsyncpa [#allocation4], 0  ;;  %s10124_s24 = smov [#allocation5]  }
   0x5   :  { %s34_s25 = sshll.u32 %s10124_s24, 4  ;;  %s35_s25 = int_to_ptr.vmem [resolvable:$true] %s34_s25 }
   0x6   :  { %s9962_s26 = scalar_lea.vmem %s35_s25, 8192  ;;  %p9967_p1 = scmp.lt.s32.totalorder %s35_s25, %s35_s25 }
   0x7   :  { %p9963_p0 = scmp.ne.s32.totalorder %s35_s25, %s9962_s26  ;;  %p9968_p2 = scmp.lt.s32.totalorder %s9962_s26, %s9962_s26 }
   0x9   :  { %p9969_p3 = por %p9968_p2, %p9967_p1 }
   0xb   :  { %p9970_p4 = pnand %p9969_p3, %p9963_p0 }
   0xd   :  { %9973 = shalt.err (!%p9970_p4)
}
   0xe   :  { %s10125_s27 = smov 512   ;;  %s10126_s28 = smov 32  }
   0xf   :  { %40 = dma.hbm_to_vmem [thread:$0]  %s10504_s1, 8192, %s35_s25, [#allocation6], %s10125_s27, %s10125_s27, %s10126_s28  }
  0x10   :  { %s10127_s8 = smov [#allocation8]   ;;  %s10128_s10 = smov [#allocation11]  }
  0x11   :  { %s56_s9 = sshll.u32 %s10127_s8, 4  ;;  %s78_s11 = sshll.u32 %s10128_s10, 4  ;;  %s57_s9 = int_to_ptr.vmem [resolvable:$true] %s56_s9  ;;  %s79_s11 = int_to_ptr.vmem [resolvable:$true] %s78_s11 }
  0x12   :  { %s9982_s12 = scalar_lea.vmem %s57_s9, 65536  ;;  %p9987_p6 = scmp.lt.s32.totalorder %s57_s9, %s57_s9 }
  0x13   :  { %p9983_p5 = scmp.ne.s32.totalorder %s57_s9, %s9982_s12  ;;  %p9988_p7 = scmp.lt.s32.totalorder %s9982_s12, %s9982_s12 }
  0x15   :  { %p9989_p8 = por %p9988_p7, %p9987_p6 }
  0x17   :  { %p9990_p9 = pnand %p9989_p8, %p9983_p5 }
  0x19   :  { %9993 = shalt.err (!%p9990_p9)
}
  0x1a   :  { %62 = dma.hbm_to_vmem [thread:$0]  %s10506_s3, 65536, %s57_s9, [#allocation9], %s10125_s27, %s10125_s27, %s10126_s28  }
  0x1b   :  { %s10002_s15 = scalar_lea.vmem %s79_s11, 57344  ;;  %p10007_p11 = scmp.lt.s32.totalorder %s79_s11, %s79_s11 }
  0x1c   :  { %p10003_p10 = scmp.ne.s32.totalorder %s79_s11, %s10002_s15  ;;  %p10008_p12 = scmp.lt.s32.totalorder %s10002_s15, %s10002_s15 }
  0x1e   :  { %p10009_p13 = por %p10008_p12, %p10007_p11 }
  0x20   :  { %p10010_p0 = pnand %p10009_p13, %p10003_p10 }
  0x22   :  { %10013 = shalt.err (!%p10010_p0)
}
  0x23   :  { %s10129_s1 = smov 448   ;;  %s10130_s16 = smov 28  }
  0x24   :  { %84 = dma.hbm_to_vmem [thread:$0]  %s10508_s5, 57344, %s79_s11, [#allocation12], %s10129_s1, %s10129_s1, %s10130_s16  }
  0x25   :  { %s10131_s19 = smov [#allocation2]  }
  0x26   :  { %s22_s20 = sshll.u32 %s10131_s19, 4  ;;  %s23_s20 = int_to_ptr.vmem [resolvable:$true] %s22_s20 }
  0x27   :  { %s10022_s21 = scalar_lea.vmem %s23_s20, 128  ;;  %p10027_p2 = scmp.lt.s32.totalorder %s23_s20, %s23_s20 }
  0x28   :  { %p10023_p1 = scmp.ne.s32.totalorder %s23_s20, %s10022_s21  ;;  %p10028_p3 = scmp.lt.s32.totalorder %s10022_s21, %s10022_s21 }
  0x2a   :  { %p10029_p4 = por %p10028_p3, %p10027_p2 }
  0x2c   :  { %p10030_p5 = pnand %p10029_p4, %p10023_p1 }
  0x2e   :  { %10033 = shalt.err (!%p10030_p5)
}
  0x2f   :  { %s10132_s3 = smov 64   ;;  %s10133_s22 = smov 4  }
  0x30   :  { %28 = dma.hbm_to_vmem [thread:$0]  %s10503_s0, 128, %s23_s20, [#allocation3], %s10132_s3, %s10132_s3, %s10133_s22  }
  0x31   :  { %s10134_s25 = smov [#allocation7]   ;;  %s10135_s27 = smov [#allocation10]  }
  0x32   :  { %s47_s26 = sshll.u32 %s10134_s25, 4  ;;  %s69_s5 = sshll.u32 %s10135_s27, 4  ;;  %s48_s26 = int_to_ptr.vmem [resolvable:$true] %s47_s26  ;;  %s70_s5 = int_to_ptr.vmem [resolvable:$true] %s69_s5 }
  0x33   :  { %s10042_s28 = scalar_lea.vmem %s48_s26, 128  ;;  %p10047_p7 = scmp.lt.s32.totalorder %s48_s26, %s48_s26 }
  0x34   :  { %p10043_p6 = scmp.ne.s32.totalorder %s48_s26, %s10042_s28  ;;  %p10048_p8 = scmp.lt.s32.totalorder %s10042_s28, %s10042_s28 }
  0x36   :  { %p10049_p9 = por %p10048_p8, %p10047_p7 }
  0x38   :  { %p10050_p10 = pnand %p10049_p9, %p10043_p6 }
  0x3a   :  { %10053 = shalt.err (!%p10050_p10)
}
  0x3b   :  { %50 = dma.hbm_to_vmem [thread:$0]  %s10505_s2, 128, %s48_s26, [#allocation6]  }
  0x3c   :  { %s10062_s8 = scalar_lea.vmem %s70_s5, 128  ;;  %p10067_p12 = scmp.lt.s32.totalorder %s70_s5, %s70_s5 }
  0x3d   :  { %p10063_p11 = scmp.ne.s32.totalorder %s70_s5, %s10062_s8  ;;  %p10068_p13 = scmp.lt.s32.totalorder %s10062_s8, %s10062_s8 }
  0x3f   :  { %p10069_p0 = por %p10068_p13, %p10067_p12 }
  0x41   :  { %p10070_p1 = pnand %p10069_p0, %p10063_p11 }
  0x43   :  { %10073 = shalt.err (!%p10070_p1)
}
  0x44   :  { %72 = dma.hbm_to_vmem [thread:$0]  %s10507_s4, 128, %s70_s5, [#allocation9]  }
  0x45   :  { %s10136_s10 = smov [#allocation13]  }
  0x46   :  { %s91_s11 = sshll.u32 %s10136_s10, 4  ;;  %s92_s11 = int_to_ptr.vmem [resolvable:$true] %s91_s11 }
  0x47   :  { %s10082_s12 = scalar_lea.vmem %s92_s11, 112  ;;  %s10086_s13 = scalar_lea.vmem %s92_s11, 128 }
  0x48   :  { %p10083_p2 = scmp.ne.s32.totalorder %s92_s11, %s10082_s12  ;;  %p10087_p3 = scmp.lt.s32.totalorder %s92_s11, %s92_s11 }
  0x49   :  { %p10088_p4 = scmp.lt.s32.totalorder %s10086_s13, %s10082_s12 }
  0x4b   :  { %p10089_p5 = por %p10088_p4, %p10087_p3 }
  0x4d   :  { %p10090_p6 = pnand %p10089_p5, %p10083_p2 }
  0x4f   :  { %10093 = shalt.err (!%p10090_p6)
}
  0x50   :  { %94 = dma.hbm_to_vmem [thread:$0]  %s10509_s6, 112, %s92_s11, [#allocation12]  }
  0x51   :  { %10114 = dma.done.wait [#allocation3], 128  }
  0x52   :  { %10115 = vsyncadd [#allocation3], 4294967168 }
  0x53   :  { %10116 = dma.done.wait [#allocation6], 8320  }
  0x54   :  { %10117 = vsyncadd [#allocation6], 4294958976 }
  0x55   :  { %10118 = dma.done.wait [#allocation9], 65664  }
  0x56   :  { %10119 = vsyncadd [#allocation9], 4294901632 }
  0x57   :  { %10120 = dma.done.wait [#allocation12], 57456  }
  0x58   :  { %10121 = vsyncadd [#allocation12], 4294909840  ;;  %v10137_v0 = vmov 0   ;;  %v175_v1 = vld [vmem:[#allocation5 + $0x1c0] sm:$0xff]  ;;  %v176_v3 = vld [vmem:[#allocation5 + $0x1c8] sm:$0xff]  ;;  %s10138_s4 = smov [#allocation14]  }
  0x59   :  { %583 = vmatprep.mubr.bf16.mxu0 %v10137_v0  ;;  %626 = vmatprep.mubr.bf16.mxu1 %v10137_v0  ;;  %v179_v2 = vld [vmem:[#allocation5 + $0x1e0] sm:$0xff]  ;;  %v180_v5 = vld [vmem:[#allocation5 + $0x1e8] sm:$0xff]  ;;  %v177_v63 = vld [vmem:[#allocation5 + $0x1d0] sm:$0xff]  ;;  %s8139_s6 = sshll.u32 %s10138_s4, 4  ;;  %s8140_s6 = int_to_ptr.vmem [resolvable:$true] %s8139_s6 }
  0x5a   :  { %v8212_v4 = vcombine.high %v175_v1, %v179_v2  ;;  %v8211_v6 = vcombine.low %v175_v1, %v179_v2  ;;  %v167_v7 = vld [vmem:[#allocation5 + $0x180] sm:$0xff]  ;;  %v8214_v9 = vcombine.high %v176_v3, %v180_v5  ;;  %v8213_v10 = vcombine.low %v176_v3, %v180_v5  ;;  %v168_v12 = vld [vmem:[#allocation5 + $0x188] sm:$0xff]  ;;  %v181_v1 = vld [vmem:[#allocation5 + $0x1f0] sm:$0xff]  ;;  %s10094_s15 = scalar_lea.vmem %s8140_s6, 1792  ;;  %p10099_p8 = scmp.lt.s32.totalorder %s8140_s6, %s8140_s6 }
  0x5b   :  { %v171_v8 = vld [vmem:[#allocation5 + $0x1a0] sm:$0xff]  ;;  %v172_v13 = vld [vmem:[#allocation5 + $0x1a8] sm:$0xff]  ;;  %v178_v2 = vld [vmem:[#allocation5 + $0x1d8] sm:$0xff]  ;;  %p10095_p7 = scmp.ne.s32.totalorder %s8140_s6, %s10094_s15  ;;  %p10100_p9 = scmp.lt.s32.totalorder %s10094_s15, %s10094_s15 }
  0x5c   :  { %v8204_v11 = vcombine.high %v167_v7, %v171_v8  ;;  %v159_v14 = vld [vmem:[#allocation5 + $0x140] sm:$0xff]  ;;  %551 = vmatprep.subr.bf16.mxu0 %v8212_v4  ;;  %v8206_v15 = vcombine.high %v168_v12, %v172_v13  ;;  %v160_v17 = vld [vmem:[#allocation5 + $0x148] sm:$0xff]  ;;  %594 = vmatprep.subr.bf16.mxu1 %v8214_v9  ;;  %v8203_v19 = vcombine.low %v167_v7, %v171_v8  ;;  %v182_v3 = vld [vmem:[#allocation5 + $0x1f8] sm:$0xff] }
  0x5d   :  { %v163_v16 = vld [vmem:[#allocation5 + $0x160] sm:$0xff]  ;;  %v164_v18 = vld [vmem:[#allocation5 + $0x168] sm:$0xff]  ;;  %552 = vmatpush1.bf16.msra.mxu0 %v8211_v6  ;;  %595 = vmatpush1.bf16.msra.mxu1 %v8213_v10  ;;  %v8205_v20 = vcombine.low %v168_v12, %v172_v13  ;;  %v8216_v6 = vcombine.high %v177_v63, %v181_v1  ;;  %v8218_v7 = vcombine.high %v178_v2, %v182_v3  ;;  %v169_v8 = vld [vmem:[#allocation5 + $0x190] sm:$0xff]  ;;  %p10101_p10 = por %p10100_p9, %p10099_p8 }
  0x5e   :  { %553 = vmatprep.subr.bf16.mxu0 %v8204_v11  ;;  %v8196_v21 = vcombine.high %v159_v14, %v163_v16  ;;  %596 = vmatprep.subr.bf16.mxu1 %v8206_v15  ;;  %v8198_v22 = vcombine.high %v160_v17, %v164_v18  ;;  %v151_v23 = vld [vmem:[#allocation5 + $0x100] sm:$0xff]  ;;  %v152_v25 = vld [vmem:[#allocation5 + $0x108] sm:$0xff]  ;;  %v8195_v27 = vcombine.low %v159_v14, %v163_v16  ;;  %v173_v9 = vld [vmem:[#allocation5 + $0x1b0] sm:$0xff] }
  0x5f   :  { %v155_v24 = vld [vmem:[#allocation5 + $0x120] sm:$0xff]  ;;  %v156_v26 = vld [vmem:[#allocation5 + $0x128] sm:$0xff]  ;;  %v8197_v28 = vcombine.low %v160_v17, %v164_v18  ;;  %v10204_v10 = vld [vmem:[#allocation2] sm:$0xff]   ;;  %v8215_v13 = vcombine.low %v177_v63, %v181_v1  ;;  %v8217_v14 = vcombine.low %v178_v2, %v182_v3  ;;  %v8208_v15 = vcombine.high %v169_v8, %v173_v9  ;;  %p10102_p11 = pnand %p10101_p10, %p10095_p7 }
  0x60   :  { %v8188_v29 = vcombine.high %v151_v23, %v155_v24  ;;  %v8190_v30 = vcombine.high %v152_v25, %v156_v26  ;;  %v143_v31 = vld [vmem:[#allocation5 + $0xc0] sm:$0xff]  ;;  %v144_v33 = vld [vmem:[#allocation5 + $0xc8] sm:$0xff]  ;;  %v8187_v35 = vcombine.low %v151_v23, %v155_v24  ;;  %v8189_v36 = vcombine.low %v152_v25, %v156_v26  ;;  %v170_v11 = vld [vmem:[#allocation5 + $0x198] sm:$0xff] }
  0x61   :  { %554 = vmatpush1.bf16.msra.mxu0 %v8203_v19  ;;  %597 = vmatpush1.bf16.msra.mxu1 %v8205_v20  ;;  %v147_v32 = vld [vmem:[#allocation5 + $0xe0] sm:$0xff]  ;;  %v148_v34 = vld [vmem:[#allocation5 + $0xe8] sm:$0xff]  ;;  %v174_v12 = vld [vmem:[#allocation5 + $0x1b8] sm:$0xff] }
  0x62   :  { %555 = vmatprep.subr.bf16.mxu0 %v8196_v21  ;;  %598 = vmatprep.subr.bf16.mxu1 %v8198_v22  ;;  %v8180_v37 = vcombine.high %v143_v31, %v147_v32  ;;  %v8182_v38 = vcombine.high %v144_v33, %v148_v34  ;;  %v135_v39 = vld [vmem:[#allocation5 + $0x80] sm:$0xff]  ;;  %v136_v41 = vld [vmem:[#allocation5 + $0x88] sm:$0xff]  ;;  %v8179_v43 = vcombine.low %v143_v31, %v147_v32  ;;  %v161_v17 = vld [vmem:[#allocation5 + $0x150] sm:$0xff] }
  0x63   :  { %v139_v40 = vld [vmem:[#allocation5 + $0xa0] sm:$0xff]  ;;  %v140_v42 = vld [vmem:[#allocation5 + $0xa8] sm:$0xff]  ;;  %v8181_v44 = vcombine.low %v144_v33, %v148_v34  ;;  %v8210_v16 = vcombine.high %v170_v11, %v174_v12  ;;  %v165_v18 = vld [vmem:[#allocation5 + $0x170] sm:$0xff]  ;;  %v8207_v21 = vcombine.low %v169_v8, %v173_v9  ;;  %v8209_v22 = vcombine.low %v170_v11, %v174_v12 }
  0x64   :  { %v8172_v45 = vcombine.high %v135_v39, %v139_v40  ;;  %v8174_v46 = vcombine.high %v136_v41, %v140_v42  ;;  %v127_v47 = vld [vmem:[#allocation5 + $0x40] sm:$0xff]  ;;  %v128_v49 = vld [vmem:[#allocation5 + $0x48] sm:$0xff]  ;;  %v8171_v51 = vcombine.low %v135_v39, %v139_v40  ;;  %v8173_v52 = vcombine.low %v136_v41, %v140_v42  ;;  %v162_v19 = vld [vmem:[#allocation5 + $0x158] sm:$0xff] }
  0x65   :  { %556 = vmatpush1.bf16.msra.mxu0 %v8195_v27  ;;  %599 = vmatpush1.bf16.msra.mxu1 %v8197_v28  ;;  %v131_v48 = vld [vmem:[#allocation5 + $0x60] sm:$0xff]  ;;  %v132_v50 = vld [vmem:[#allocation5 + $0x68] sm:$0xff]  ;;  %v166_v20 = vld [vmem:[#allocation5 + $0x178] sm:$0xff]  ;;  %v8200_v23 = vcombine.high %v161_v17, %v165_v18 }
  0x66   :  { %557 = vmatprep.subr.bf16.mxu0 %v8188_v29  ;;  %600 = vmatprep.subr.bf16.mxu1 %v8190_v30  ;;  %v8164_v53 = vcombine.high %v127_v47, %v131_v48  ;;  %v8166_v54 = vcombine.high %v128_v49, %v132_v50  ;;  %v119_v55 = vld [vmem:[#allocation5] sm:$0xff]  ;;  %v120_v57 = vld [vmem:[#allocation5 + $0x8] sm:$0xff]  ;;  %v8163_v59 = vcombine.low %v127_v47, %v131_v48  ;;  %v153_v25 = vld [vmem:[#allocation5 + $0x110] sm:$0xff] }
  0x67   :  { %v123_v56 = vld [vmem:[#allocation5 + $0x20] sm:$0xff]  ;;  %v124_v58 = vld [vmem:[#allocation5 + $0x28] sm:$0xff]  ;;  %v8165_v60 = vcombine.low %v128_v49, %v132_v50  ;;  %v8202_v24 = vcombine.high %v162_v19, %v166_v20  ;;  %v157_v26 = vld [vmem:[#allocation5 + $0x130] sm:$0xff]  ;;  %v8199_v29 = vcombine.low %v161_v17, %v165_v18  ;;  %v8201_v32 = vcombine.low %v162_v19, %v166_v20 }
  0x68   :  { %v8156_v61 = vcombine.high %v119_v55, %v123_v56  ;;  %v8158_v62 = vcombine.high %v120_v57, %v124_v58  ;;  %v8155_v4 = vcombine.low %v119_v55, %v123_v56  ;;  %v8157_v5 = vcombine.low %v120_v57, %v124_v58  ;;  %v154_v27 = vld [vmem:[#allocation5 + $0x118] sm:$0xff]  ;;  %v145_v30 = vld [vmem:[#allocation5 + $0xd0] sm:$0xff]  ;;  %v931_v2 = vld [vmem:[#allocation8 + $0x5c0] sm:$0xff] }
  0x69   :  { %558 = vmatpush1.bf16.msra.mxu0 %v8187_v35  ;;  %601 = vmatpush1.bf16.msra.mxu1 %v8189_v36  ;;  %v158_v28 = vld [vmem:[#allocation5 + $0x138] sm:$0xff]  ;;  %v149_v31 = vld [vmem:[#allocation5 + $0xf0] sm:$0xff]  ;;  %v8192_v33 = vcombine.high %v153_v25, %v157_v26  ;;  %v935_v3 = vld [vmem:[#allocation8 + $0x5e0] sm:$0xff] }
  0x6a   :  { %559 = vmatprep.subr.bf16.mxu0 %v8180_v37  ;;  %602 = vmatprep.subr.bf16.mxu1 %v8182_v38  ;;  %v146_v34 = vld [vmem:[#allocation5 + $0xd8] sm:$0xff]  ;;  %v8194_v36 = vcombine.high %v154_v27, %v158_v28  ;;  %v8191_v37 = vcombine.low %v153_v25, %v157_v26  ;;  %v137_v38 = vld [vmem:[#allocation5 + $0x90] sm:$0xff]  ;;  %v8193_v40 = vcombine.low %v154_v27, %v158_v28  ;;  %v923_v11 = vld [vmem:[#allocation8 + $0x580] sm:$0xff] }
  0x6b   :  { %v150_v35 = vld [vmem:[#allocation5 + $0xf8] sm:$0xff]  ;;  %v141_v39 = vld [vmem:[#allocation5 + $0xb0] sm:$0xff]  ;;  %v927_v12 = vld [vmem:[#allocation8 + $0x5a0] sm:$0xff]  ;;  %v8403_v17 = vcombine.low %v931_v2, %v935_v3 }
  0x6c   :  { %v138_v41 = vld [vmem:[#allocation5 + $0x98] sm:$0xff]  ;;  %v8185_v47 = vcombine.low %v146_v34, %v150_v35  ;;  %v8176_v48 = vcombine.high %v137_v38, %v141_v39  ;;  %v915_v19 = vld [vmem:[#allocation8 + $0x540] sm:$0xff]  ;;  %v8395_v25 = vcombine.low %v923_v11, %v927_v12 }
  0x6d   :  { %560 = vmatpush1.bf16.msra.mxu0 %v8179_v43  ;;  %603 = vmatpush1.bf16.msra.mxu1 %v8181_v44  ;;  %v142_v42 = vld [vmem:[#allocation5 + $0xb8] sm:$0xff]  ;;  %v8186_v43 = vcombine.high %v146_v34, %v150_v35  ;;  %v8183_v44 = vcombine.low %v145_v30, %v149_v31  ;;  %v919_v20 = vld [vmem:[#allocation8 + $0x560] sm:$0xff] }
  0x6e   :  { %561 = vmatprep.subr.bf16.mxu0 %v8172_v45  ;;  %604 = vmatprep.subr.bf16.mxu1 %v8174_v46  ;;  %v129_v45 = vld [vmem:[#allocation5 + $0x50] sm:$0xff]  ;;  %v130_v49 = vld [vmem:[#allocation5 + $0x58] sm:$0xff]  ;;  %v8177_v55 = vcombine.low %v138_v41, %v142_v42  ;;  %v907_v27 = vld [vmem:[#allocation8 + $0x500] sm:$0xff] }
  0x6f   :  { %v133_v46 = vld [vmem:[#allocation5 + $0x70] sm:$0xff]  ;;  %v134_v50 = vld [vmem:[#allocation5 + $0x78] sm:$0xff]  ;;  %v911_v28 = vld [vmem:[#allocation8 + $0x520] sm:$0xff] }
  0x70   :  { %v8168_v56 = vcombine.high %v129_v45, %v133_v46  ;;  %v122_v57 = vld [vmem:[#allocation5 + $0x18] sm:$0xff]  ;;  %v8169_v63 = vcombine.low %v130_v49, %v134_v50  ;;  %v899_v34 = vld [vmem:[#allocation8 + $0x4c0] sm:$0xff] }
  0x71   :  { %562 = vmatpush1.bf16.msra.mxu0 %v8171_v51  ;;  %605 = vmatpush1.bf16.msra.mxu1 %v8173_v52  ;;  %v8178_v51 = vcombine.high %v138_v41, %v142_v42  ;;  %v8175_v52 = vcombine.low %v137_v38, %v141_v39  ;;  %v126_v58 = vld [vmem:[#allocation5 + $0x38] sm:$0xff]  ;;  %v903_v35 = vld [vmem:[#allocation8 + $0x4e0] sm:$0xff] }
  0x72   :  { %563 = vmatprep.subr.bf16.mxu0 %v8164_v53  ;;  %606 = vmatprep.subr.bf16.mxu1 %v8166_v54  ;;  %v121_v53 = vld [vmem:[#allocation5 + $0x10] sm:$0xff]  ;;  %v8161_v8 = vcombine.low %v122_v57, %v126_v58  ;;  %v763_v38 = vld [vmem:[#allocation8 + $0x80] sm:$0xff] }
  0x73   :  { %v125_v54 = vld [vmem:[#allocation5 + $0x30] sm:$0xff]  ;;  %v767_v39 = vld [vmem:[#allocation8 + $0xa0] sm:$0xff] }
  0x74   :  { %v8160_v1 = vcombine.high %v121_v53, %v125_v54  ;;  %v891_v41 = vld [vmem:[#allocation8 + $0x480] sm:$0xff] }
  0x75   :  { %564 = vmatpush1.bf16.msra.mxu0 %v8163_v59  ;;  %607 = vmatpush1.bf16.msra.mxu1 %v8165_v60  ;;  %v8170_v59 = vcombine.high %v130_v49, %v134_v50  ;;  %v8167_v60 = vcombine.low %v129_v45, %v133_v46  ;;  %v895_v42 = vld [vmem:[#allocation8 + $0x4a0] sm:$0xff] }
  0x76   :  { %565 = vmatprep.subr.bf16.mxu0 %v8156_v61  ;;  %608 = vmatprep.subr.bf16.mxu1 %v8158_v62  ;;  %v803_v61 = vld [vmem:[#allocation8 + $0x1c0] sm:$0xff] }
  0x77   :  { %v807_v62 = vld [vmem:[#allocation8 + $0x1e0] sm:$0xff] }
  0x78   :  { %v8276_v9 = vcombine.high %v803_v61, %v807_v62  ;;  %v755_v45 = vld [vmem:[#allocation8 + $0x40] sm:$0xff] }
  0x79   :  { %566 = vmatpush1.bf16.msra.mxu0 %v8155_v4  ;;  %609 = vmatpush1.bf16.msra.mxu1 %v8157_v5  ;;  %v8162_v4 = vcombine.high %v122_v57, %v126_v58  ;;  %v8159_v5 = vcombine.low %v121_v53, %v125_v54  ;;  %v759_v46 = vld [vmem:[#allocation8 + $0x60] sm:$0xff] }
  0x7a   :  { %637 = vmatprep.subr.bf16.mxu0 %v8216_v6  ;;  %680 = vmatprep.subr.bf16.mxu1 %v8218_v7  ;;  %v795_v6 = vld [vmem:[#allocation8 + $0x180] sm:$0xff] }
  0x7b   :  { %v799_v7 = vld [vmem:[#allocation8 + $0x1a0] sm:$0xff] }
  0x7c   :  { %584 = vmatmul.mubr.bf16.vlgmr.msra.gmra.mxu0 %v10204_v10  ;;  %627 = vmatmul.mubr.bf16.vlgmr.msra.gmra.mxu1 %v10204_v10  ;;  %v8268_v18 = vcombine.high %v795_v6, %v799_v7  ;;  %v883_v49 = vld [vmem:[#allocation8 + $0x440] sm:$0xff] }
  0x7d   :  { %638 = vmatpush1.bf16.msra.mxu0 %v8215_v13  ;;  %681 = vmatpush1.bf16.msra.mxu1 %v8217_v14  ;;  %v8404_v13 = vcombine.high %v931_v2, %v935_v3  ;;  %v8275_v14 = vcombine.low %v803_v61, %v807_v62  ;;  %v887_v50 = vld [vmem:[#allocation8 + $0x460] sm:$0xff] }
  0x7e   :  { %639 = vmatprep.subr.bf16.mxu0 %v8208_v15  ;;  %682 = vmatprep.subr.bf16.mxu1 %v8210_v16  ;;  %v787_v15 = vld [vmem:[#allocation8 + $0x140] sm:$0xff] }
  0x7f   :  { %669 = vmatprep.mubr.bf16.mxu0 %v10137_v0  ;;  %712 = vmatprep.mubr.bf16.mxu1 %v10137_v0  ;;  %v8184_v0 = vcombine.high %v145_v30, %v149_v31  ;;  %v791_v16 = vld [vmem:[#allocation8 + $0x160] sm:$0xff] }
  0x80   :  { %v8260_v26 = vcombine.high %v787_v15, %v791_v16  ;;  %v8259_v30 = vcombine.low %v787_v15, %v791_v16  ;;  %v771_v31 = vld [vmem:[#allocation8 + $0xc0] sm:$0xff] }
  0x81   :  { %640 = vmatpush1.bf16.msra.mxu0 %v8207_v21  ;;  %683 = vmatpush1.bf16.msra.mxu1 %v8209_v22  ;;  %v8396_v21 = vcombine.high %v923_v11, %v927_v12  ;;  %v8267_v22 = vcombine.low %v795_v6, %v799_v7  ;;  %v747_v53 = vld [vmem:[#allocation8] sm:$0xff] }
  0x82   :  { %641 = vmatprep.subr.bf16.mxu0 %v8200_v23  ;;  %684 = vmatprep.subr.bf16.mxu1 %v8202_v24  ;;  %v779_v23 = vld [vmem:[#allocation8 + $0x100] sm:$0xff] }
  0x83   :  { %v783_v24 = vld [vmem:[#allocation8 + $0x120] sm:$0xff] }
  0x84   :  { %v751_v54 = vld [vmem:[#allocation8 + $0x20] sm:$0xff] }
  0x85   :  { %642 = vmatpush1.bf16.msra.mxu0 %v8199_v29  ;;  %685 = vmatpush1.bf16.msra.mxu1 %v8201_v32  ;;  %v8388_v29 = vcombine.high %v915_v19, %v919_v20  ;;  %v775_v32 = vld [vmem:[#allocation8 + $0xe0] sm:$0xff] }
  0x86   :  { %643 = vmatprep.subr.bf16.mxu0 %v8192_v33  ;;  %686 = vmatprep.subr.bf16.mxu1 %v8194_v36  ;;  %v8387_v33 = vcombine.low %v915_v19, %v919_v20  ;;  %v8380_v36 = vcombine.high %v907_v27, %v911_v28  ;;  %v875_v57 = vld [vmem:[#allocation8 + $0x400] sm:$0xff] }
  0x87   :  { %v879_v58 = vld [vmem:[#allocation8 + $0x420] sm:$0xff] }
  0x88   :  { %v867_v61 = vld [vmem:[#allocation8 + $0x3c0] sm:$0xff] }
  0x89   :  { %644 = vmatpush1.bf16.msra.mxu0 %v8191_v37  ;;  %687 = vmatpush1.bf16.msra.mxu1 %v8193_v40  ;;  %v8251_v37 = vcombine.low %v779_v23, %v783_v24  ;;  %v8379_v40 = vcombine.low %v907_v27, %v911_v28  ;;  %v871_v62 = vld [vmem:[#allocation8 + $0x3e0] sm:$0xff] }
  0x8a   :  { %645 = vmatprep.subr.bf16.mxu0 %v8184_v0  ;;  %688 = vmatprep.subr.bf16.mxu1 %v8186_v43  ;;  %v8244_v0 = vcombine.high %v771_v31, %v775_v32  ;;  %v8372_v43 = vcombine.high %v899_v34, %v903_v35  ;;  %v995_v2 = vld [vmem:[#allocation8 + $0x7c0] sm:$0xff] }
  0x8b   :  { %v999_v3 = vld [vmem:[#allocation8 + $0x7e0] sm:$0xff] }
  0x8c   :  { %v859_v6 = vld [vmem:[#allocation8 + $0x380] sm:$0xff]  ;;  %v8467_v15 = vcombine.low %v995_v2, %v999_v3 }
  0x8d   :  { %646 = vmatpush1.bf16.msra.mxu0 %v8183_v44  ;;  %689 = vmatpush1.bf16.msra.mxu1 %v8185_v47  ;;  %v8243_v44 = vcombine.low %v771_v31, %v775_v32  ;;  %v8371_v47 = vcombine.low %v899_v34, %v903_v35  ;;  %v863_v7 = vld [vmem:[#allocation8 + $0x3a0] sm:$0xff] }
  0x8e   :  { %647 = vmatprep.subr.bf16.mxu0 %v8176_v48  ;;  %690 = vmatprep.subr.bf16.mxu1 %v8178_v51  ;;  %v8236_v48 = vcombine.high %v763_v38, %v767_v39  ;;  %v8364_v51 = vcombine.high %v891_v41, %v895_v42  ;;  %v987_v11 = vld [vmem:[#allocation8 + $0x780] sm:$0xff]  ;;  %v8332_v16 = vcombine.high %v859_v6, %v863_v7 }
  0x8f   :  { %v991_v12 = vld [vmem:[#allocation8 + $0x7a0] sm:$0xff] }
  0x90   :  { %v855_v19 = vld [vmem:[#allocation8 + $0x360] sm:$0xff] }
  0x91   :  { %648 = vmatpush1.bf16.msra.mxu0 %v8175_v52  ;;  %691 = vmatpush1.bf16.msra.mxu1 %v8177_v55  ;;  %v8235_v52 = vcombine.low %v763_v38, %v767_v39  ;;  %v8363_v55 = vcombine.low %v891_v41, %v895_v42  ;;  %v979_v20 = vld [vmem:[#allocation8 + $0x740] sm:$0xff] }
  0x92   :  { %649 = vmatprep.subr.bf16.mxu0 %v8168_v56  ;;  %692 = vmatprep.subr.bf16.mxu1 %v8170_v59  ;;  %v8228_v56 = vcombine.high %v755_v45, %v759_v46  ;;  %v8356_v59 = vcombine.high %v883_v49, %v887_v50  ;;  %v847_v27 = vld [vmem:[#allocation8 + $0x320] sm:$0xff] }
  0x93   :  { %v971_v28 = vld [vmem:[#allocation8 + $0x700] sm:$0xff] }
  0x94   :  { %v839_v34 = vld [vmem:[#allocation8 + $0x2e0] sm:$0xff] }
  0x95   :  { %650 = vmatpush1.bf16.msra.mxu0 %v8167_v60  ;;  %693 = vmatpush1.bf16.msra.mxu1 %v8169_v63  ;;  %v8227_v60 = vcombine.low %v755_v45, %v759_v46  ;;  %v8355_v63 = vcombine.low %v883_v49, %v887_v50  ;;  %v963_v35 = vld [vmem:[#allocation8 + $0x6c0] sm:$0xff] }
  0x96   :  { %651 = vmatprep.subr.bf16.mxu0 %v8160_v1  ;;  %694 = vmatprep.subr.bf16.mxu1 %v8162_v4  ;;  %v8220_v1 = vcombine.high %v747_v53, %v751_v54  ;;  %v8348_v4 = vcombine.high %v875_v57, %v879_v58  ;;  %v827_v38 = vld [vmem:[#allocation8 + $0x280] sm:$0xff] }
  0x97   :  { %v831_v39 = vld [vmem:[#allocation8 + $0x2a0] sm:$0xff] }
  0x98   :  { %v955_v41 = vld [vmem:[#allocation8 + $0x680] sm:$0xff] }
  0x99   :  { %652 = vmatpush1.bf16.msra.mxu0 %v8159_v5  ;;  %695 = vmatpush1.bf16.msra.mxu1 %v8161_v8  ;;  %v8219_v5 = vcombine.low %v747_v53, %v751_v54  ;;  %v8347_v8 = vcombine.low %v875_v57, %v879_v58  ;;  %v959_v42 = vld [vmem:[#allocation8 + $0x6a0] sm:$0xff]  ;;  %v8300_v54 = vcombine.high %v827_v38, %v831_v39 }
  0x9a   :  { %3861 = vmatprep.subr.bf16.mxu0 %v8276_v9  ;;  %3904 = vmatprep.subr.bf16.mxu1 %v8404_v13  ;;  %v8340_v9 = vcombine.high %v867_v61, %v871_v62  ;;  %v8468_v13 = vcombine.high %v995_v2, %v999_v3  ;;  %v10214_v45 = vld [vmem:[#allocation8 + $0x9e0] sm:$0xff]  ;;  %v8299_v58 = vcombine.low %v827_v38, %v831_v39 }
  0x9b   :  { %v10216_v46 = vld [vmem:[#allocation8 + $0xdc0] sm:$0xff] }
  0x9c   :  { %670 = vmatmul.mubr.bf16.vlgmr.msra.gmra.mxu0 %v10204_v10  ;;  %713 = vmatmul.mubr.bf16.vlgmr.msra.gmra.mxu1 %v10204_v10  ;;  %v8252_v10 = vcombine.high %v779_v23, %v783_v24  ;;  %v8459_v23 = vcombine.low %v987_v11, %v991_v12  ;;  %v819_v49 = vld [vmem:[#allocation8 + $0x240] sm:$0xff] }
  0x9d   :  { %3862 = vmatpush1.bf16.msra.mxu0 %v8275_v14  ;;  %3905 = vmatpush1.bf16.msra.mxu1 %v8403_v17  ;;  %v8339_v14 = vcombine.low %v867_v61, %v871_v62  ;;  %v8460_v17 = vcombine.high %v987_v11, %v991_v12  ;;  %v823_v50 = vld [vmem:[#allocation8 + $0x260] sm:$0xff]  ;;  %v8427_v61 = vcombine.low %v955_v41, %v959_v42  ;;  %v185_v12 = vlaneseq }
  0x9e   :  { %3863 = vmatprep.subr.bf16.mxu0 %v8268_v18  ;;  %3906 = vmatprep.subr.bf16.mxu1 %v8396_v21  ;;  %v851_v18 = vld [vmem:[#allocation8 + $0x340] sm:$0xff]  ;;  %v8292_v62 = vcombine.high %v819_v49, %v823_v50  ;;  %v8291_v3 = vcombine.low %v819_v49, %v823_v50 }
  0x9f   :  { %v983_v21 = vld [vmem:[#allocation8 + $0x760] sm:$0xff]  ;;  %v8324_v24 = vcombine.high %v851_v18, %v855_v19 }
  0xa0   :  { %v8451_v31 = vcombine.low %v979_v20, %v983_v21  ;;  %v951_v57 = vld [vmem:[#allocation8 + $0x660] sm:$0xff] }
  0xa1   :  { %3864 = vmatpush1.bf16.msra.mxu0 %v8267_v22  ;;  %3907 = vmatpush1.bf16.msra.mxu1 %v8395_v25  ;;  %v8331_v22 = vcombine.low %v859_v6, %v863_v7  ;;  %v8452_v25 = vcombine.high %v979_v20, %v983_v21  ;;  %v943_v2 = vld [vmem:[#allocation8 + $0x620] sm:$0xff] }
  0xa2   :  { %3865 = vmatprep.subr.bf16.mxu0 %v8260_v26  ;;  %3908 = vmatprep.subr.bf16.mxu1 %v8388_v29  ;;  %v843_v26 = vld [vmem:[#allocation8 + $0x300] sm:$0xff] }
  0xa3   :  { %v975_v29 = vld [vmem:[#allocation8 + $0x720] sm:$0xff]  ;;  %v8316_v32 = vcombine.high %v843_v26, %v847_v27 }
  0xa4   :  { %v1051_v38 = vld [vmem:[#allocation8 + $0x980] sm:$0xff] }
  0xa5   :  { %3866 = vmatpush1.bf16.msra.mxu0 %v8259_v30  ;;  %3909 = vmatpush1.bf16.msra.mxu1 %v8387_v33  ;;  %v8323_v30 = vcombine.low %v851_v18, %v855_v19  ;;  %v8444_v33 = vcombine.high %v971_v28, %v975_v29 }
  0xa6   :  { %3867 = vmatprep.subr.bf16.mxu0 %v8252_v10  ;;  %3910 = vmatprep.subr.bf16.mxu1 %v8380_v36  ;;  %v835_v10 = vld [vmem:[#allocation8 + $0x2c0] sm:$0xff] }
  0xa7   :  { %v967_v36 = vld [vmem:[#allocation8 + $0x6e0] sm:$0xff] }
  0xa8   :  { %v8435_v53 = vcombine.low %v963_v35, %v967_v36 }
  0xa9   :  { %3868 = vmatpush1.bf16.msra.mxu0 %v8251_v37  ;;  %3911 = vmatpush1.bf16.msra.mxu1 %v8379_v40  ;;  %v8315_v37 = vcombine.low %v843_v26, %v847_v27  ;;  %v8443_v40 = vcombine.low %v971_v28, %v975_v29 }
  0xaa   :  { %3869 = vmatprep.subr.bf16.mxu0 %v8244_v0  ;;  %3912 = vmatprep.subr.bf16.mxu1 %v8372_v43  ;;  %v8308_v0 = vcombine.high %v835_v10, %v839_v34  ;;  %v8436_v43 = vcombine.high %v963_v35, %v967_v36 }
  0xad   :  { %3870 = vmatpush1.bf16.msra.mxu0 %v8243_v44  ;;  %3913 = vmatpush1.bf16.msra.mxu1 %v8371_v47  ;;  %v10212_v44 = vld [vmem:[#allocation8 + $0x9c0] sm:$0xff] }
  0xae   :  { %3871 = vmatprep.subr.bf16.mxu0 %v8236_v48  ;;  %3914 = vmatprep.subr.bf16.mxu1 %v8364_v51  ;;  %v10218_v47 = vld [vmem:[#allocation8 + $0xde0] sm:$0xff]  ;;  %v8307_v48 = vcombine.low %v835_v10, %v839_v34  ;;  %v8531_v51 = vcombine.low %v10212_v44, %v10214_v45 }
  0xaf   :  { %v8660_v11 = vcombine.high %v10216_v46, %v10218_v47 }
  0xb1   :  { %3872 = vmatpush1.bf16.msra.mxu0 %v8235_v52  ;;  %3915 = vmatpush1.bf16.msra.mxu1 %v8363_v55  ;;  %v8659_v52 = vcombine.low %v10216_v46, %v10218_v47  ;;  %v8428_v55 = vcombine.high %v955_v41, %v959_v42  ;;  %v1055_v42 = vld [vmem:[#allocation8 + $0x9a0] sm:$0xff] }
  0xb2   :  { %3873 = vmatprep.subr.bf16.mxu0 %v8228_v56  ;;  %3916 = vmatprep.subr.bf16.mxu1 %v8356_v59  ;;  %v947_v56 = vld [vmem:[#allocation8 + $0x640] sm:$0xff] }
  0xb3   :  { %v811_v59 = vld [vmem:[#allocation8 + $0x200] sm:$0xff] }
  0xb4   :  { %v1159_v47 = vld [vmem:[#allocation8 + $0xce0] sm:$0xff] }
  0xb5   :  { %3874 = vmatpush1.bf16.msra.mxu0 %v8227_v60  ;;  %3917 = vmatpush1.bf16.msra.mxu1 %v8355_v63  ;;  %v815_v60 = vld [vmem:[#allocation8 + $0x220] sm:$0xff]  ;;  %v8420_v63 = vcombine.high %v947_v56, %v951_v57 }
  0xb6   :  { %3875 = vmatprep.subr.bf16.mxu0 %v8220_v1  ;;  %3918 = vmatprep.subr.bf16.mxu1 %v8348_v4  ;;  %v939_v1 = vld [vmem:[#allocation8 + $0x600] sm:$0xff]  ;;  %v8419_v4 = vcombine.low %v947_v56, %v951_v57  ;;  %v8283_v7 = vcombine.low %v811_v59, %v815_v60 }
  0xb7   :  { %v8412_v6 = vcombine.high %v939_v1, %v943_v2 }
  0xb9   :  { %3876 = vmatpush1.bf16.msra.mxu0 %v8219_v5  ;;  %3919 = vmatpush1.bf16.msra.mxu1 %v8347_v8  ;;  %v8284_v5 = vcombine.high %v811_v59, %v815_v60  ;;  %v8411_v8 = vcombine.low %v939_v1, %v943_v2  ;;  %v1175_v1 = vld [vmem:[#allocation8 + $0xd60] sm:$0xff]  ;;  %v8523_v2 = vcombine.low %v1051_v38, %v1055_v42 }
  0xba   :  { %3877 = vmatprep.subr.bf16.mxu0 %v8340_v9  ;;  %3920 = vmatprep.subr.bf16.mxu1 %v8468_v13  ;;  %v8532_v9 = vcombine.high %v10212_v44, %v10214_v45  ;;  %v10228_v13 = vshrl.u32 %v185_v12, 7  ;;  %v1031_v12 = vld [vmem:[#allocation8 + $0x8e0] sm:$0xff] }
  0xbc   :  { %v10242_v18 = vsub.s32 3, %v10228_v13 }
  0xbd   :  { %3878 = vmatpush2.bf16.msra.mxu0 %v8339_v14  ;;  %3921 = vmatpush2.bf16.msra.mxu1 %v8467_v15  ;;  %v10231_v14 = vsub.s32 0, %v10228_v13  ;;  %v10233_v15 = vld [vmem:[#allocation7] sm:$0xff] }
  0xbe   :  { %3879 = vmatprep.subr.bf16.mxu0 %v8332_v16  ;;  %3922 = vmatprep.subr.bf16.mxu1 %v8460_v17  ;;  %v10236_v16 = vsub.s32 2, %v10228_v13  ;;  %v10239_v17 = vsub.s32 1, %v10228_v13 }
  0xbf   :  { %v188_v19 = vrot.slane %v10233_v15, %v10231_v14 }
  0xc0   :  { %v196_v21 = vrot.slane %v10233_v15, %v10236_v16 }
  0xc1   :  { %3880 = vmatpush2.bf16.msra.mxu0 %v8331_v22  ;;  %3923 = vmatpush2.bf16.msra.mxu1 %v8459_v23  ;;  %v192_v22 = vrot.slane %v10233_v15, %v10239_v17 }
  0xc2   :  { %3881 = vmatprep.subr.bf16.mxu0 %v8324_v24  ;;  %3924 = vmatprep.subr.bf16.mxu1 %v8452_v25  ;;  %v200_v25 = vrot.slane %v10233_v15, %v10242_v18 }
  0xc5   :  { %3882 = vmatpush2.bf16.msra.mxu0 %v8323_v30  ;;  %3925 = vmatpush2.bf16.msra.mxu1 %v8451_v31 }
  0xc6   :  { %3883 = vmatprep.subr.bf16.mxu0 %v8316_v32  ;;  %3926 = vmatprep.subr.bf16.mxu1 %v8444_v33 }
  0xc9   :  { %3884 = vmatpush2.bf16.msra.mxu0 %v8315_v37  ;;  %3927 = vmatpush2.bf16.msra.mxu1 %v8443_v40 }
  0xca   :  { %3885 = vmatprep.subr.bf16.mxu0 %v8308_v0  ;;  %3928 = vmatprep.subr.bf16.mxu1 %v8436_v43  ;;  %v1179_v43 = vld [vmem:[#allocation8 + $0xd80] sm:$0xff] }
  0xcd   :  { %3886 = vmatpush2.bf16.msra.mxu0 %v8307_v48  ;;  %3929 = vmatpush2.bf16.msra.mxu1 %v8435_v53  ;;  %v1183_v48 = vld [vmem:[#allocation8 + $0xda0] sm:$0xff] }
  0xce   :  { %3887 = vmatprep.subr.bf16.mxu0 %v8300_v54  ;;  %3930 = vmatprep.subr.bf16.mxu1 %v8428_v55  ;;  %v8652_v60 = vcombine.high %v1179_v43, %v1183_v48 }
  0xd1   :  { %3888 = vmatpush2.bf16.msra.mxu0 %v8299_v58  ;;  %3931 = vmatpush2.bf16.msra.mxu1 %v8427_v61  ;;  %v8524_v58 = vcombine.high %v1051_v38, %v1055_v42  ;;  %v1043_v61 = vld [vmem:[#allocation8 + $0x940] sm:$0xff] }
  0xd2   :  { %3889 = vmatprep.subr.bf16.mxu0 %v8292_v62  ;;  %3932 = vmatprep.subr.bf16.mxu1 %v8420_v63  ;;  %v1047_v62 = vld [vmem:[#allocation8 + $0x960] sm:$0xff] }
  0xd3   :  { %v1171_v63 = vld [vmem:[#allocation8 + $0xd40] sm:$0xff] }
  0xd4   :  { %v8643_v44 = vcombine.low %v1171_v63, %v1175_v1 }
  0xd5   :  { %3890 = vmatpush2.bf16.msra.mxu0 %v8291_v3  ;;  %3933 = vmatpush2.bf16.msra.mxu1 %v8419_v4  ;;  %v8651_v3 = vcombine.low %v1179_v43, %v1183_v48  ;;  %v8516_v4 = vcombine.high %v1043_v61, %v1047_v62 }
  0xd6   :  { %3891 = vmatprep.subr.bf16.mxu0 %v8284_v5  ;;  %3934 = vmatprep.subr.bf16.mxu1 %v8412_v6  ;;  %v8644_v5 = vcombine.high %v1171_v63, %v1175_v1  ;;  %v1035_v6 = vld [vmem:[#allocation8 + $0x900] sm:$0xff] }
  0xd7   :  { %v1123_v63 = vld [vmem:[#allocation8 + $0xbc0] sm:$0xff] }
  0xd8   :  { %v1127_v1 = vld [vmem:[#allocation8 + $0xbe0] sm:$0xff] }
  0xd9   :  { %3892 = vmatpush2.bf16.msra.mxu0 %v8283_v7  ;;  %3935 = vmatpush2.bf16.msra.mxu1 %v8411_v8  ;;  %v1039_v7 = vld [vmem:[#allocation8 + $0x920] sm:$0xff] }
  0xda   :  { %3947 = vmatprep.subr.bf16.mxu0 %v8532_v9  ;;  %3990 = vmatprep.subr.bf16.mxu1 %v8660_v11  ;;  %v1163_v8 = vld [vmem:[#allocation8 + $0xd00] sm:$0xff]  ;;  %v8515_v11 = vcombine.low %v1043_v61, %v1047_v62  ;;  %v8508_v45 = vcombine.high %v1035_v6, %v1039_v7 }
  0xdb   :  { %v1167_v9 = vld [vmem:[#allocation8 + $0xd20] sm:$0xff] }
  0xdc   :  { %v8636_v46 = vcombine.high %v1163_v8, %v1167_v9 }
 0x13c   :  { %v585_v20 = vpop.f32.mrf.mxu0  ;;  %v628_v23 = vpop.f32.mrf.mxu1 }
 0x13d   :  { %v586_v26 = vadd.f32 %v585_v20, %v188_v19  ;;  %v629_v28 = vadd.f32 %v628_v23, %v196_v21  ;;  %v8635_v20 = vcombine.low %v1163_v8, %v1167_v9  ;;  %v1023_v23 = vld [vmem:[#allocation8 + $0x8a0] sm:$0xff] }
 0x13e   :  { %v587_v24 = vpop.f32.mrf.mxu0  ;;  %v630_v27 = vpop.f32.mrf.mxu1 }
 0x13f   :  { %v588_v29 = vadd.f32 %v587_v24, %v192_v22  ;;  %v631_v33 = vadd.f32 %v630_v27, %v200_v25  ;;  %v723_v35 = vmax.f32 %v586_v26, 0.0  ;;  %v725_v39 = vmax.f32 %v629_v28, 0.0  ;;  %v1147_v24 = vld [vmem:[#allocation8 + $0xc80] sm:$0xff] }
 0x140   :  { %v589_v30 = vpop.f32.mrf.mxu0  ;;  %v632_v32 = vpop.f32.mrf.mxu1  ;;  %v1151_v26 = vld [vmem:[#allocation8 + $0xca0] sm:$0xff]  ;;  %v10271_v27 = vsub.s32 5, %v10228_v13 }
 0x141   :  { %v590_v31 = vadd.f32 %v589_v30, %v188_v19  ;;  %v633_v10 = vadd.f32 %v632_v32, %v196_v21  ;;  %v724_v40 = vmax.f32 %v588_v29, 0.0  ;;  %v726_v53 = vmax.f32 %v631_v33, 0.0  ;;  %v1155_v19 = vld [vmem:[#allocation8 + $0xcc0] sm:$0xff] }
 0x142   :  { %v591_v34 = vpop.f32.mrf.mxu0  ;;  %v634_v37 = vpop.f32.mrf.mxu1  ;;  %v8627_v29 = vcombine.low %v1155_v19, %v1159_v47  ;;  %v1015_v32 = vld [vmem:[#allocation8 + $0x860] sm:$0xff]  ;;  %v8619_v38 = vcombine.low %v1147_v24, %v1151_v26 }
 0x143   :  { %v592_v36 = vadd.f32 %v591_v34, %v192_v22  ;;  %v731_v0 = vmax.f32 %v590_v31, 0.0  ;;  %v635_v41 = vadd.f32 %v634_v37, %v200_v25  ;;  %v733_v49 = vmax.f32 %v633_v10, 0.0  ;;  %v1019_v22 = vld [vmem:[#allocation8 + $0x880] sm:$0xff] }
 0x144   :  { %v8628_v25 = vcombine.high %v1155_v19, %v1159_v47  ;;  %v8492_v30 = vcombine.high %v1019_v22, %v1023_v23  ;;  %v1011_v31 = vld [vmem:[#allocation8 + $0x840] sm:$0xff]  ;;  %v215_v10 = vsub.s32 7, %v10228_v13  ;;  %v8620_v34 = vcombine.high %v1147_v24, %v1151_v26 }
 0x145   :  { %v732_v50 = vmax.f32 %v592_v36, 0.0  ;;  %v734_v54 = vmax.f32 %v635_v41, 0.0  ;;  %v10254_v56 = vpack.c.bf16 %v731_v0, %v723_v35  ;;  %v10258_v59 = vpack.c.bf16 %v733_v49, %v725_v39  ;;  %v1139_v33 = vld [vmem:[#allocation8 + $0xc40] sm:$0xff] }
 0x146   :  { %v1143_v35 = vld [vmem:[#allocation8 + $0xc60] sm:$0xff]  ;;  %v8491_v36 = vcombine.low %v1019_v22, %v1023_v23  ;;  %v208_v37 = vrot.slane %v10233_v15, %v10271_v27  ;;  %v8484_v39 = vcombine.high %v1011_v31, %v1015_v32  ;;  %v216_v43 = vrot.slane %v10233_v15, %v215_v10 }
 0x147   :  { %v10252_v55 = vpack.c.bf16 %v732_v50, %v724_v40  ;;  %v10256_v57 = vpack.c.bf16 %v734_v54, %v726_v53  ;;  %v1003_v40 = vld [vmem:[#allocation8 + $0x800] sm:$0xff]  ;;  %v8612_v48 = vcombine.high %v1139_v33, %v1143_v35  ;;  %v8483_v54 = vcombine.low %v1011_v31, %v1015_v32 }
 0x148   :  { %v1007_v0 = vld [vmem:[#allocation8 + $0x820] sm:$0xff]  ;;  %v8611_v61 = vcombine.low %v1139_v33, %v1143_v35 }
 0x149   :  { %3893 = vmatprep.mubr.bf16.mxu0 %v10252_v55  ;;  %3936 = vmatprep.mubr.bf16.mxu1 %v10256_v57  ;;  %v1131_v41 = vld [vmem:[#allocation8 + $0xc00] sm:$0xff]  ;;  %v8476_v62 = vcombine.high %v1003_v40, %v1007_v0  ;;  %v8475_v9 = vcombine.low %v1003_v40, %v1007_v0 }
 0x14a   :  { %3894 = vmatmul.mubr.bf16.vlgmr.msra.gmra.mxu0 %v10254_v56  ;;  %3937 = vmatmul.mubr.bf16.vlgmr.msra.gmra.mxu1 %v10258_v59  ;;  %v1135_v49 = vld [vmem:[#allocation8 + $0xc20] sm:$0xff] }
 0x14b   :  { %3948 = vmatpush1.bf16.msra.mxu0 %v8531_v51  ;;  %3991 = vmatpush1.bf16.msra.mxu1 %v8659_v52  ;;  %v1027_v51 = vld [vmem:[#allocation8 + $0x8c0] sm:$0xff]  ;;  %v8507_v52 = vcombine.low %v1035_v6, %v1039_v7 }
 0x14c   :  { %3949 = vmatprep.subr.bf16.mxu0 %v8524_v58  ;;  %3992 = vmatprep.subr.bf16.mxu1 %v8652_v60  ;;  %v8500_v21 = vcombine.high %v1027_v51, %v1031_v12  ;;  %v8499_v28 = vcombine.low %v1027_v51, %v1031_v12  ;;  %v1255_v7 = vld [vmem:[#allocation8 + $0xfe0] sm:$0xff]  ;;  %v8603_v51 = vcombine.low %v1131_v41, %v1135_v49 }
 0x14d   :  { %v8596_v12 = vcombine.high %v1123_v63, %v1127_v1  ;;  %v1115_v19 = vld [vmem:[#allocation8 + $0xb80] sm:$0xff] }
 0x14e   :  { %v1243_v22 = vld [vmem:[#allocation8 + $0xf80] sm:$0xff] }
 0x14f   :  { %3950 = vmatpush1.bf16.msra.mxu0 %v8523_v2  ;;  %3993 = vmatpush1.bf16.msra.mxu1 %v8651_v3  ;;  %v1247_v23 = vld [vmem:[#allocation8 + $0xfa0] sm:$0xff] }
 0x150   :  { %3951 = vmatprep.subr.bf16.mxu0 %v8516_v4  ;;  %3994 = vmatprep.subr.bf16.mxu1 %v8644_v5  ;;  %v8604_v4 = vcombine.high %v1131_v41, %v1135_v49  ;;  %v1251_v5 = vld [vmem:[#allocation8 + $0xfc0] sm:$0xff]  ;;  %v8716_v31 = vcombine.high %v1243_v22, %v1247_v23 }
 0x151   :  { %v1107_v32 = vld [vmem:[#allocation8 + $0xb40] sm:$0xff] }
 0x152   :  { %v1111_v33 = vld [vmem:[#allocation8 + $0xb60] sm:$0xff] }
 0x153   :  { %3952 = vmatpush1.bf16.msra.mxu0 %v8515_v11  ;;  %3995 = vmatpush1.bf16.msra.mxu1 %v8643_v44  ;;  %v1239_v35 = vld [vmem:[#allocation8 + $0xf60] sm:$0xff] }
 0x154   :  { %3953 = vmatprep.subr.bf16.mxu0 %v8508_v45  ;;  %3996 = vmatprep.subr.bf16.mxu1 %v8636_v46  ;;  %v1099_v40 = vld [vmem:[#allocation8 + $0xb00] sm:$0xff] }
 0x155   :  { %v1103_v0 = vld [vmem:[#allocation8 + $0xb20] sm:$0xff] }
 0x156   :  { %v1227_v41 = vld [vmem:[#allocation8 + $0xf00] sm:$0xff] }
 0x157   :  { %3954 = vmatpush1.bf16.msra.mxu0 %v8507_v52  ;;  %3997 = vmatpush1.bf16.msra.mxu1 %v8635_v20  ;;  %v8724_v52 = vcombine.high %v1251_v5, %v1255_v7  ;;  %v1119_v20 = vld [vmem:[#allocation8 + $0xba0] sm:$0xff] }
 0x158   :  { %3955 = vmatprep.subr.bf16.mxu0 %v8500_v21  ;;  %3998 = vmatprep.subr.bf16.mxu1 %v8628_v25  ;;  %v8595_v25 = vcombine.low %v1123_v63, %v1127_v1  ;;  %v8571_v63 = vcombine.low %v1099_v40, %v1103_v0 }
 0x15b   :  { %3956 = vmatpush1.bf16.msra.mxu0 %v8499_v28  ;;  %3999 = vmatpush1.bf16.msra.mxu1 %v8627_v29  ;;  %v8723_v28 = vcombine.low %v1251_v5, %v1255_v7  ;;  %v8588_v29 = vcombine.high %v1115_v19, %v1119_v20  ;;  %v1083_v5 = vld [vmem:[#allocation8 + $0xa80] sm:$0xff] }
 0x15c   :  { %3957 = vmatprep.subr.bf16.mxu0 %v8492_v30  ;;  %v10276_v42 = vpop.f32.mrf.mxu0  ;;  %4000 = vmatprep.subr.bf16.mxu1 %v8620_v34  ;;  %v10281_v50 = vpop.f32.mrf.mxu1  ;;  %v1235_v34 = vld [vmem:[#allocation8 + $0xf40] sm:$0xff] }
 0x15d   :  { %v8707_v49 = vcombine.low %v1235_v34, %v1239_v35  ;;  %v1087_v7 = vld [vmem:[#allocation8 + $0xaa0] sm:$0xff] }
 0x15e   :  { %v673_v53 = vpop.f32.mrf.mxu0  ;;  %v716_v60 = vpop.f32.mrf.mxu1 }
 0x15f   :  { %3958 = vmatpush1.bf16.msra.mxu0 %v8491_v36  ;;  %v674_v58 = vadd.f32 %v673_v53, %v208_v37  ;;  %4001 = vmatpush1.bf16.msra.mxu1 %v8619_v38  ;;  %v717_v3 = vadd.f32 %v716_v60, %v216_v43  ;;  %v8587_v36 = vcombine.low %v1115_v19, %v1119_v20  ;;  %v1095_v60 = vld [vmem:[#allocation8 + $0xae0] sm:$0xff] }
 0x160   :  { %3959 = vmatprep.subr.bf16.mxu0 %v8484_v39  ;;  %v10283_v2 = vpop.f32.mrf.mxu0  ;;  %4002 = vmatprep.subr.bf16.mxu1 %v8612_v48  ;;  %v10285_v6 = vpop.f32.mrf.mxu1  ;;  %v8580_v38 = vcombine.high %v1107_v32, %v1111_v33  ;;  %v8708_v39 = vcombine.high %v1235_v34, %v1239_v35  ;;  %v8579_v48 = vcombine.low %v1107_v32, %v1111_v33  ;;  %v1207_v20 = vld [vmem:[#allocation8 + $0xe60] sm:$0xff] }
 0x161   :  { %v728_v11 = vmax.f32 %v674_v58, 0.0  ;;  %v730_v46 = vmax.f32 %v717_v3, 0.0  ;;  %v8572_v53 = vcombine.high %v1099_v40, %v1103_v0  ;;  %v1091_v58 = vld [vmem:[#allocation8 + $0xac0] sm:$0xff]  ;;  %v804_v0 = vld [vmem:[#allocation8 + $0x1c8] sm:$0xff] }
 0x162   :  { %v677_v8 = vpop.f32.mrf.mxu0  ;;  %v720_v45 = vpop.f32.mrf.mxu1  ;;  %v8564_v3 = vcombine.high %v1091_v58, %v1095_v60  ;;  %v1195_v32 = vld [vmem:[#allocation8 + $0xe00] sm:$0xff] }
 0x163   :  { %3960 = vmatpush1.bf16.msra.mxu0 %v8483_v54  ;;  %v678_v44 = vadd.f32 %v677_v8, %v208_v37  ;;  %4003 = vmatpush1.bf16.msra.mxu1 %v8611_v61  ;;  %v721_v47 = vadd.f32 %v720_v45, %v216_v43  ;;  %v8715_v37 = vcombine.low %v1243_v22, %v1247_v23  ;;  %v1231_v43 = vld [vmem:[#allocation8 + $0xf20] sm:$0xff] }
 0x164   :  { %3961 = vmatprep.subr.bf16.mxu0 %v8476_v62  ;;  %4004 = vmatprep.subr.bf16.mxu1 %v8604_v4  ;;  %v8700_v54 = vcombine.high %v1227_v41, %v1231_v43  ;;  %v1219_v61 = vld [vmem:[#allocation8 + $0xec0] sm:$0xff]  ;;  %v8699_v1 = vcombine.low %v1227_v41, %v1231_v43  ;;  %v808_v41 = vld [vmem:[#allocation8 + $0x1e8] sm:$0xff] }
 0x165   :  { %v736_v21 = vmax.f32 %v678_v44, 0.0  ;;  %v738_v24 = vmax.f32 %v721_v47, 0.0  ;;  %v1223_v62 = vld [vmem:[#allocation8 + $0xee0] sm:$0xff]  ;;  %v10294_v44 = vsub.s32 4, %v10228_v13  ;;  %v932_v43 = vld [vmem:[#allocation8 + $0x5c8] sm:$0xff] }
 0x166   :  { %v8692_v4 = vcombine.high %v1219_v61, %v1223_v62  ;;  %v1211_v8 = vld [vmem:[#allocation8 + $0xe80] sm:$0xff]  ;;  %v8691_v45 = vcombine.low %v1219_v61, %v1223_v62  ;;  %v796_v61 = vld [vmem:[#allocation8 + $0x188] sm:$0xff]  ;;  %v8277_v62 = vcombine.low %v804_v0, %v808_v41 }
 0x167   :  { %3962 = vmatpush1.bf16.msra.mxu0 %v8475_v9  ;;  %v10287_v26 = vpack.c.bf16 %v736_v21, %v728_v11  ;;  %4005 = vmatpush1.bf16.msra.mxu1 %v8603_v51  ;;  %v10289_v30 = vpack.c.bf16 %v738_v24, %v730_v46  ;;  %v1215_v9 = vld [vmem:[#allocation8 + $0xea0] sm:$0xff]  ;;  %v8563_v11 = vcombine.low %v1091_v58, %v1095_v60 }
 0x168   :  { %3963 = vmatprep.subr.bf16.mxu0 %v8596_v12  ;;  %4006 = vmatprep.subr.bf16.mxu1 %v8724_v52  ;;  %v8556_v51 = vcombine.high %v1083_v5, %v1087_v7  ;;  %v10297_v12 = vsub.s32 6, %v10228_v13  ;;  %v8684_v19 = vcombine.high %v1211_v8, %v1215_v9  ;;  %v1075_v46 = vld [vmem:[#allocation8 + $0xa40] sm:$0xff]  ;;  %v8555_v21 = vcombine.low %v1083_v5, %v1087_v7 }
 0x169   :  { %3979 = vmatprep.mubr.bf16.mxu0 %v10287_v26  ;;  %4022 = vmatprep.mubr.bf16.mxu1 %v10289_v30  ;;  %v1079_v47 = vld [vmem:[#allocation8 + $0xa60] sm:$0xff]  ;;  %v204_v22 = vrot.slane %v10233_v15, %v10294_v44  ;;  %v8683_v23 = vcombine.low %v1211_v8, %v1215_v9  ;;  %v788_v8 = vld [vmem:[#allocation8 + $0x148] sm:$0xff] }
 0x16a   :  { %v1203_v52 = vld [vmem:[#allocation8 + $0xe40] sm:$0xff]  ;;  %v8548_v24 = vcombine.high %v1075_v46, %v1079_v47  ;;  %v8547_v34 = vcombine.low %v1075_v46, %v1079_v47  ;;  %v792_v9 = vld [vmem:[#allocation8 + $0x168] sm:$0xff] }
 0x16b   :  { %3964 = vmatpush2.bf16.msra.mxu0 %v8595_v25  ;;  %4007 = vmatpush2.bf16.msra.mxu1 %v8723_v28  ;;  %v212_v25 = vrot.slane %v10233_v15, %v10297_v12  ;;  %v8676_v28 = vcombine.high %v1203_v52, %v1207_v20  ;;  %v1199_v33 = vld [vmem:[#allocation8 + $0xe20] sm:$0xff]  ;;  %v8675_v35 = vcombine.low %v1203_v52, %v1207_v20  ;;  %v780_v20 = vld [vmem:[#allocation8 + $0x108] sm:$0xff] }
 0x16c   :  { %3965 = vmatprep.subr.bf16.mxu0 %v8588_v29  ;;  %4008 = vmatprep.subr.bf16.mxu1 %v8716_v31  ;;  %v1067_v29 = vld [vmem:[#allocation8 + $0xa00] sm:$0xff]  ;;  %v8668_v40 = vcombine.high %v1195_v32, %v1199_v33  ;;  %v8262_v47 = vcombine.high %v788_v8, %v792_v9 }
 0x16d   :  { %v1071_v31 = vld [vmem:[#allocation8 + $0xa20] sm:$0xff]  ;;  %v719_v15 = vadd.f32 %v10285_v6, %v212_v25  ;;  %v800_v6 = vld [vmem:[#allocation8 + $0x1a8] sm:$0xff] }
 0x16e   :  { %v8270_v7 = vcombine.high %v796_v61, %v800_v6 }
 0x16f   :  { %3966 = vmatpush2.bf16.msra.mxu0 %v8587_v36  ;;  %4009 = vmatpush2.bf16.msra.mxu1 %v8715_v37  ;;  %v672_v36 = vadd.f32 %v10276_v42, %v204_v22  ;;  %v676_v37 = vadd.f32 %v10283_v2, %v204_v22  ;;  %v8667_v42 = vcombine.low %v1195_v32, %v1199_v33  ;;  %v737_v60 = vmax.f32 %v719_v15, 0.0  ;;  %v908_v22 = vld [vmem:[#allocation8 + $0x508] sm:$0xff] }
 0x170   :  { %3967 = vmatprep.subr.bf16.mxu0 %v8580_v38  ;;  %4010 = vmatprep.subr.bf16.mxu1 %v8708_v39  ;;  %v8540_v38 = vcombine.high %v1067_v29, %v1071_v31  ;;  %v715_v39 = vadd.f32 %v10281_v50, %v212_v25  ;;  %v8278_v2 = vcombine.high %v804_v0, %v808_v41  ;;  %v776_v32 = vld [vmem:[#allocation8 + $0xe8] sm:$0xff] }
 0x171   :  { %v900_v33 = vld [vmem:[#allocation8 + $0x4c8] sm:$0xff] }
 0x172   :  { %v729_v58 = vmax.f32 %v715_v39, 0.0  ;;  %v764_v39 = vld [vmem:[#allocation8 + $0x88] sm:$0xff] }
 0x173   :  { %3968 = vmatpush2.bf16.msra.mxu0 %v8579_v48  ;;  %4011 = vmatpush2.bf16.msra.mxu1 %v8707_v49  ;;  %v936_v48 = vld [vmem:[#allocation8 + $0x5e8] sm:$0xff]  ;;  %v8539_v49 = vcombine.low %v1067_v29, %v1071_v31 }
 0x174   :  { %3969 = vmatprep.subr.bf16.mxu0 %v8572_v53  ;;  %4012 = vmatprep.subr.bf16.mxu1 %v8700_v54  ;;  %v727_v53 = vmax.f32 %v672_v36, 0.0  ;;  %v735_v54 = vmax.f32 %v676_v37, 0.0  ;;  %v8406_v50 = vcombine.high %v932_v43, %v936_v48  ;;  %v10309_v5 = vpack.c.bf16 %v737_v60, %v729_v58  ;;  %v772_v31 = vld [vmem:[#allocation8 + $0xc8] sm:$0xff] }
 0x175   :  { %v8246_v37 = vcombine.high %v772_v31, %v776_v32  ;;  %v768_v15 = vld [vmem:[#allocation8 + $0xa8] sm:$0xff]  ;;  %v8245_v41 = vcombine.low %v772_v31, %v776_v32 }
 0x176   :  { %v896_v0 = vld [vmem:[#allocation8 + $0x4a8] sm:$0xff]  ;;  %v8237_v58 = vcombine.low %v764_v39, %v768_v15 }
 0x177   :  { %3970 = vmatpush2.bf16.msra.mxu0 %v8571_v63  ;;  %4013 = vmatpush2.bf16.msra.mxu1 %v8699_v1  ;;  %v924_v63 = vld [vmem:[#allocation8 + $0x588] sm:$0xff] }
 0x178   :  { %3971 = vmatprep.subr.bf16.mxu0 %v8564_v3  ;;  %4014 = vmatprep.subr.bf16.mxu1 %v8692_v4  ;;  %v928_v1 = vld [vmem:[#allocation8 + $0x5a8] sm:$0xff]  ;;  %v10307_v3 = vpack.c.bf16 %v735_v54, %v727_v53  ;;  %v8405_v4 = vcombine.low %v932_v43, %v936_v48  ;;  %v8238_v48 = vcombine.high %v764_v39, %v768_v15 }
 0x179   :  { %v8397_v46 = vcombine.low %v924_v63, %v928_v1  ;;  %v756_v53 = vld [vmem:[#allocation8 + $0x48] sm:$0xff] }
 0x17a   :  { %v760_v54 = vld [vmem:[#allocation8 + $0x68] sm:$0xff] }
 0x17b   :  { %3972 = vmatpush2.bf16.msra.mxu0 %v8563_v11  ;;  %4015 = vmatpush2.bf16.msra.mxu1 %v8691_v45  ;;  %v8398_v11 = vcombine.high %v924_v63, %v928_v1  ;;  %v916_v45 = vld [vmem:[#allocation8 + $0x548] sm:$0xff] }
 0x17c   :  { %3973 = vmatprep.subr.bf16.mxu0 %v8556_v51  ;;  %4016 = vmatprep.subr.bf16.mxu1 %v8684_v19  ;;  %v920_v51 = vld [vmem:[#allocation8 + $0x568] sm:$0xff]  ;;  %v8269_v19 = vcombine.low %v796_v61, %v800_v6 }
 0x17d   :  { %v8390_v52 = vcombine.high %v916_v45, %v920_v51  ;;  %v8389_v25 = vcombine.low %v916_v45, %v920_v51  ;;  %v748_v6 = vld [vmem:[#allocation8 + $0x8] sm:$0xff] }
 0x17e   :  { %v876_v63 = vld [vmem:[#allocation8 + $0x408] sm:$0xff] }
 0x17f   :  { %3974 = vmatpush2.bf16.msra.mxu0 %v8555_v21  ;;  %4017 = vmatpush2.bf16.msra.mxu1 %v8683_v23  ;;  %v784_v21 = vld [vmem:[#allocation8 + $0x128] sm:$0xff] }
 0x180   :  { %3975 = vmatprep.subr.bf16.mxu0 %v8548_v24  ;;  %4018 = vmatprep.subr.bf16.mxu1 %v8676_v28  ;;  %v912_v23 = vld [vmem:[#allocation8 + $0x528] sm:$0xff]  ;;  %v8261_v24 = vcombine.low %v788_v8, %v792_v9  ;;  %v8254_v28 = vcombine.high %v780_v20, %v784_v21 }
 0x181   :  { %v8382_v29 = vcombine.high %v908_v22, %v912_v23  ;;  %v8381_v36 = vcombine.low %v908_v22, %v912_v23  ;;  %v880_v1 = vld [vmem:[#allocation8 + $0x428] sm:$0xff] }
 0x182   :  { %v8350_v9 = vcombine.high %v876_v63, %v880_v1  ;;  %v872_v45 = vld [vmem:[#allocation8 + $0x3e8] sm:$0xff] }
 0x183   :  { %3976 = vmatpush2.bf16.msra.mxu0 %v8547_v34  ;;  %4019 = vmatpush2.bf16.msra.mxu1 %v8675_v35  ;;  %v904_v34 = vld [vmem:[#allocation8 + $0x4e8] sm:$0xff]  ;;  %v8253_v35 = vcombine.low %v780_v20, %v784_v21 }
 0x184   :  { %3977 = vmatprep.subr.bf16.mxu0 %v8540_v38  ;;  %4020 = vmatprep.subr.bf16.mxu1 %v8668_v40  ;;  %v8374_v38 = vcombine.high %v900_v33, %v904_v34  ;;  %v892_v40 = vld [vmem:[#allocation8 + $0x488] sm:$0xff]  ;;  %v8373_v43 = vcombine.low %v900_v33, %v904_v34 }
 0x185   :  { %v8365_v60 = vcombine.low %v892_v40, %v896_v0  ;;  %v996_v51 = vld [vmem:[#allocation8 + $0x7c8] sm:$0xff] }
 0x186   :  { %v860_v21 = vld [vmem:[#allocation8 + $0x388] sm:$0xff] }
 0x187   :  { %3978 = vmatpush2.bf16.msra.mxu0 %v8539_v49  ;;  %4021 = vmatpush2.bf16.msra.mxu1 %v8667_v42  ;;  %v8366_v49 = vcombine.high %v892_v40, %v896_v0  ;;  %v884_v42 = vld [vmem:[#allocation8 + $0x448] sm:$0xff] }
 0x188   :  { %4033 = vmatprep.subr.bf16.mxu0 %v8278_v2  ;;  %4076 = vmatprep.subr.bf16.mxu1 %v8406_v50  ;;  %v888_v2 = vld [vmem:[#allocation8 + $0x468] sm:$0xff]  ;;  %v8230_v50 = vcombine.high %v756_v53, %v760_v54 }
 0x189   :  { %v8358_v61 = vcombine.high %v884_v42, %v888_v2  ;;  %v864_v22 = vld [vmem:[#allocation8 + $0x3a8] sm:$0xff] }
 0x18a   :  { %3980 = vmatmul.mubr.bf16.vlgmr.msra.gmra.mxu0 %v10307_v3  ;;  %4023 = vmatmul.mubr.bf16.vlgmr.msra.gmra.mxu1 %v10309_v5  ;;  %v988_v23 = vld [vmem:[#allocation8 + $0x788] sm:$0xff] }
 0x18b   :  { %4034 = vmatpush1.bf16.msra.mxu0 %v8277_v62  ;;  %4065 = vmatprep.mubr.bf16.mxu0 %v10252_v55  ;;  %v752_v62 = vld [vmem:[#allocation8 + $0x28] sm:$0xff] }
 0x18c   :  { %4077 = vmatpush1.bf16.msra.mxu1 %v8405_v4  ;;  %4108 = vmatprep.mubr.bf16.mxu1 %v10256_v57  ;;  %v8229_v4 = vcombine.low %v756_v53, %v760_v54  ;;  %v8222_v8 = vcombine.high %v748_v6, %v752_v62  ;;  %v852_v32 = vld [vmem:[#allocation8 + $0x348] sm:$0xff] }
 0x18d   :  { %4035 = vmatprep.subr.bf16.mxu0 %v8270_v7  ;;  %4078 = vmatprep.subr.bf16.mxu1 %v8398_v11  ;;  %v8357_v7 = vcombine.low %v884_v42, %v888_v2  ;;  %v868_v11 = vld [vmem:[#allocation8 + $0x3c8] sm:$0xff] }
 0x18e   :  { %v856_v33 = vld [vmem:[#allocation8 + $0x368] sm:$0xff] }
 0x18f   :  { %4036 = vmatpush1.bf16.msra.mxu0 %v8269_v19  ;;  %v1000_v19 = vld [vmem:[#allocation8 + $0x7e8] sm:$0xff] }
 0x190   :  { %4079 = vmatpush1.bf16.msra.mxu1 %v8397_v46  ;;  %4037 = vmatprep.subr.bf16.mxu0 %v8262_v47  ;;  %v8221_v46 = vcombine.low %v748_v6, %v752_v62  ;;  %v8349_v47 = vcombine.low %v876_v63, %v880_v1  ;;  %v8470_v20 = vcombine.high %v996_v51, %v1000_v19  ;;  %v980_v34 = vld [vmem:[#allocation8 + $0x748] sm:$0xff] }
 0x191   :  { %4080 = vmatprep.subr.bf16.mxu1 %v8390_v52  ;;  %v8342_v52 = vcombine.high %v868_v11, %v872_v45  ;;  %v844_v15 = vld [vmem:[#allocation8 + $0x308] sm:$0xff] }
 0x192   :  { %v848_v40 = vld [vmem:[#allocation8 + $0x328] sm:$0xff] }
 0x193   :  { %4038 = vmatpush1.bf16.msra.mxu0 %v8261_v24  ;;  %v992_v24 = vld [vmem:[#allocation8 + $0x7a8] sm:$0xff] }
 0x194   :  { %4081 = vmatpush1.bf16.msra.mxu1 %v8389_v25  ;;  %4039 = vmatprep.subr.bf16.mxu0 %v8254_v28  ;;  %v8341_v25 = vcombine.low %v868_v11, %v872_v45  ;;  %v8469_v28 = vcombine.low %v996_v51, %v1000_v19  ;;  %v8462_v31 = vcombine.high %v988_v23, %v992_v24  ;;  %v972_v0 = vld [vmem:[#allocation8 + $0x708] sm:$0xff] }
 0x195   :  { %4082 = vmatprep.subr.bf16.mxu1 %v8382_v29  ;;  %v8334_v29 = vcombine.high %v860_v21, %v864_v22  ;;  %v836_v54 = vld [vmem:[#allocation8 + $0x2c8] sm:$0xff] }
 0x196   :  { %v840_v42 = vld [vmem:[#allocation8 + $0x2e8] sm:$0xff] }
 0x197   :  { %4040 = vmatpush1.bf16.msra.mxu0 %v8253_v35  ;;  %v984_v35 = vld [vmem:[#allocation8 + $0x768] sm:$0xff] }
 0x198   :  { %4083 = vmatpush1.bf16.msra.mxu1 %v8381_v36  ;;  %4041 = vmatprep.subr.bf16.mxu0 %v8246_v37  ;;  %v8333_v36 = vcombine.low %v860_v21, %v864_v22  ;;  %v8461_v37 = vcombine.low %v988_v23, %v992_v24  ;;  %v8454_v39 = vcombine.high %v980_v34, %v984_v35  ;;  %v964_v2 = vld [vmem:[#allocation8 + $0x6c8] sm:$0xff] }
 0x199   :  { %4084 = vmatprep.subr.bf16.mxu1 %v8374_v38  ;;  %v8326_v38 = vcombine.high %v852_v32, %v856_v33  ;;  %v828_v62 = vld [vmem:[#allocation8 + $0x288] sm:$0xff] }
 0x19a   :  { %v832_v63 = vld [vmem:[#allocation8 + $0x2a8] sm:$0xff] }
 0x19b   :  { %4042 = vmatpush1.bf16.msra.mxu0 %v8245_v41  ;;  %v976_v41 = vld [vmem:[#allocation8 + $0x728] sm:$0xff] }
 0x19c   :  { %4085 = vmatpush1.bf16.msra.mxu1 %v8373_v43  ;;  %4043 = vmatprep.subr.bf16.mxu0 %v8238_v48  ;;  %v8325_v43 = vcombine.low %v852_v32, %v856_v33  ;;  %v8453_v48 = vcombine.low %v980_v34, %v984_v35  ;;  %v8446_v53 = vcombine.high %v972_v0, %v976_v41  ;;  %v956_v1 = vld [vmem:[#allocation8 + $0x688] sm:$0xff] }
 0x19d   :  { %4086 = vmatprep.subr.bf16.mxu1 %v8366_v49  ;;  %v8318_v49 = vcombine.high %v844_v15, %v848_v40  ;;  %v820_v45 = vld [vmem:[#allocation8 + $0x248] sm:$0xff] }
 0x19e   :  { %v824_v51 = vld [vmem:[#allocation8 + $0x268] sm:$0xff] }
 0x19f   :  { %4044 = vmatpush1.bf16.msra.mxu0 %v8237_v58  ;;  %v968_v58 = vld [vmem:[#allocation8 + $0x6e8] sm:$0xff] }
 0x1a0   :  { %4087 = vmatpush1.bf16.msra.mxu1 %v8365_v60  ;;  %4045 = vmatprep.subr.bf16.mxu0 %v8230_v50  ;;  %v8317_v60 = vcombine.low %v844_v15, %v848_v40  ;;  %v8445_v50 = vcombine.low %v972_v0, %v976_v41  ;;  %v8438_v6 = vcombine.high %v964_v2, %v968_v58  ;;  %v948_v19 = vld [vmem:[#allocation8 + $0x648] sm:$0xff] }
 0x1a1   :  { %4088 = vmatprep.subr.bf16.mxu1 %v8358_v61  ;;  %v8310_v61 = vcombine.high %v836_v54, %v840_v42  ;;  %v812_v22 = vld [vmem:[#allocation8 + $0x208] sm:$0xff] }
 0x1a2   :  { %v816_v23 = vld [vmem:[#allocation8 + $0x228] sm:$0xff] }
 0x1a3   :  { %4046 = vmatpush1.bf16.msra.mxu0 %v8229_v4  ;;  %v960_v4 = vld [vmem:[#allocation8 + $0x6a8] sm:$0xff] }
 0x1a4   :  { %4089 = vmatpush1.bf16.msra.mxu1 %v8357_v7  ;;  %4047 = vmatprep.subr.bf16.mxu0 %v8222_v8  ;;  %v8309_v7 = vcombine.low %v836_v54, %v840_v42  ;;  %v8437_v8 = vcombine.low %v964_v2, %v968_v58  ;;  %v8430_v11 = vcombine.high %v956_v1, %v960_v4  ;;  %v940_v24 = vld [vmem:[#allocation8 + $0x608] sm:$0xff] }
 0x1a5   :  { %4090 = vmatprep.subr.bf16.mxu1 %v8350_v9  ;;  %v8302_v9 = vcombine.high %v828_v62, %v832_v63  ;;  %v1060_v33 = vld [vmem:[#allocation8 + $0x9c8] sm:$0xff] }
 0x1a6   :  { %v1064_v34 = vld [vmem:[#allocation8 + $0x9e8] sm:$0xff] }
 0x1a7   :  { %4048 = vmatpush1.bf16.msra.mxu0 %v8221_v46  ;;  %v952_v46 = vld [vmem:[#allocation8 + $0x668] sm:$0xff]  ;;  %v8533_v41 = vcombine.low %v1060_v33, %v1064_v34 }
 0x1a8   :  { %4091 = vmatpush1.bf16.msra.mxu1 %v8349_v47  ;;  %4049 = vmatprep.subr.bf16.mxu0 %v8342_v52  ;;  %v8301_v47 = vcombine.low %v828_v62, %v832_v63  ;;  %v8429_v52 = vcombine.low %v956_v1, %v960_v4  ;;  %v8422_v21 = vcombine.high %v948_v19, %v952_v46  ;;  %v1188_v35 = vld [vmem:[#allocation8 + $0xdc8] sm:$0xff] }
 0x1a9   :  { %4092 = vmatprep.subr.bf16.mxu1 %v8470_v20  ;;  %v8294_v20 = vcombine.high %v820_v45, %v824_v51  ;;  %v1052_v40 = vld [vmem:[#allocation8 + $0x988] sm:$0xff] }
 0x1aa   :  { %v1056_v0 = vld [vmem:[#allocation8 + $0x9a8] sm:$0xff] }
 0x1ab   :  { %4050 = vmatpush2.bf16.msra.mxu0 %v8341_v25  ;;  %v944_v25 = vld [vmem:[#allocation8 + $0x628] sm:$0xff] }
 0x1ac   :  { %4093 = vmatpush2.bf16.msra.mxu1 %v8469_v28  ;;  %4051 = vmatprep.subr.bf16.mxu0 %v8334_v29  ;;  %v8293_v28 = vcombine.low %v820_v45, %v824_v51  ;;  %v8421_v29 = vcombine.low %v948_v19, %v952_v46  ;;  %v8414_v32 = vcombine.high %v940_v24, %v944_v25  ;;  %v1044_v54 = vld [vmem:[#allocation8 + $0x948] sm:$0xff] }
 0x1ad   :  { %4094 = vmatprep.subr.bf16.mxu1 %v8462_v31  ;;  %v8286_v31 = vcombine.high %v812_v22, %v816_v23  ;;  %v1048_v42 = vld [vmem:[#allocation8 + $0x968] sm:$0xff] }
 0x1ae   :  { %v1172_v58 = vld [vmem:[#allocation8 + $0xd48] sm:$0xff] }
 0x1af   :  { %4052 = vmatpush2.bf16.msra.mxu0 %v8333_v36  ;;  %v1192_v36 = vld [vmem:[#allocation8 + $0xde8] sm:$0xff] }
 0x1b0   :  { %4095 = vmatpush2.bf16.msra.mxu1 %v8461_v37  ;;  %4053 = vmatprep.subr.bf16.mxu0 %v8326_v38  ;;  %v8285_v37 = vcombine.low %v812_v22, %v816_v23  ;;  %v8413_v38 = vcombine.low %v940_v24, %v944_v25  ;;  %v8662_v15 = vcombine.high %v1188_v35, %v1192_v36  ;;  %v1036_v63 = vld [vmem:[#allocation8 + $0x908] sm:$0xff] }
 0x1b1   :  { %4096 = vmatprep.subr.bf16.mxu1 %v8454_v39  ;;  %v8534_v39 = vcombine.high %v1060_v33, %v1064_v34  ;;  %v1040_v1 = vld [vmem:[#allocation8 + $0x928] sm:$0xff] }
 0x1b2   :  { %v1164_v4 = vld [vmem:[#allocation8 + $0xd08] sm:$0xff] }
 0x1b3   :  { %4054 = vmatpush2.bf16.msra.mxu0 %v8325_v43  ;;  %v1180_v43 = vld [vmem:[#allocation8 + $0xd88] sm:$0xff] }
 0x1b4   :  { %4097 = vmatpush2.bf16.msra.mxu1 %v8453_v48  ;;  %4055 = vmatprep.subr.bf16.mxu0 %v8318_v49  ;;  %v1184_v48 = vld [vmem:[#allocation8 + $0xda8] sm:$0xff]  ;;  %v8661_v49 = vcombine.low %v1188_v35, %v1192_v36 }
 0x1b5   :  { %4098 = vmatprep.subr.bf16.mxu1 %v8446_v53  ;;  %v8526_v53 = vcombine.high %v1052_v40, %v1056_v0  ;;  %v8654_v2 = vcombine.high %v1180_v43, %v1184_v48  ;;  %v1028_v51 = vld [vmem:[#allocation8 + $0x8c8] sm:$0xff] }
 0x1b6   :  { %v1032_v19 = vld [vmem:[#allocation8 + $0x8e8] sm:$0xff] }
 0x1b7   :  { %4056 = vmatpush2.bf16.msra.mxu0 %v8317_v60  ;;  %v1176_v60 = vld [vmem:[#allocation8 + $0xd68] sm:$0xff] }
 0x1b8   :  { %4099 = vmatpush2.bf16.msra.mxu1 %v8445_v50  ;;  %4057 = vmatprep.subr.bf16.mxu0 %v8310_v61  ;;  %v8525_v50 = vcombine.low %v1052_v40, %v1056_v0  ;;  %v8653_v61 = vcombine.low %v1180_v43, %v1184_v48  ;;  %v8646_v62 = vcombine.high %v1172_v58, %v1176_v60  ;;  %v1156_v46 = vld [vmem:[#allocation8 + $0xcc8] sm:$0xff] }
 0x1b9   :  { %4100 = vmatprep.subr.bf16.mxu1 %v8438_v6  ;;  %v8518_v6 = vcombine.high %v1044_v54, %v1048_v42  ;;  %v1020_v23 = vld [vmem:[#allocation8 + $0x888] sm:$0xff] }
 0x1ba   :  { %v1024_v24 = vld [vmem:[#allocation8 + $0x8a8] sm:$0xff] }
 0x1bb   :  { %4058 = vmatpush2.bf16.msra.mxu0 %v8309_v7  ;;  %v1168_v7 = vld [vmem:[#allocation8 + $0xd28] sm:$0xff] }
 0x1bc   :  { %4101 = vmatpush2.bf16.msra.mxu1 %v8437_v8  ;;  %4059 = vmatprep.subr.bf16.mxu0 %v8302_v9  ;;  %v8517_v8 = vcombine.low %v1044_v54, %v1048_v42  ;;  %v8645_v9 = vcombine.low %v1172_v58, %v1176_v60  ;;  %v8638_v45 = vcombine.high %v1164_v4, %v1168_v7  ;;  %v1148_v25 = vld [vmem:[#allocation8 + $0xc88] sm:$0xff] }
 0x1bd   :  { %4102 = vmatprep.subr.bf16.mxu1 %v8430_v11  ;;  %v8510_v11 = vcombine.high %v1036_v63, %v1040_v1  ;;  %v1012_v34 = vld [vmem:[#allocation8 + $0x848] sm:$0xff] }
 0x1be   :  { %v1016_v35 = vld [vmem:[#allocation8 + $0x868] sm:$0xff] }
 0x1bf   :  { %4060 = vmatpush2.bf16.msra.mxu0 %v8301_v47  ;;  %v1160_v47 = vld [vmem:[#allocation8 + $0xce8] sm:$0xff] }
 0x1c0   :  { %4103 = vmatpush2.bf16.msra.mxu1 %v8429_v52  ;;  %4061 = vmatprep.subr.bf16.mxu0 %v8294_v20  ;;  %v8509_v52 = vcombine.low %v1036_v63, %v1040_v1  ;;  %v8637_v20 = vcombine.low %v1164_v4, %v1168_v7  ;;  %v8630_v22 = vcombine.high %v1156_v46, %v1160_v47  ;;  %v1140_v36 = vld [vmem:[#allocation8 + $0xc48] sm:$0xff] }
 0x1c1   :  { %4104 = vmatprep.subr.bf16.mxu1 %v8422_v21  ;;  %v8502_v21 = vcombine.high %v1028_v51, %v1032_v19  ;;  %v1004_v0 = vld [vmem:[#allocation8 + $0x808] sm:$0xff] }
 0x1c2   :  { %v1132_v43 = vld [vmem:[#allocation8 + $0xc08] sm:$0xff] }
 0x1c3   :  { %4062 = vmatpush2.bf16.msra.mxu0 %v8293_v28  ;;  %v1152_v28 = vld [vmem:[#allocation8 + $0xca8] sm:$0xff] }
 0x1c4   :  { %4105 = vmatpush2.bf16.msra.mxu1 %v8421_v29  ;;  %4063 = vmatprep.subr.bf16.mxu0 %v8286_v31  ;;  %v8501_v29 = vcombine.low %v1028_v51, %v1032_v19  ;;  %v8629_v31 = vcombine.low %v1156_v46, %v1160_v47  ;;  %v8622_v33 = vcombine.high %v1148_v25, %v1152_v28  ;;  %v1136_v48 = vld [vmem:[#allocation8 + $0xc28] sm:$0xff] }
 0x1c5   :  { %4106 = vmatprep.subr.bf16.mxu1 %v8414_v32  ;;  %v8494_v32 = vcombine.high %v1020_v23, %v1024_v24  ;;  %v8606_v42 = vcombine.high %v1132_v43, %v1136_v48  ;;  %v1128_v58 = vld [vmem:[#allocation8 + $0xbe8] sm:$0xff] }
 0x1c6   :  { %v1252_v60 = vld [vmem:[#allocation8 + $0xfc8] sm:$0xff] }
 0x1c7   :  { %4064 = vmatpush2.bf16.msra.mxu0 %v8285_v37  ;;  %v1144_v37 = vld [vmem:[#allocation8 + $0xc68] sm:$0xff] }
 0x1c8   :  { %4107 = vmatpush2.bf16.msra.mxu1 %v8413_v38  ;;  %4119 = vmatprep.subr.bf16.mxu0 %v8534_v39  ;;  %v8493_v38 = vcombine.low %v1020_v23, %v1024_v24  ;;  %v8621_v39 = vcombine.low %v1148_v25, %v1152_v28  ;;  %v8614_v40 = vcombine.high %v1140_v36, %v1144_v37  ;;  %v1116_v1 = vld [vmem:[#allocation8 + $0xb88] sm:$0xff] }
 0x1c9   :  { %4162 = vmatprep.subr.bf16.mxu1 %v8662_v15  ;;  %v8486_v15 = vcombine.high %v1012_v34, %v1016_v35  ;;  %v1120_v4 = vld [vmem:[#allocation8 + $0xba8] sm:$0xff] }
 0x1ca   :  { %4066 = vmatmul.mubr.bf16.vlgmr.msra.gmra.mxu0 %v10254_v56  ;;  %v1244_v7 = vld [vmem:[#allocation8 + $0xf88] sm:$0xff] }
 0x1cb   :  { %4109 = vmatmul.mubr.bf16.vlgmr.msra.gmra.mxu1 %v10258_v59  ;;  %4120 = vmatpush1.bf16.msra.mxu0 %v8533_v41  ;;  %v1008_v41 = vld [vmem:[#allocation8 + $0x828] sm:$0xff] }
 0x1cc   :  { %4151 = vmatprep.mubr.bf16.mxu0 %v10287_v26  ;;  %4163 = vmatpush1.bf16.msra.mxu1 %v8661_v49  ;;  %v8485_v49 = vcombine.low %v1012_v34, %v1016_v35  ;;  %v8478_v54 = vcombine.high %v1004_v0, %v1008_v41  ;;  %v1108_v19 = vld [vmem:[#allocation8 + $0xb48] sm:$0xff] }
 0x1cd   :  { %4194 = vmatprep.mubr.bf16.mxu1 %v10289_v30  ;;  %4121 = vmatprep.subr.bf16.mxu0 %v8526_v53  ;;  %v8613_v53 = vcombine.low %v1140_v36, %v1144_v37  ;;  %v1112_v46 = vld [vmem:[#allocation8 + $0xb68] sm:$0xff] }
 0x1ce   :  { %4164 = vmatprep.subr.bf16.mxu1 %v8654_v2  ;;  %v1124_v2 = vld [vmem:[#allocation8 + $0xbc8] sm:$0xff] }
 0x1cf   :  { %4122 = vmatpush1.bf16.msra.mxu0 %v8525_v50  ;;  %v1256_v50 = vld [vmem:[#allocation8 + $0xfe8] sm:$0xff] }
 0x1d0   :  { %4165 = vmatpush1.bf16.msra.mxu1 %v8653_v61  ;;  %4123 = vmatprep.subr.bf16.mxu0 %v8518_v6  ;;  %v8477_v61 = vcombine.low %v1004_v0, %v1008_v41  ;;  %v8605_v6 = vcombine.low %v1132_v43, %v1136_v48  ;;  %v8726_v63 = vcombine.high %v1252_v60, %v1256_v50  ;;  %v1236_v47 = vld [vmem:[#allocation8 + $0xf48] sm:$0xff] }
 0x1d1   :  { %4166 = vmatprep.subr.bf16.mxu1 %v8646_v62  ;;  %v8598_v62 = vcombine.high %v1124_v2, %v1128_v58  ;;  %v1100_v24 = vld [vmem:[#allocation8 + $0xb08] sm:$0xff] }
 0x1d2   :  { %v1104_v25 = vld [vmem:[#allocation8 + $0xb28] sm:$0xff] }
 0x1d3   :  { %4124 = vmatpush1.bf16.msra.mxu0 %v8517_v8  ;;  %v1248_v8 = vld [vmem:[#allocation8 + $0xfa8] sm:$0xff] }
 0x1d4   :  { %4167 = vmatpush1.bf16.msra.mxu1 %v8645_v9  ;;  %4125 = vmatprep.subr.bf16.mxu0 %v8510_v11  ;;  %v8597_v9 = vcombine.low %v1124_v2, %v1128_v58  ;;  %v8725_v11 = vcombine.low %v1252_v60, %v1256_v50  ;;  %v8718_v51 = vcombine.high %v1244_v7, %v1248_v8  ;;  %v1228_v28 = vld [vmem:[#allocation8 + $0xf08] sm:$0xff] }
 0x1d5   :  { %4168 = vmatprep.subr.bf16.mxu1 %v8638_v45  ;;  %v8590_v45 = vcombine.high %v1116_v1, %v1120_v4  ;;  %v1092_v35 = vld [vmem:[#allocation8 + $0xac8] sm:$0xff] }
 0x1d6   :  { %v1096_v36 = vld [vmem:[#allocation8 + $0xae8] sm:$0xff] }
 0x1d7   :  { %4126 = vmatpush1.bf16.msra.mxu0 %v8509_v52  ;;  %v1240_v52 = vld [vmem:[#allocation8 + $0xf68] sm:$0xff] }
 0x1d8   :  { %4169 = vmatpush1.bf16.msra.mxu1 %v8637_v20  ;;  %4127 = vmatprep.subr.bf16.mxu0 %v8502_v21  ;;  %v8589_v20 = vcombine.low %v1116_v1, %v1120_v4  ;;  %v8717_v21 = vcombine.low %v1244_v7, %v1248_v8  ;;  %v8710_v23 = vcombine.high %v1236_v47, %v1240_v52  ;;  %v1220_v37 = vld [vmem:[#allocation8 + $0xec8] sm:$0xff] }
 0x1d9   :  { %4170 = vmatprep.subr.bf16.mxu1 %v8630_v22  ;;  %v8582_v22 = vcombine.high %v1108_v19, %v1112_v46  ;;  %v1084_v41 = vld [vmem:[#allocation8 + $0xa88] sm:$0xff] }
 0x1da   :  { %v1088_v43 = vld [vmem:[#allocation8 + $0xaa8] sm:$0xff] }
 0x1db   :  { %4128 = vmatpush1.bf16.msra.mxu0 %v8501_v29  ;;  %v1232_v29 = vld [vmem:[#allocation8 + $0xf28] sm:$0xff] }
 0x1dc   :  { %4171 = vmatpush1.bf16.msra.mxu1 %v8629_v31  ;;  %4129 = vmatprep.subr.bf16.mxu0 %v8494_v32  ;;  %v8581_v31 = vcombine.low %v1108_v19, %v1112_v46  ;;  %v8709_v32 = vcombine.low %v1236_v47, %v1240_v52  ;;  %v8702_v34 = vcombine.high %v1228_v28, %v1232_v29  ;;  %v1212_v48 = vld [vmem:[#allocation8 + $0xe88] sm:$0xff]  ;;  %v805_v46 = vld [vmem:[#allocation8 + $0x1d0] sm:$0xff] }
 0x1dd   :  { %4172 = vmatprep.subr.bf16.mxu1 %v8622_v33  ;;  %v8574_v33 = vcombine.high %v1100_v24, %v1104_v25  ;;  %v1076_v58 = vld [vmem:[#allocation8 + $0xa48] sm:$0xff]  ;;  %v809_v47 = vld [vmem:[#allocation8 + $0x1f0] sm:$0xff] }
 0x1de   :  { %v1080_v60 = vld [vmem:[#allocation8 + $0xa68] sm:$0xff]  ;;  %v933_v52 = vld [vmem:[#allocation8 + $0x5d0] sm:$0xff] }
 0x1df   :  { %4130 = vmatpush1.bf16.msra.mxu0 %v8493_v38  ;;  %v1224_v38 = vld [vmem:[#allocation8 + $0xee8] sm:$0xff] }
 0x1e0   :  { %4173 = vmatpush1.bf16.msra.mxu1 %v8621_v39  ;;  %4131 = vmatprep.subr.bf16.mxu0 %v8486_v15  ;;  %v8573_v39 = vcombine.low %v1100_v24, %v1104_v25  ;;  %v8701_v15 = vcombine.low %v1228_v28, %v1232_v29  ;;  %v8694_v0 = vcombine.high %v1220_v37, %v1224_v38  ;;  %v1204_v50 = vld [vmem:[#allocation8 + $0xe48] sm:$0xff]  ;;  %v10319_v24 = vld [vmem:[#allocation10] sm:$0xff]  ;;  %v797_v28 = vld [vmem:[#allocation8 + $0x190] sm:$0xff] }
 0x1e1   :  { %4174 = vmatprep.subr.bf16.mxu1 %v8614_v40  ;;  %v8566_v40 = vcombine.high %v1092_v35, %v1096_v36  ;;  %v1068_v4 = vld [vmem:[#allocation8 + $0xa08] sm:$0xff]  ;;  %v801_v29 = vld [vmem:[#allocation8 + $0x1b0] sm:$0xff] }
 0x1e2   :  { %v1072_v7 = vld [vmem:[#allocation8 + $0xa28] sm:$0xff] }
 0x1e3   :  { %4132 = vmatpush1.bf16.msra.mxu0 %v8485_v49  ;;  %v1216_v49 = vld [vmem:[#allocation8 + $0xea8] sm:$0xff] }
 0x1e4   :  { %4175 = vmatpush1.bf16.msra.mxu1 %v8613_v53  ;;  %4133 = vmatprep.subr.bf16.mxu0 %v8478_v54  ;;  %v8565_v53 = vcombine.low %v1092_v35, %v1096_v36  ;;  %v8693_v54 = vcombine.low %v1220_v37, %v1224_v38  ;;  %v8686_v2 = vcombine.high %v1212_v48, %v1216_v49  ;;  %v1196_v8 = vld [vmem:[#allocation8 + $0xe08] sm:$0xff]  ;;  %v789_v37 = vld [vmem:[#allocation8 + $0x150] sm:$0xff] }
 0x1e5   :  { %4176 = vmatprep.subr.bf16.mxu1 %v8606_v42  ;;  %v8558_v42 = vcombine.high %v1084_v41, %v1088_v43  ;;  %v8272_v36 = vcombine.high %v797_v28, %v801_v29  ;;  %v793_v38 = vld [vmem:[#allocation8 + $0x170] sm:$0xff] }
 0x1e7   :  { %4134 = vmatpush1.bf16.msra.mxu0 %v8477_v61  ;;  %v1208_v61 = vld [vmem:[#allocation8 + $0xe68] sm:$0xff] }
 0x1e8   :  { %4177 = vmatpush1.bf16.msra.mxu1 %v8605_v6  ;;  %4135 = vmatprep.subr.bf16.mxu0 %v8598_v62  ;;  %v8557_v6 = vcombine.low %v1084_v41, %v1088_v43  ;;  %v8685_v62 = vcombine.low %v1212_v48, %v1216_v49  ;;  %v8678_v1 = vcombine.high %v1204_v50, %v1208_v61 }
 0x1e9   :  { %4178 = vmatprep.subr.bf16.mxu1 %v8726_v63  ;;  %v8550_v63 = vcombine.high %v1076_v58, %v1080_v60  ;;  %v8271_v48 = vcombine.low %v797_v28, %v801_v29  ;;  %v897_v28 = vld [vmem:[#allocation8 + $0x4b0] sm:$0xff] }
 0x1eb   :  { %4136 = vmatpush2.bf16.msra.mxu0 %v8597_v9  ;;  %v1200_v9 = vld [vmem:[#allocation8 + $0xe28] sm:$0xff] }
 0x1ec   :  { %4179 = vmatpush2.bf16.msra.mxu1 %v8725_v11  ;;  %4137 = vmatprep.subr.bf16.mxu0 %v8590_v45  ;;  %v8549_v11 = vcombine.low %v1076_v58, %v1080_v60  ;;  %v8677_v45 = vcombine.low %v1204_v50, %v1208_v61  ;;  %v8670_v19 = vcombine.high %v1196_v8, %v1200_v9  ;;  %v781_v60 = vld [vmem:[#allocation8 + $0x110] sm:$0xff] }
 0x1ed   :  { %4180 = vmatprep.subr.bf16.mxu1 %v8718_v51  ;;  %v8542_v51 = vcombine.high %v1068_v4, %v1072_v7  ;;  %v785_v50 = vld [vmem:[#allocation8 + $0x130] sm:$0xff] }
 0x1ef   :  { %4138 = vmatpush2.bf16.msra.mxu0 %v8589_v20  ;;  %v937_v20 = vld [vmem:[#allocation8 + $0x5f0] sm:$0xff] }
 0x1f0   :  { %4181 = vmatpush2.bf16.msra.mxu1 %v8717_v21  ;;  %4139 = vmatprep.subr.bf16.mxu0 %v8582_v22  ;;  %v8541_v21 = vcombine.low %v1068_v4, %v1072_v7  ;;  %v8669_v22 = vcombine.low %v1196_v8, %v1200_v9  ;;  %v8408_v25 = vcombine.high %v933_v52, %v937_v20 }
 0x1f1   :  { %4182 = vmatprep.subr.bf16.mxu1 %v8710_v23  ;;  %v8280_v23 = vcombine.high %v805_v46, %v809_v47  ;;  %v8407_v35 = vcombine.low %v933_v52, %v937_v20  ;;  %v8256_v8 = vcombine.high %v781_v60, %v785_v50 }
 0x1f3   :  { %4140 = vmatpush2.bf16.msra.mxu0 %v8581_v31  ;;  %v8279_v31 = vcombine.low %v805_v46, %v809_v47  ;;  %v905_v46 = vld [vmem:[#allocation8 + $0x4f0] sm:$0xff]  ;;  %v8255_v47 = vcombine.low %v781_v60, %v785_v50 }
 0x1f4   :  { %4183 = vmatpush2.bf16.msra.mxu1 %v8709_v32  ;;  %4141 = vmatprep.subr.bf16.mxu0 %v8574_v33  ;;  %v1264_v32 = vrot.slane %v10319_v24, %v10231_v14  ;;  %v925_v33 = vld [vmem:[#allocation8 + $0x590] sm:$0xff] }
 0x1f5   :  { %4184 = vmatprep.subr.bf16.mxu1 %v8702_v34  ;;  %v929_v34 = vld [vmem:[#allocation8 + $0x5b0] sm:$0xff] }
 0x1f6   :  { %v869_v50 = vld [vmem:[#allocation8 + $0x3d0] sm:$0xff] }
 0x1f7   :  { %4142 = vmatpush2.bf16.msra.mxu0 %v8573_v39 }
 0x1f8   :  { %4185 = vmatpush2.bf16.msra.mxu1 %v8701_v15  ;;  %4143 = vmatprep.subr.bf16.mxu0 %v8566_v40  ;;  %v8400_v15 = vcombine.high %v925_v33, %v929_v34  ;;  %v917_v40 = vld [vmem:[#allocation8 + $0x550] sm:$0xff] }
 0x1f9   :  { %4186 = vmatprep.subr.bf16.mxu1 %v8694_v0  ;;  %v921_v0 = vld [vmem:[#allocation8 + $0x570] sm:$0xff] }
 0x1fa   :  { %v8392_v58 = vcombine.high %v917_v40, %v921_v0  ;;  %v8391_v7 = vcombine.low %v917_v40, %v921_v0  ;;  %v749_v0 = vld [vmem:[#allocation8 + $0x10] sm:$0xff] }
 0x1fb   :  { %4144 = vmatpush2.bf16.msra.mxu0 %v8565_v53  ;;  %v8399_v53 = vcombine.low %v925_v33, %v929_v34  ;;  %v757_v34 = vld [vmem:[#allocation8 + $0x50] sm:$0xff] }
 0x1fc   :  { %4187 = vmatpush2.bf16.msra.mxu1 %v8693_v54  ;;  %4145 = vmatprep.subr.bf16.mxu0 %v8558_v42  ;;  %v8264_v54 = vcombine.high %v789_v37, %v793_v38 }
 0x1fd   :  { %4188 = vmatprep.subr.bf16.mxu1 %v8686_v2 }
 0x1ff   :  { %4146 = vmatpush2.bf16.msra.mxu0 %v8557_v6  ;;  %v909_v6 = vld [vmem:[#allocation8 + $0x510] sm:$0xff] }
 0x200   :  { %4189 = vmatpush2.bf16.msra.mxu1 %v8685_v62  ;;  %4147 = vmatprep.subr.bf16.mxu0 %v8550_v63  ;;  %v913_v62 = vld [vmem:[#allocation8 + $0x530] sm:$0xff] }
 0x201   :  { %4190 = vmatprep.subr.bf16.mxu1 %v8678_v1  ;;  %v8263_v1 = vcombine.low %v789_v37, %v793_v38  ;;  %v8383_v52 = vcombine.low %v909_v6, %v913_v62  ;;  %v889_v37 = vld [vmem:[#allocation8 + $0x470] sm:$0xff] }
 0x203   :  { %4148 = vmatpush2.bf16.msra.mxu0 %v8549_v11  ;;  %v8384_v11 = vcombine.high %v909_v6, %v913_v62  ;;  %v997_v6 = vld [vmem:[#allocation8 + $0x7d0] sm:$0xff] }
 0x204   :  { %4191 = vmatpush2.bf16.msra.mxu1 %v8677_v45  ;;  %4149 = vmatprep.subr.bf16.mxu0 %v8542_v51  ;;  %v773_v45 = vld [vmem:[#allocation8 + $0xd0] sm:$0xff] }
 0x205   :  { %4192 = vmatprep.subr.bf16.mxu1 %v8670_v19  ;;  %v777_v51 = vld [vmem:[#allocation8 + $0xf0] sm:$0xff] }
 0x206   :  { %v901_v19 = vld [vmem:[#allocation8 + $0x4d0] sm:$0xff]  ;;  %v8248_v20 = vcombine.high %v773_v45, %v777_v51  ;;  %v8247_v29 = vcombine.low %v773_v45, %v777_v51 }
 0x207   :  { %4150 = vmatpush2.bf16.msra.mxu0 %v8541_v21  ;;  %v8376_v21 = vcombine.high %v901_v19, %v905_v46  ;;  %v1001_v62 = vld [vmem:[#allocation8 + $0x7f0] sm:$0xff] }
 0x208   :  { %4193 = vmatpush2.bf16.msra.mxu1 %v8669_v22  ;;  %4205 = vmatprep.subr.bf16.mxu0 %v8280_v23  ;;  %v765_v22 = vld [vmem:[#allocation8 + $0x90] sm:$0xff] }
 0x209   :  { %4248 = vmatprep.subr.bf16.mxu1 %v8408_v25  ;;  %v769_v23 = vld [vmem:[#allocation8 + $0xb0] sm:$0xff] }
 0x20a   :  { %4152 = vmatmul.mubr.bf16.vlgmr.msra.gmra.mxu0 %v10307_v3  ;;  %v3895_v39 = vpop.f32.mrf.mxu0  ;;  %v3938_v43 = vpop.f32.mrf.mxu1  ;;  %v893_v25 = vld [vmem:[#allocation8 + $0x490] sm:$0xff]  ;;  %v8239_v38 = vcombine.low %v765_v22, %v769_v23 }
 0x20b   :  { %4195 = vmatmul.mubr.bf16.vlgmr.msra.gmra.mxu1 %v10309_v5  ;;  %v3896_v41 = vadd.f32 %v3895_v39, %v1264_v32  ;;  %4206 = vmatpush1.bf16.msra.mxu0 %v8279_v31  ;;  %v8375_v31 = vcombine.low %v901_v19, %v905_v46  ;;  %v8368_v33 = vcombine.high %v893_v25, %v897_v28  ;;  %v989_v45 = vld [vmem:[#allocation8 + $0x790] sm:$0xff] }
 0x20c   :  { %4237 = vmatprep.mubr.bf16.mxu0 %v10252_v55  ;;  %4249 = vmatpush1.bf16.msra.mxu1 %v8407_v35  ;;  %v10326_v49 = vpop.f32.mrf.mxu0  ;;  %v10331_v2 = vpop.f32.mrf.mxu1  ;;  %v761_v35 = vld [vmem:[#allocation8 + $0x70] sm:$0xff]  ;;  %v8367_v39 = vcombine.low %v893_v25, %v897_v28  ;;  %v8471_v46 = vcombine.low %v997_v6, %v1001_v62 }
 0x20d   :  { %v10328_v42 = vadd.f32 %v3938_v43, %v3896_v41  ;;  %4280 = vmatprep.mubr.bf16.mxu1 %v10256_v57  ;;  %4207 = vmatprep.subr.bf16.mxu0 %v8272_v36  ;;  %v885_v36 = vld [vmem:[#allocation8 + $0x450] sm:$0xff] }
 0x20e   :  { %4250 = vmatprep.subr.bf16.mxu1 %v8400_v15  ;;  %v3899_v61 = vpop.f32.mrf.mxu0  ;;  %v3942_v4 = vpop.f32.mrf.mxu1  ;;  %v8232_v15 = vcombine.high %v757_v34, %v761_v35  ;;  %v8360_v40 = vcombine.high %v885_v36, %v889_v37  ;;  %v753_v41 = vld [vmem:[#allocation8 + $0x30] sm:$0xff] }
 0x20f   :  { %v3900_v63 = vadd.f32 %v3899_v61, %v1264_v32  ;;  %4208 = vmatpush1.bf16.msra.mxu0 %v8271_v48  ;;  %v8240_v32 = vcombine.high %v765_v22, %v769_v23  ;;  %v877_v43 = vld [vmem:[#allocation8 + $0x410] sm:$0xff] }
 0x210   :  { %4251 = vmatpush1.bf16.msra.mxu1 %v8399_v53  ;;  %4209 = vmatprep.subr.bf16.mxu0 %v8264_v54  ;;  %v881_v48 = vld [vmem:[#allocation8 + $0x430] sm:$0xff]  ;;  %v8231_v53 = vcombine.low %v757_v34, %v761_v35  ;;  %v8359_v54 = vcombine.low %v885_v36, %v889_v37 }
 0x211   :  { %v10333_v9 = vadd.f32 %v3942_v4, %v3900_v63  ;;  %4252 = vmatprep.subr.bf16.mxu1 %v8392_v58  ;;  %v8224_v58 = vcombine.high %v749_v0, %v753_v41  ;;  %v8352_v60 = vcombine.high %v877_v43, %v881_v48  ;;  %v873_v61 = vld [vmem:[#allocation8 + $0x3f0] sm:$0xff]  ;;  %v8223_v63 = vcombine.low %v749_v0, %v753_v41 }
 0x212   :  { %v8344_v4 = vcombine.high %v869_v50, %v873_v61  ;;  %v993_v51 = vld [vmem:[#allocation8 + $0x7b0] sm:$0xff]  ;;  %v8343_v19 = vcombine.low %v869_v50, %v873_v61 }
 0x213   :  { %4210 = vmatpush1.bf16.msra.mxu0 %v8263_v1  ;;  %v8351_v1 = vcombine.low %v877_v43, %v881_v48  ;;  %v981_v22 = vld [vmem:[#allocation8 + $0x750] sm:$0xff]  ;;  %v8463_v28 = vcombine.low %v989_v45, %v993_v51 }
 0x214   :  { %4253 = vmatpush1.bf16.msra.mxu1 %v8391_v7  ;;  %4211 = vmatprep.subr.bf16.mxu0 %v8256_v8  ;;  %v8472_v7 = vcombine.high %v997_v6, %v1001_v62  ;;  %v861_v8 = vld [vmem:[#allocation8 + $0x390] sm:$0xff] }
 0x215   :  { %4254 = vmatprep.subr.bf16.mxu1 %v8384_v11  ;;  %v865_v11 = vld [vmem:[#allocation8 + $0x3b0] sm:$0xff] }
 0x216   :  { %v985_v23 = vld [vmem:[#allocation8 + $0x770] sm:$0xff]  ;;  %v8335_v25 = vcombine.low %v861_v8, %v865_v11 }
 0x217   :  { %4212 = vmatpush1.bf16.msra.mxu0 %v8255_v47  ;;  %v8336_v47 = vcombine.high %v861_v8, %v865_v11  ;;  %v973_v34 = vld [vmem:[#allocation8 + $0x710] sm:$0xff]  ;;  %v8455_v37 = vcombine.low %v981_v22, %v985_v23 }
 0x218   :  { %4255 = vmatpush1.bf16.msra.mxu1 %v8383_v52  ;;  %4213 = vmatprep.subr.bf16.mxu0 %v8248_v20  ;;  %v8464_v52 = vcombine.high %v989_v45, %v993_v51  ;;  %v853_v20 = vld [vmem:[#allocation8 + $0x350] sm:$0xff] }
 0x219   :  { %4256 = vmatprep.subr.bf16.mxu1 %v8376_v21  ;;  %v857_v21 = vld [vmem:[#allocation8 + $0x370] sm:$0xff] }
 0x21a   :  { %v977_v35 = vld [vmem:[#allocation8 + $0x730] sm:$0xff]  ;;  %v8327_v36 = vcombine.low %v853_v20, %v857_v21 }
 0x21b   :  { %4214 = vmatpush1.bf16.msra.mxu0 %v8247_v29  ;;  %v8328_v29 = vcombine.high %v853_v20, %v857_v21  ;;  %v965_v0 = vld [vmem:[#allocation8 + $0x6d0] sm:$0xff]  ;;  %v8447_v48 = vcombine.low %v973_v34, %v977_v35 }
 0x21c   :  { %4257 = vmatpush1.bf16.msra.mxu1 %v8375_v31  ;;  %4215 = vmatprep.subr.bf16.mxu0 %v8240_v32  ;;  %v8456_v31 = vcombine.high %v981_v22, %v985_v23  ;;  %v845_v32 = vld [vmem:[#allocation8 + $0x310] sm:$0xff] }
 0x21d   :  { %4258 = vmatprep.subr.bf16.mxu1 %v8368_v33  ;;  %v849_v33 = vld [vmem:[#allocation8 + $0x330] sm:$0xff] }
 0x21e   :  { %v969_v41 = vld [vmem:[#allocation8 + $0x6f0] sm:$0xff]  ;;  %v8319_v43 = vcombine.low %v845_v32, %v849_v33 }
 0x21f   :  { %4216 = vmatpush1.bf16.msra.mxu0 %v8239_v38  ;;  %v8320_v38 = vcombine.high %v845_v32, %v849_v33  ;;  %v957_v50 = vld [vmem:[#allocation8 + $0x690] sm:$0xff]  ;;  %v8439_v62 = vcombine.low %v965_v0, %v969_v41 }
 0x220   :  { %4259 = vmatpush1.bf16.msra.mxu1 %v8367_v39  ;;  %4217 = vmatprep.subr.bf16.mxu0 %v8232_v15  ;;  %v8448_v39 = vcombine.high %v973_v34, %v977_v35  ;;  %v837_v15 = vld [vmem:[#allocation8 + $0x2d0] sm:$0xff] }
 0x221   :  { %4260 = vmatprep.subr.bf16.mxu1 %v8360_v40  ;;  %v841_v40 = vld [vmem:[#allocation8 + $0x2f0] sm:$0xff] }
 0x222   :  { %v961_v61 = vld [vmem:[#allocation8 + $0x6b0] sm:$0xff]  ;;  %v8311_v6 = vcombine.low %v837_v15, %v841_v40 }
 0x223   :  { %4218 = vmatpush1.bf16.msra.mxu0 %v8231_v53  ;;  %v8312_v53 = vcombine.high %v837_v15, %v841_v40  ;;  %v949_v8 = vld [vmem:[#allocation8 + $0x650] sm:$0xff]  ;;  %v8431_v51 = vcombine.low %v957_v50, %v961_v61 }
 0x224   :  { %4261 = vmatpush1.bf16.msra.mxu1 %v8359_v54  ;;  %4219 = vmatprep.subr.bf16.mxu0 %v8224_v58  ;;  %v8440_v54 = vcombine.high %v965_v0, %v969_v41  ;;  %v829_v58 = vld [vmem:[#allocation8 + $0x290] sm:$0xff]  ;;  %v10335_v41 = vpop.f32.mrf.mxu0 }
 0x225   :  { %4262 = vmatprep.subr.bf16.mxu1 %v8352_v60  ;;  %v833_v60 = vld [vmem:[#allocation8 + $0x2b0] sm:$0xff] }
 0x226   :  { %v953_v11 = vld [vmem:[#allocation8 + $0x670] sm:$0xff]  ;;  %v8303_v45 = vcombine.low %v829_v58, %v833_v60 }
 0x227   :  { %4220 = vmatpush1.bf16.msra.mxu0 %v8223_v63  ;;  %v8304_v63 = vcombine.high %v829_v58, %v833_v60  ;;  %v941_v20 = vld [vmem:[#allocation8 + $0x610] sm:$0xff]  ;;  %v8423_v23 = vcombine.low %v949_v8, %v953_v11 }
 0x228   :  { %4263 = vmatpush1.bf16.msra.mxu1 %v8351_v1  ;;  %4221 = vmatprep.subr.bf16.mxu0 %v8344_v4  ;;  %v8432_v1 = vcombine.high %v957_v50, %v961_v61  ;;  %v821_v4 = vld [vmem:[#allocation8 + $0x250] sm:$0xff] }
 0x229   :  { %4264 = vmatprep.subr.bf16.mxu1 %v8472_v7  ;;  %v825_v7 = vld [vmem:[#allocation8 + $0x270] sm:$0xff] }
 0x22a   :  { %v945_v21 = vld [vmem:[#allocation8 + $0x630] sm:$0xff]  ;;  %v8295_v22 = vcombine.low %v821_v4, %v825_v7 }
 0x22b   :  { %4222 = vmatpush2.bf16.msra.mxu0 %v8343_v19  ;;  %v8296_v19 = vcombine.high %v821_v4, %v825_v7  ;;  %v1189_v32 = vld [vmem:[#allocation8 + $0xdd0] sm:$0xff]  ;;  %v8415_v35 = vcombine.low %v941_v20, %v945_v21 }
 0x22c   :  { %4265 = vmatpush2.bf16.msra.mxu1 %v8471_v46  ;;  %4223 = vmatprep.subr.bf16.mxu0 %v8336_v47  ;;  %v8424_v46 = vcombine.high %v949_v8, %v953_v11  ;;  %v813_v47 = vld [vmem:[#allocation8 + $0x210] sm:$0xff] }
 0x22d   :  { %4266 = vmatprep.subr.bf16.mxu1 %v8464_v52  ;;  %v817_v52 = vld [vmem:[#allocation8 + $0x230] sm:$0xff] }
 0x22e   :  { %v1193_v33 = vld [vmem:[#allocation8 + $0xdf0] sm:$0xff]  ;;  %v8287_v34 = vcombine.low %v813_v47, %v817_v52 }
 0x22f   :  { %4224 = vmatpush2.bf16.msra.mxu0 %v8335_v25  ;;  %v8288_v25 = vcombine.high %v813_v47, %v817_v52  ;;  %v1181_v40 = vld [vmem:[#allocation8 + $0xd90] sm:$0xff] }
 0x230   :  { %4267 = vmatpush2.bf16.msra.mxu1 %v8463_v28  ;;  %4225 = vmatprep.subr.bf16.mxu0 %v8328_v29  ;;  %v8416_v28 = vcombine.high %v941_v20, %v945_v21  ;;  %v1061_v29 = vld [vmem:[#allocation8 + $0x9d0] sm:$0xff] }
 0x231   :  { %4268 = vmatprep.subr.bf16.mxu1 %v8456_v31  ;;  %v1065_v31 = vld [vmem:[#allocation8 + $0x9f0] sm:$0xff] }
 0x232   :  { %v8535_v15 = vcombine.low %v1061_v29, %v1065_v31  ;;  %v1185_v0 = vld [vmem:[#allocation8 + $0xdb0] sm:$0xff] }
 0x233   :  { %4226 = vmatpush2.bf16.msra.mxu0 %v8327_v36  ;;  %v8536_v36 = vcombine.high %v1061_v29, %v1065_v31  ;;  %v1049_v58 = vld [vmem:[#allocation8 + $0x970] sm:$0xff]  ;;  %v8656_v50 = vcombine.high %v1181_v40, %v1185_v0  ;;  %v8655_v7 = vcombine.low %v1181_v40, %v1185_v0 }
 0x234   :  { %4269 = vmatpush2.bf16.msra.mxu1 %v8455_v37  ;;  %4227 = vmatprep.subr.bf16.mxu0 %v8320_v38  ;;  %v8664_v37 = vcombine.high %v1189_v32, %v1193_v33  ;;  %v1053_v38 = vld [vmem:[#allocation8 + $0x990] sm:$0xff] }
 0x235   :  { %4270 = vmatprep.subr.bf16.mxu1 %v8448_v39  ;;  %v1057_v39 = vld [vmem:[#allocation8 + $0x9b0] sm:$0xff] }
 0x236   :  { %v1173_v61 = vld [vmem:[#allocation8 + $0xd50] sm:$0xff] }
 0x237   :  { %4228 = vmatpush2.bf16.msra.mxu0 %v8319_v43  ;;  %v8663_v43 = vcombine.low %v1189_v32, %v1193_v33  ;;  %v1165_v47 = vld [vmem:[#allocation8 + $0xd10] sm:$0xff] }
 0x238   :  { %4271 = vmatpush2.bf16.msra.mxu1 %v8447_v48  ;;  %4229 = vmatprep.subr.bf16.mxu0 %v8312_v53  ;;  %v10337_v48 = vpop.f32.mrf.mxu1  ;;  %v8528_v53 = vcombine.high %v1053_v38, %v1057_v39  ;;  %v1169_v52 = vld [vmem:[#allocation8 + $0xd30] sm:$0xff] }
 0x239   :  { %4272 = vmatprep.subr.bf16.mxu1 %v8440_v54  ;;  %v1045_v54 = vld [vmem:[#allocation8 + $0x950] sm:$0xff]  ;;  %v8640_v29 = vcombine.high %v1165_v47, %v1169_v52 }
 0x23a   :  { %v8520_v8 = vcombine.high %v1045_v54, %v1049_v58  ;;  %v8519_v21 = vcombine.low %v1045_v54, %v1049_v58  ;;  %v1029_v31 = vld [vmem:[#allocation8 + $0x8d0] sm:$0xff] }
 0x23b   :  { %4230 = vmatpush2.bf16.msra.mxu0 %v8311_v6  ;;  %v1177_v6 = vld [vmem:[#allocation8 + $0xd70] sm:$0xff] }
 0x23c   :  { %4273 = vmatpush2.bf16.msra.mxu1 %v8439_v62  ;;  %4231 = vmatprep.subr.bf16.mxu0 %v8304_v63  ;;  %v1033_v32 = vld [vmem:[#allocation8 + $0x8f0] sm:$0xff] }
 0x23d   :  { %4274 = vmatprep.subr.bf16.mxu1 %v8432_v1  ;;  %v8527_v1 = vcombine.low %v1053_v38, %v1057_v39  ;;  %v1157_v33 = vld [vmem:[#allocation8 + $0xcd0] sm:$0xff]  ;;  %v8504_v38 = vcombine.high %v1029_v31, %v1033_v32  ;;  %v8503_v54 = vcombine.low %v1029_v31, %v1033_v32 }
 0x23e   :  { %v1021_v40 = vld [vmem:[#allocation8 + $0x890] sm:$0xff] }
 0x23f   :  { %4232 = vmatpush2.bf16.msra.mxu0 %v8303_v45  ;;  %v1025_v0 = vld [vmem:[#allocation8 + $0x8b0] sm:$0xff] }
 0x240   :  { %4275 = vmatpush2.bf16.msra.mxu1 %v8431_v51  ;;  %4233 = vmatprep.subr.bf16.mxu0 %v8296_v19  ;;  %v8648_v51 = vcombine.high %v1173_v61, %v1177_v6  ;;  %v1041_v19 = vld [vmem:[#allocation8 + $0x930] sm:$0xff] }
 0x241   :  { %4276 = vmatprep.subr.bf16.mxu1 %v8424_v46 }
 0x243   :  { %4234 = vmatpush2.bf16.msra.mxu0 %v8295_v22 }
 0x244   :  { %4277 = vmatpush2.bf16.msra.mxu1 %v8423_v23  ;;  %4235 = vmatprep.subr.bf16.mxu0 %v8288_v25  ;;  %v8647_v23 = vcombine.low %v1173_v61, %v1177_v6  ;;  %v1013_v61 = vld [vmem:[#allocation8 + $0x850] sm:$0xff] }
 0x245   :  { %4278 = vmatprep.subr.bf16.mxu1 %v8416_v28  ;;  %v1017_v6 = vld [vmem:[#allocation8 + $0x870] sm:$0xff] }
 0x247   :  { %4236 = vmatpush2.bf16.msra.mxu0 %v8287_v34  ;;  %v1161_v34 = vld [vmem:[#allocation8 + $0xcf0] sm:$0xff] }
 0x248   :  { %4279 = vmatpush2.bf16.msra.mxu1 %v8415_v35  ;;  %4291 = vmatprep.subr.bf16.mxu0 %v8536_v36  ;;  %v8631_v58 = vcombine.low %v1157_v33, %v1161_v34 }
 0x249   :  { %4334 = vmatprep.subr.bf16.mxu1 %v8664_v37 }
 0x24a   :  { %v3981_v60 = vpop.f32.mrf.mxu0  ;;  %4238 = vmatmul.mubr.bf16.vlgmr.msra.gmra.mxu0 %v10254_v56  ;;  %v4024_v63 = vpop.f32.mrf.mxu1 }
 0x24b   :  { %v3982_v62 = vadd.f32 %v3981_v60, %v10328_v42  ;;  %4281 = vmatmul.mubr.bf16.vlgmr.msra.gmra.mxu1 %v10258_v59  ;;  %4292 = vmatpush1.bf16.msra.mxu0 %v8535_v15  ;;  %v1037_v42 = vld [vmem:[#allocation8 + $0x910] sm:$0xff]  ;;  %v8632_v15 = vcombine.high %v1157_v33, %v1161_v34  ;;  %v8496_v60 = vcombine.high %v1021_v40, %v1025_v0 }
 0x24c   :  { %4323 = vmatprep.mubr.bf16.mxu0 %v10287_v26  ;;  %4335 = vmatpush1.bf16.msra.mxu1 %v8663_v43  ;;  %v10343_v4 = vpop.f32.mrf.mxu0  ;;  %v10346_v45 = vpop.f32.mrf.mxu1  ;;  %v8512_v25 = vcombine.high %v1037_v42, %v1041_v19  ;;  %v8511_v37 = vcombine.low %v1037_v42, %v1041_v19  ;;  %v1149_v43 = vld [vmem:[#allocation8 + $0xc90] sm:$0xff] }
 0x24d   :  { %v4025_v11 = vadd.f32 %v4024_v63, %v3982_v62  ;;  %4366 = vmatprep.mubr.bf16.mxu1 %v10289_v30  ;;  %4293 = vmatprep.subr.bf16.mxu0 %v8528_v53  ;;  %v1153_v53 = vld [vmem:[#allocation8 + $0xcb0] sm:$0xff] }
 0x24e   :  { %v3985_v46 = vpop.f32.mrf.mxu0  ;;  %4336 = vmatprep.subr.bf16.mxu1 %v8656_v50  ;;  %v4028_v22 = vpop.f32.mrf.mxu1  ;;  %v8624_v50 = vcombine.high %v1149_v43, %v1153_v53  ;;  %v1141_v62 = vld [vmem:[#allocation8 + $0xc50] sm:$0xff] }
 0x24f   :  { %v3986_v20 = vadd.f32 %v3985_v46, %v10333_v9  ;;  %4294 = vmatpush1.bf16.msra.mxu0 %v8527_v1  ;;  %v4549_v35 = vmax.f32 %v4025_v11, 0.0  ;;  %v8639_v9 = vcombine.low %v1165_v47, %v1169_v52  ;;  %v1145_v63 = vld [vmem:[#allocation8 + $0xc70] sm:$0xff]  ;;  %v8495_v1 = vcombine.low %v1021_v40, %v1025_v0 }
 0x250   :  { %4337 = vmatpush1.bf16.msra.mxu1 %v8655_v7  ;;  %4295 = vmatprep.subr.bf16.mxu0 %v8520_v8  ;;  %v8623_v7 = vcombine.low %v1149_v43, %v1153_v53  ;;  %v8488_v8 = vcombine.high %v1013_v61, %v1017_v6  ;;  %v8616_v11 = vcombine.high %v1141_v62, %v1145_v63  ;;  %v1009_v42 = vld [vmem:[#allocation8 + $0x830] sm:$0xff] }
 0x251   :  { %v4029_v28 = vadd.f32 %v4028_v22, %v3986_v20  ;;  %4338 = vmatprep.subr.bf16.mxu1 %v8648_v51  ;;  %v1005_v51 = vld [vmem:[#allocation8 + $0x810] sm:$0xff]  ;;  %v8487_v47 = vcombine.low %v1013_v61, %v1017_v6  ;;  %v8615_v52 = vcombine.low %v1141_v62, %v1145_v63 }
 0x252   :  { %v1133_v19 = vld [vmem:[#allocation8 + $0xc10] sm:$0xff]  ;;  %v8480_v20 = vcombine.high %v1005_v51, %v1009_v42 }
 0x253   :  { %v4557_v36 = vmax.f32 %v4029_v28, 0.0  ;;  %4296 = vmatpush1.bf16.msra.mxu0 %v8519_v21  ;;  %v1137_v46 = vld [vmem:[#allocation8 + $0xc30] sm:$0xff] }
 0x254   :  { %4339 = vmatpush1.bf16.msra.mxu1 %v8647_v23  ;;  %4297 = vmatprep.subr.bf16.mxu0 %v8512_v25  ;;  %v8608_v21 = vcombine.high %v1133_v19, %v1137_v46  ;;  %v1125_v22 = vld [vmem:[#allocation8 + $0xbd0] sm:$0xff]  ;;  %v8607_v31 = vcombine.low %v1133_v19, %v1137_v46 }
 0x255   :  { %v10349_v39 = vpack.c.bf16 %v4557_v36, %v4549_v35  ;;  %4340 = vmatprep.subr.bf16.mxu1 %v8640_v29  ;;  %v1129_v23 = vld [vmem:[#allocation8 + $0xbf0] sm:$0xff]  ;;  %v8479_v29 = vcombine.low %v1005_v51, %v1009_v42 }
 0x256   :  { %v1253_v25 = vld [vmem:[#allocation8 + $0xfd0] sm:$0xff]  ;;  %v8600_v32 = vcombine.high %v1125_v22, %v1129_v23 }
 0x257   :  { %4298 = vmatpush1.bf16.msra.mxu0 %v8511_v37  ;;  %v1257_v28 = vld [vmem:[#allocation8 + $0xff0] sm:$0xff] }
 0x258   :  { %4341 = vmatpush1.bf16.msra.mxu1 %v8639_v9  ;;  %4299 = vmatprep.subr.bf16.mxu0 %v8504_v38  ;;  %v8728_v33 = vcombine.high %v1253_v25, %v1257_v28  ;;  %v1117_v34 = vld [vmem:[#allocation8 + $0xb90] sm:$0xff]  ;;  %v8599_v9 = vcombine.low %v1125_v22, %v1129_v23  ;;  %v8727_v38 = vcombine.low %v1253_v25, %v1257_v28 }
 0x259   :  { %4342 = vmatprep.subr.bf16.mxu1 %v8632_v15  ;;  %v1121_v35 = vld [vmem:[#allocation8 + $0xbb0] sm:$0xff] }
 0x25a   :  { %v1245_v36 = vld [vmem:[#allocation8 + $0xf90] sm:$0xff]  ;;  %v8592_v15 = vcombine.high %v1117_v34, %v1121_v35 }
 0x25b   :  { %4300 = vmatpush1.bf16.msra.mxu0 %v8503_v54  ;;  %v1249_v37 = vld [vmem:[#allocation8 + $0xfb0] sm:$0xff] }
 0x25c   :  { %4343 = vmatpush1.bf16.msra.mxu1 %v8631_v58  ;;  %4301 = vmatprep.subr.bf16.mxu0 %v8496_v60  ;;  %v8720_v40 = vcombine.high %v1245_v36, %v1249_v37  ;;  %v1109_v0 = vld [vmem:[#allocation8 + $0xb50] sm:$0xff]  ;;  %v8591_v58 = vcombine.low %v1117_v34, %v1121_v35  ;;  %v8719_v60 = vcombine.low %v1245_v36, %v1249_v37 }
 0x25d   :  { %4344 = vmatprep.subr.bf16.mxu1 %v8624_v50  ;;  %v1113_v43 = vld [vmem:[#allocation8 + $0xb70] sm:$0xff] }
 0x25e   :  { %v1237_v53 = vld [vmem:[#allocation8 + $0xf50] sm:$0xff]  ;;  %v8584_v50 = vcombine.high %v1109_v0, %v1113_v43 }
 0x25f   :  { %4302 = vmatpush1.bf16.msra.mxu0 %v8495_v1  ;;  %v1241_v54 = vld [vmem:[#allocation8 + $0xf70] sm:$0xff] }
 0x260   :  { %4345 = vmatpush1.bf16.msra.mxu1 %v8623_v7  ;;  %4303 = vmatprep.subr.bf16.mxu0 %v8488_v8  ;;  %v8712_v61 = vcombine.high %v1237_v53, %v1241_v54  ;;  %v1101_v6 = vld [vmem:[#allocation8 + $0xb10] sm:$0xff]  ;;  %v8583_v7 = vcombine.low %v1109_v0, %v1113_v43  ;;  %v8711_v8 = vcombine.low %v1237_v53, %v1241_v54 }
 0x261   :  { %4346 = vmatprep.subr.bf16.mxu1 %v8616_v11  ;;  %v1105_v62 = vld [vmem:[#allocation8 + $0xb30] sm:$0xff] }
 0x262   :  { %v1229_v63 = vld [vmem:[#allocation8 + $0xf10] sm:$0xff]  ;;  %v8576_v11 = vcombine.high %v1101_v6, %v1105_v62 }
 0x263   :  { %4304 = vmatpush1.bf16.msra.mxu0 %v8487_v47  ;;  %v1233_v1 = vld [vmem:[#allocation8 + $0xf30] sm:$0xff] }
 0x264   :  { %4347 = vmatpush1.bf16.msra.mxu1 %v8615_v52  ;;  %4305 = vmatprep.subr.bf16.mxu0 %v8480_v20  ;;  %v8704_v51 = vcombine.high %v1229_v63, %v1233_v1  ;;  %v1093_v42 = vld [vmem:[#allocation8 + $0xad0] sm:$0xff]  ;;  %v8575_v52 = vcombine.low %v1101_v6, %v1105_v62  ;;  %v8703_v20 = vcombine.low %v1229_v63, %v1233_v1  ;;  %v806_v62 = vld [vmem:[#allocation8 + $0x1d8] sm:$0xff] }
 0x265   :  { %4348 = vmatprep.subr.bf16.mxu1 %v8608_v21  ;;  %v1097_v19 = vld [vmem:[#allocation8 + $0xaf0] sm:$0xff]  ;;  %v810_v63 = vld [vmem:[#allocation8 + $0x1f8] sm:$0xff] }
 0x266   :  { %v1221_v46 = vld [vmem:[#allocation8 + $0xed0] sm:$0xff]  ;;  %v8568_v21 = vcombine.high %v1093_v42, %v1097_v19  ;;  %v934_v1 = vld [vmem:[#allocation8 + $0x5d8] sm:$0xff] }
 0x267   :  { %4306 = vmatpush1.bf16.msra.mxu0 %v8479_v29  ;;  %v1225_v47 = vld [vmem:[#allocation8 + $0xef0] sm:$0xff] }
 0x268   :  { %4349 = vmatpush1.bf16.msra.mxu1 %v8607_v31  ;;  %4307 = vmatprep.subr.bf16.mxu0 %v8600_v32  ;;  %v8696_v22 = vcombine.high %v1221_v46, %v1225_v47  ;;  %v1085_v23 = vld [vmem:[#allocation8 + $0xa90] sm:$0xff]  ;;  %v8567_v31 = vcombine.low %v1093_v42, %v1097_v19  ;;  %v8695_v32 = vcombine.low %v1221_v46, %v1225_v47  ;;  %v798_v19 = vld [vmem:[#allocation8 + $0x198] sm:$0xff] }
 0x269   :  { %4350 = vmatprep.subr.bf16.mxu1 %v8728_v33  ;;  %v1089_v25 = vld [vmem:[#allocation8 + $0xab0] sm:$0xff]  ;;  %v802_v46 = vld [vmem:[#allocation8 + $0x1b8] sm:$0xff]  ;;  %v1272_v47 = vrot.slane %v10319_v24, %v10236_v16 }
 0x26a   :  { %v1213_v28 = vld [vmem:[#allocation8 + $0xe90] sm:$0xff]  ;;  %v8560_v33 = vcombine.high %v1085_v23, %v1089_v25  ;;  %v922_v24 = vld [vmem:[#allocation8 + $0x578] sm:$0xff] }
 0x26b   :  { %4308 = vmatpush2.bf16.msra.mxu0 %v8599_v9  ;;  %v1217_v29 = vld [vmem:[#allocation8 + $0xeb0] sm:$0xff] }
 0x26c   :  { %4351 = vmatpush2.bf16.msra.mxu1 %v8727_v38  ;;  %4309 = vmatprep.subr.bf16.mxu0 %v8592_v15  ;;  %v8688_v34 = vcombine.high %v1213_v28, %v1217_v29  ;;  %v1077_v35 = vld [vmem:[#allocation8 + $0xa50] sm:$0xff]  ;;  %v8559_v38 = vcombine.low %v1085_v23, %v1089_v25  ;;  %v8687_v15 = vcombine.low %v1213_v28, %v1217_v29  ;;  %v10355_v25 = vpop.f32.mrf.mxu1  ;;  %v790_v29 = vld [vmem:[#allocation8 + $0x158] sm:$0xff] }
 0x26d   :  { %4352 = vmatprep.subr.bf16.mxu1 %v8720_v40  ;;  %v1081_v36 = vld [vmem:[#allocation8 + $0xa70] sm:$0xff]  ;;  %v8274_v28 = vcombine.high %v798_v19, %v802_v46 }
 0x26e   :  { %v1205_v37 = vld [vmem:[#allocation8 + $0xe50] sm:$0xff]  ;;  %v8552_v40 = vcombine.high %v1077_v35, %v1081_v36 }
 0x26f   :  { %4310 = vmatpush2.bf16.msra.mxu0 %v8591_v58  ;;  %v1209_v9 = vld [vmem:[#allocation8 + $0xe70] sm:$0xff] }
 0x270   :  { %4353 = vmatpush2.bf16.msra.mxu1 %v8719_v60  ;;  %4311 = vmatprep.subr.bf16.mxu0 %v8584_v50  ;;  %v8680_v0 = vcombine.high %v1205_v37, %v1209_v9  ;;  %v1069_v43 = vld [vmem:[#allocation8 + $0xa10] sm:$0xff]  ;;  %v8551_v60 = vcombine.low %v1077_v35, %v1081_v36  ;;  %v8679_v50 = vcombine.low %v1205_v37, %v1209_v9 }
 0x271   :  { %4354 = vmatprep.subr.bf16.mxu1 %v8712_v61  ;;  %v1073_v53 = vld [vmem:[#allocation8 + $0xa30] sm:$0xff]  ;;  %v8273_v37 = vcombine.low %v798_v19, %v802_v46 }
 0x272   :  { %v1197_v54 = vld [vmem:[#allocation8 + $0xe10] sm:$0xff]  ;;  %v8544_v61 = vcombine.high %v1069_v43, %v1073_v53 }
 0x273   :  { %4312 = vmatpush2.bf16.msra.mxu0 %v8583_v7  ;;  %v1201_v58 = vld [vmem:[#allocation8 + $0xe30] sm:$0xff]  ;;  %v938_v7 = vld [vmem:[#allocation8 + $0x5f8] sm:$0xff] }
 0x274   :  { %4355 = vmatpush2.bf16.msra.mxu1 %v8711_v8  ;;  %4313 = vmatprep.subr.bf16.mxu0 %v8576_v11  ;;  %v8672_v6 = vcombine.high %v1197_v54, %v1201_v58  ;;  %v8543_v8 = vcombine.low %v1069_v43, %v1073_v53  ;;  %v8671_v11 = vcombine.low %v1197_v54, %v1201_v58  ;;  %v782_v53 = vld [vmem:[#allocation8 + $0x118] sm:$0xff] }
 0x275   :  { %4356 = vmatprep.subr.bf16.mxu1 %v8704_v51  ;;  %v8282_v51 = vcombine.high %v806_v62, %v810_v63  ;;  %v8410_v42 = vcombine.high %v934_v1, %v938_v7  ;;  %v8409_v23 = vcombine.low %v934_v1, %v938_v7  ;;  %v786_v54 = vld [vmem:[#allocation8 + $0x138] sm:$0xff] }
 0x276   :  { %v774_v7 = vld [vmem:[#allocation8 + $0xd8] sm:$0xff] }
 0x277   :  { %4314 = vmatpush2.bf16.msra.mxu0 %v8575_v52  ;;  %v8281_v52 = vcombine.low %v806_v62, %v810_v63  ;;  %v8258_v63 = vcombine.high %v782_v53, %v786_v54 }
 0x278   :  { %4357 = vmatpush2.bf16.msra.mxu1 %v8703_v20  ;;  %4315 = vmatprep.subr.bf16.mxu0 %v8568_v21  ;;  %v926_v20 = vld [vmem:[#allocation8 + $0x598] sm:$0xff] }
 0x279   :  { %4358 = vmatprep.subr.bf16.mxu1 %v8696_v22  ;;  %v930_v21 = vld [vmem:[#allocation8 + $0x5b8] sm:$0xff]  ;;  %v10353_v22 = vpop.f32.mrf.mxu0 }
 0x27b   :  { %4316 = vmatpush2.bf16.msra.mxu0 %v8567_v31  ;;  %v794_v31 = vld [vmem:[#allocation8 + $0x178] sm:$0xff] }
 0x27c   :  { %4359 = vmatpush2.bf16.msra.mxu1 %v8695_v32  ;;  %4317 = vmatprep.subr.bf16.mxu0 %v8560_v33  ;;  %v8402_v33 = vcombine.high %v926_v20, %v930_v21 }
 0x27d   :  { %4360 = vmatprep.subr.bf16.mxu1 %v8688_v34  ;;  %v918_v34 = vld [vmem:[#allocation8 + $0x558] sm:$0xff] }
 0x27e   :  { %v8394_v43 = vcombine.high %v918_v34, %v922_v24  ;;  %v8393_v62 = vcombine.low %v918_v34, %v922_v24  ;;  %v762_v34 = vld [vmem:[#allocation8 + $0x78] sm:$0xff] }
 0x27f   :  { %4318 = vmatpush2.bf16.msra.mxu0 %v8559_v38  ;;  %v8401_v38 = vcombine.low %v926_v20, %v930_v21  ;;  %v770_v20 = vld [vmem:[#allocation8 + $0xb8] sm:$0xff] }
 0x280   :  { %4361 = vmatpush2.bf16.msra.mxu1 %v8687_v15  ;;  %4319 = vmatprep.subr.bf16.mxu0 %v8552_v40  ;;  %v8266_v15 = vcombine.high %v790_v29, %v794_v31  ;;  %v894_v21 = vld [vmem:[#allocation8 + $0x498] sm:$0xff] }
 0x281   :  { %4362 = vmatprep.subr.bf16.mxu1 %v8680_v0  ;;  %v886_v24 = vld [vmem:[#allocation8 + $0x458] sm:$0xff] }
 0x283   :  { %4320 = vmatpush2.bf16.msra.mxu0 %v8551_v60  ;;  %v910_v60 = vld [vmem:[#allocation8 + $0x518] sm:$0xff] }
 0x284   :  { %4363 = vmatpush2.bf16.msra.mxu1 %v8679_v50  ;;  %4321 = vmatprep.subr.bf16.mxu0 %v8544_v61  ;;  %v914_v50 = vld [vmem:[#allocation8 + $0x538] sm:$0xff]  ;;  %v8265_v61 = vcombine.low %v790_v29, %v794_v31 }
 0x285   :  { %4364 = vmatprep.subr.bf16.mxu1 %v8672_v6  ;;  %v8385_v19 = vcombine.low %v910_v60, %v914_v50 }
 0x287   :  { %4322 = vmatpush2.bf16.msra.mxu0 %v8543_v8  ;;  %v778_v8 = vld [vmem:[#allocation8 + $0xf8] sm:$0xff] }
 0x288   :  { %4365 = vmatpush2.bf16.msra.mxu1 %v8671_v11  ;;  %4377 = vmatprep.subr.bf16.mxu0 %v8282_v51  ;;  %v902_v11 = vld [vmem:[#allocation8 + $0x4d8] sm:$0xff]  ;;  %v8250_v46 = vcombine.high %v774_v7, %v778_v8 }
 0x289   :  { %4420 = vmatprep.subr.bf16.mxu1 %v8410_v42  ;;  %v906_v51 = vld [vmem:[#allocation8 + $0x4f8] sm:$0xff]  ;;  %v8257_v42 = vcombine.low %v782_v53, %v786_v54 }
 0x28a   :  { %v4067_v32 = vpop.f32.mrf.mxu0  ;;  %4324 = vmatmul.mubr.bf16.vlgmr.msra.gmra.mxu0 %v10307_v3  ;;  %v8377_v29 = vcombine.low %v902_v11, %v906_v51  ;;  %v754_v53 = vld [vmem:[#allocation8 + $0x38] sm:$0xff] }
 0x28b   :  { %v4068_v35 = vadd.f32 %v4067_v32, %v1272_v47  ;;  %v4110_v36 = vpop.f32.mrf.mxu1  ;;  %4367 = vmatmul.mubr.bf16.vlgmr.msra.gmra.mxu1 %v10309_v5  ;;  %4378 = vmatpush1.bf16.msra.mxu0 %v8281_v52  ;;  %v766_v52 = vld [vmem:[#allocation8 + $0x98] sm:$0xff] }
 0x28c   :  { %4409 = vmatprep.mubr.bf16.mxu0 %v10252_v55  ;;  %4421 = vmatpush1.bf16.msra.mxu1 %v8409_v23  ;;  %v10360_v9 = vpop.f32.mrf.mxu0  ;;  %v898_v23 = vld [vmem:[#allocation8 + $0x4b8] sm:$0xff]  ;;  %v8242_v31 = vcombine.high %v766_v52, %v770_v20 }
 0x28d   :  { %v10362_v40 = vadd.f32 %v4110_v36, %v4068_v35  ;;  %4452 = vmatprep.mubr.bf16.mxu1 %v10256_v57  ;;  %v10365_v0 = vpop.f32.mrf.mxu1  ;;  %4379 = vmatprep.subr.bf16.mxu0 %v8274_v28  ;;  %v8386_v57 = vcombine.high %v910_v60, %v914_v50  ;;  %v8249_v28 = vcombine.low %v774_v7, %v778_v8  ;;  %v890_v35 = vld [vmem:[#allocation8 + $0x478] sm:$0xff] }
 0x28e   :  { %v4071_v58 = vpop.f32.mrf.mxu0  ;;  %4422 = vmatprep.subr.bf16.mxu1 %v8402_v33  ;;  %v8370_v32 = vcombine.high %v894_v21, %v898_v23  ;;  %v758_v33 = vld [vmem:[#allocation8 + $0x58] sm:$0xff]  ;;  %v8241_v36 = vcombine.low %v766_v52, %v770_v20  ;;  %v8361_v50 = vcombine.low %v886_v24, %v890_v35 }
 0x28f   :  { %v4072_v55 = vadd.f32 %v4071_v58, %v1272_v47  ;;  %4380 = vmatpush1.bf16.msra.mxu0 %v8273_v37  ;;  %v4114_v6 = vpop.f32.mrf.mxu1  ;;  %v8378_v47 = vcombine.high %v902_v11, %v906_v51  ;;  %v8369_v37 = vcombine.low %v894_v21, %v898_v23  ;;  %v878_v54 = vld [vmem:[#allocation8 + $0x418] sm:$0xff]  ;;  %v8233_v60 = vcombine.low %v758_v33, %v762_v34 }
 0x290   :  { %4423 = vmatpush1.bf16.msra.mxu1 %v8401_v38  ;;  %4381 = vmatprep.subr.bf16.mxu0 %v8266_v15  ;;  %v8234_v38 = vcombine.high %v758_v33, %v762_v34  ;;  %v8362_v15 = vcombine.high %v886_v24, %v890_v35  ;;  %v882_v58 = vld [vmem:[#allocation8 + $0x438] sm:$0xff] }
 0x291   :  { %v10367_v1 = vadd.f32 %v4114_v6, %v4072_v55  ;;  %4424 = vmatprep.subr.bf16.mxu1 %v8394_v43  ;;  %v750_v43 = vld [vmem:[#allocation8 + $0x18] sm:$0xff]  ;;  %v8353_v8 = vcombine.low %v878_v54, %v882_v58 }
 0x292   :  { %v8226_v55 = vcombine.high %v750_v43, %v754_v53  ;;  %v870_v6 = vld [vmem:[#allocation8 + $0x3d8] sm:$0xff]  ;;  %v8225_v7 = vcombine.low %v750_v43, %v754_v53 }
 0x293   :  { %4382 = vmatpush1.bf16.msra.mxu0 %v8265_v61  ;;  %v8354_v61 = vcombine.high %v878_v54, %v882_v58 }
 0x294   :  { %4425 = vmatpush1.bf16.msra.mxu1 %v8393_v62  ;;  %4383 = vmatprep.subr.bf16.mxu0 %v8258_v63  ;;  %v874_v62 = vld [vmem:[#allocation8 + $0x3f8] sm:$0xff] }
 0x295   :  { %4426 = vmatprep.subr.bf16.mxu1 %v8386_v57  ;;  %v998_v63 = vld [vmem:[#allocation8 + $0x7d8] sm:$0xff]  ;;  %v8346_v11 = vcombine.high %v870_v6, %v874_v62  ;;  %v8345_v52 = vcombine.low %v870_v6, %v874_v62 }
 0x296   :  { %v1002_v57 = vld [vmem:[#allocation8 + $0x7f8] sm:$0xff] }
 0x297   :  { %4384 = vmatpush1.bf16.msra.mxu0 %v8257_v42  ;;  %v8474_v51 = vcombine.high %v998_v63, %v1002_v57  ;;  %v862_v42 = vld [vmem:[#allocation8 + $0x398] sm:$0xff]  ;;  %v8473_v20 = vcombine.low %v998_v63, %v1002_v57 }
 0x298   :  { %4427 = vmatpush1.bf16.msra.mxu1 %v8385_v19  ;;  %4385 = vmatprep.subr.bf16.mxu0 %v8250_v46  ;;  %v866_v19 = vld [vmem:[#allocation8 + $0x3b8] sm:$0xff] }
 0x299   :  { %4428 = vmatprep.subr.bf16.mxu1 %v8378_v47  ;;  %v990_v46 = vld [vmem:[#allocation8 + $0x798] sm:$0xff]  ;;  %v8338_v21 = vcombine.high %v862_v42, %v866_v19  ;;  %v8337_v33 = vcombine.low %v862_v42, %v866_v19 }
 0x29a   :  { %v994_v47 = vld [vmem:[#allocation8 + $0x7b8] sm:$0xff] }
 0x29b   :  { %4386 = vmatpush1.bf16.msra.mxu0 %v8249_v28  ;;  %v8466_v23 = vcombine.high %v990_v46, %v994_v47  ;;  %v854_v28 = vld [vmem:[#allocation8 + $0x358] sm:$0xff]  ;;  %v8465_v34 = vcombine.low %v990_v46, %v994_v47 }
 0x29c   :  { %4429 = vmatpush1.bf16.msra.mxu1 %v8377_v29  ;;  %4387 = vmatprep.subr.bf16.mxu0 %v8242_v31  ;;  %v858_v29 = vld [vmem:[#allocation8 + $0x378] sm:$0xff] }
 0x29d   :  { %4430 = vmatprep.subr.bf16.mxu1 %v8370_v32  ;;  %v982_v31 = vld [vmem:[#allocation8 + $0x758] sm:$0xff]  ;;  %v8330_v24 = vcombine.high %v854_v28, %v858_v29  ;;  %v8329_v43 = vcombine.low %v854_v28, %v858_v29 }
 0x29e   :  { %v986_v32 = vld [vmem:[#allocation8 + $0x778] sm:$0xff] }
 0x29f   :  { %4388 = vmatpush1.bf16.msra.mxu0 %v8241_v36  ;;  %v8458_v35 = vcombine.high %v982_v31, %v986_v32  ;;  %v846_v36 = vld [vmem:[#allocation8 + $0x318] sm:$0xff]  ;;  %v8457_v53 = vcombine.low %v982_v31, %v986_v32 }
 0x2a0   :  { %4431 = vmatpush1.bf16.msra.mxu1 %v8369_v37  ;;  %4389 = vmatprep.subr.bf16.mxu0 %v8234_v38  ;;  %v850_v37 = vld [vmem:[#allocation8 + $0x338] sm:$0xff] }
 0x2a1   :  { %4432 = vmatprep.subr.bf16.mxu1 %v8362_v15  ;;  %v974_v38 = vld [vmem:[#allocation8 + $0x718] sm:$0xff]  ;;  %v8322_v54 = vcombine.high %v846_v36, %v850_v37  ;;  %v8321_v6 = vcombine.low %v846_v36, %v850_v37 }
 0x2a2   :  { %v978_v15 = vld [vmem:[#allocation8 + $0x738] sm:$0xff] }
 0x2a3   :  { %4390 = vmatpush1.bf16.msra.mxu0 %v8233_v60  ;;  %v8450_v58 = vcombine.high %v974_v38, %v978_v15  ;;  %v838_v60 = vld [vmem:[#allocation8 + $0x2d8] sm:$0xff]  ;;  %v8449_v62 = vcombine.low %v974_v38, %v978_v15 }
 0x2a4   :  { %4433 = vmatpush1.bf16.msra.mxu1 %v8361_v50  ;;  %4391 = vmatprep.subr.bf16.mxu0 %v8226_v55  ;;  %v842_v50 = vld [vmem:[#allocation8 + $0x2f8] sm:$0xff] }
 0x2a5   :  { %4434 = vmatprep.subr.bf16.mxu1 %v8354_v61  ;;  %v966_v55 = vld [vmem:[#allocation8 + $0x6d8] sm:$0xff]  ;;  %v8314_v63 = vcombine.high %v838_v60, %v842_v50  ;;  %v8313_v42 = vcombine.low %v838_v60, %v842_v50 }
 0x2a6   :  { %v970_v61 = vld [vmem:[#allocation8 + $0x6f8] sm:$0xff] }
 0x2a7   :  { %4392 = vmatpush1.bf16.msra.mxu0 %v8225_v7  ;;  %v8442_v57 = vcombine.high %v966_v55, %v970_v61  ;;  %v830_v7 = vld [vmem:[#allocation8 + $0x298] sm:$0xff]  ;;  %v8441_v19 = vcombine.low %v966_v55, %v970_v61 }
 0x2a8   :  { %4435 = vmatpush1.bf16.msra.mxu1 %v8353_v8  ;;  %4393 = vmatprep.subr.bf16.mxu0 %v8346_v11  ;;  %v834_v8 = vld [vmem:[#allocation8 + $0x2b8] sm:$0xff] }
 0x2a9   :  { %4436 = vmatprep.subr.bf16.mxu1 %v8474_v51  ;;  %v958_v11 = vld [vmem:[#allocation8 + $0x698] sm:$0xff]  ;;  %v8306_v46 = vcombine.high %v830_v7, %v834_v8  ;;  %v8305_v28 = vcombine.low %v830_v7, %v834_v8  ;;  %v10369_v8 = vpop.f32.mrf.mxu0 }
 0x2aa   :  { %v962_v51 = vld [vmem:[#allocation8 + $0x6b8] sm:$0xff] }
 0x2ab   :  { %4394 = vmatpush2.bf16.msra.mxu0 %v8345_v52  ;;  %v8434_v47 = vcombine.high %v958_v11, %v962_v51  ;;  %v822_v52 = vld [vmem:[#allocation8 + $0x258] sm:$0xff]  ;;  %v8433_v29 = vcombine.low %v958_v11, %v962_v51  ;;  %v10371_v51 = vpop.f32.mrf.mxu1 }
 0x2ac   :  { %4437 = vmatpush2.bf16.msra.mxu1 %v8473_v20  ;;  %4395 = vmatprep.subr.bf16.mxu0 %v8338_v21  ;;  %v826_v20 = vld [vmem:[#allocation8 + $0x278] sm:$0xff] }
 0x2ad   :  { %4438 = vmatprep.subr.bf16.mxu1 %v8466_v23  ;;  %v950_v21 = vld [vmem:[#allocation8 + $0x658] sm:$0xff]  ;;  %v8298_v31 = vcombine.high %v822_v52, %v826_v20  ;;  %v8297_v36 = vcombine.low %v822_v52, %v826_v20 }
 0x2ae   :  { %v954_v23 = vld [vmem:[#allocation8 + $0x678] sm:$0xff] }
 0x2af   :  { %4396 = vmatpush2.bf16.msra.mxu0 %v8337_v33  ;;  %v8426_v32 = vcombine.high %v950_v21, %v954_v23  ;;  %v814_v33 = vld [vmem:[#allocation8 + $0x218] sm:$0xff]  ;;  %v8425_v37 = vcombine.low %v950_v21, %v954_v23 }
 0x2b0   :  { %4439 = vmatpush2.bf16.msra.mxu1 %v8465_v34  ;;  %4397 = vmatprep.subr.bf16.mxu0 %v8330_v24  ;;  %v818_v34 = vld [vmem:[#allocation8 + $0x238] sm:$0xff] }
 0x2b1   :  { %4440 = vmatprep.subr.bf16.mxu1 %v8458_v35  ;;  %v942_v24 = vld [vmem:[#allocation8 + $0x618] sm:$0xff]  ;;  %v8290_v38 = vcombine.high %v814_v33, %v818_v34  ;;  %v8289_v60 = vcombine.low %v814_v33, %v818_v34 }
 0x2b2   :  { %v946_v35 = vld [vmem:[#allocation8 + $0x638] sm:$0xff] }
 0x2b3   :  { %4398 = vmatpush2.bf16.msra.mxu0 %v8329_v43  ;;  %v8418_v15 = vcombine.high %v942_v24, %v946_v35  ;;  %v1062_v43 = vld [vmem:[#allocation8 + $0x9d8] sm:$0xff]  ;;  %v8417_v50 = vcombine.low %v942_v24, %v946_v35 }
 0x2b4   :  { %4441 = vmatpush2.bf16.msra.mxu1 %v8457_v53  ;;  %4399 = vmatprep.subr.bf16.mxu0 %v8322_v54  ;;  %v1066_v53 = vld [vmem:[#allocation8 + $0x9f8] sm:$0xff] }
 0x2b5   :  { %4442 = vmatprep.subr.bf16.mxu1 %v8450_v58  ;;  %v1190_v54 = vld [vmem:[#allocation8 + $0xdd8] sm:$0xff]  ;;  %v8538_v55 = vcombine.high %v1062_v43, %v1066_v53 }
 0x2b6   :  { %v1194_v58 = vld [vmem:[#allocation8 + $0xdf8] sm:$0xff] }
 0x2b7   :  { %4400 = vmatpush2.bf16.msra.mxu0 %v8321_v6  ;;  %v8666_v61 = vcombine.high %v1190_v54, %v1194_v58  ;;  %v1054_v6 = vld [vmem:[#allocation8 + $0x998] sm:$0xff]  ;;  %v8665_v11 = vcombine.low %v1190_v54, %v1194_v58 }
 0x2b8   :  { %4443 = vmatpush2.bf16.msra.mxu1 %v8449_v62  ;;  %4401 = vmatprep.subr.bf16.mxu0 %v8314_v63  ;;  %v1058_v62 = vld [vmem:[#allocation8 + $0x9b8] sm:$0xff]  ;;  %v8537_v63 = vcombine.low %v1062_v43, %v1066_v53 }
 0x2b9   :  { %4444 = vmatprep.subr.bf16.mxu1 %v8442_v57  ;;  %v1182_v57 = vld [vmem:[#allocation8 + $0xd98] sm:$0xff] }
 0x2ba   :  { %v1186_v7 = vld [vmem:[#allocation8 + $0xdb8] sm:$0xff] }
 0x2bb   :  { %4402 = vmatpush2.bf16.msra.mxu0 %v8313_v42  ;;  %v8530_v42 = vcombine.high %v1054_v6, %v1058_v62  ;;  %v8658_v52 = vcombine.high %v1182_v57, %v1186_v7  ;;  %v1174_v20 = vld [vmem:[#allocation8 + $0xd58] sm:$0xff] }
 0x2bc   :  { %4445 = vmatpush2.bf16.msra.mxu1 %v8441_v19  ;;  %4403 = vmatprep.subr.bf16.mxu0 %v8306_v46  ;;  %v1046_v19 = vld [vmem:[#allocation8 + $0x958] sm:$0xff] }
 0x2bd   :  { %4446 = vmatprep.subr.bf16.mxu1 %v8434_v47  ;;  %v1050_v46 = vld [vmem:[#allocation8 + $0x978] sm:$0xff] }
 0x2be   :  { %v1178_v21 = vld [vmem:[#allocation8 + $0xd78] sm:$0xff]  ;;  %v8522_v33 = vcombine.high %v1046_v19, %v1050_v46 }
 0x2bf   :  { %4404 = vmatpush2.bf16.msra.mxu0 %v8305_v28  ;;  %v8650_v24 = vcombine.high %v1174_v20, %v1178_v21  ;;  %v1042_v35 = vld [vmem:[#allocation8 + $0x938] sm:$0xff]  ;;  %v8649_v43 = vcombine.low %v1174_v20, %v1178_v21 }
 0x2c0   :  { %4447 = vmatpush2.bf16.msra.mxu1 %v8433_v29  ;;  %4405 = vmatprep.subr.bf16.mxu0 %v8298_v31  ;;  %v8529_v29 = vcombine.low %v1054_v6, %v1058_v62  ;;  %v1030_v58 = vld [vmem:[#allocation8 + $0x8d8] sm:$0xff] }
 0x2c1   :  { %4448 = vmatprep.subr.bf16.mxu1 %v8426_v32  ;;  %v8657_v32 = vcombine.low %v1182_v57, %v1186_v7 }
 0x2c3   :  { %4406 = vmatpush2.bf16.msra.mxu0 %v8297_v36 }
 0x2c4   :  { %4449 = vmatpush2.bf16.msra.mxu1 %v8425_v37  ;;  %4407 = vmatprep.subr.bf16.mxu0 %v8290_v38  ;;  %v1170_v37 = vld [vmem:[#allocation8 + $0xd38] sm:$0xff]  ;;  %v8521_v38 = vcombine.low %v1046_v19, %v1050_v46 }
 0x2c5   :  { %4450 = vmatprep.subr.bf16.mxu1 %v8418_v15  ;;  %v1150_v19 = vld [vmem:[#allocation8 + $0xc98] sm:$0xff] }
 0x2c6   :  { %v1154_v46 = vld [vmem:[#allocation8 + $0xcb8] sm:$0xff] }
 0x2c7   :  { %4408 = vmatpush2.bf16.msra.mxu0 %v8289_v60  ;;  %v1034_v60 = vld [vmem:[#allocation8 + $0x8f8] sm:$0xff]  ;;  %v8626_v21 = vcombine.high %v1150_v19, %v1154_v46 }
 0x2c8   :  { %4451 = vmatpush2.bf16.msra.mxu1 %v8417_v50  ;;  %4463 = vmatprep.subr.bf16.mxu0 %v8538_v55  ;;  %v1158_v50 = vld [vmem:[#allocation8 + $0xcd8] sm:$0xff] }
 0x2c9   :  { %4506 = vmatprep.subr.bf16.mxu1 %v8666_v61  ;;  %v1162_v55 = vld [vmem:[#allocation8 + $0xcf8] sm:$0xff] }
 0x2ca   :  { %v4153_v47 = vpop.f32.mrf.mxu0  ;;  %4410 = vmatmul.mubr.bf16.vlgmr.msra.gmra.mxu0 %v10254_v56  ;;  %v8634_v7 = vcombine.high %v1158_v50, %v1162_v55 }
 0x2cb   :  { %v4154_v23 = vadd.f32 %v4153_v47, %v10362_v40  ;;  %v4196_v28 = vpop.f32.mrf.mxu1  ;;  %4453 = vmatmul.mubr.bf16.vlgmr.msra.gmra.mxu1 %v10258_v59  ;;  %4464 = vmatpush1.bf16.msra.mxu0 %v8537_v63  ;;  %v1038_v40 = vld [vmem:[#allocation8 + $0x918] sm:$0xff]  ;;  %v8506_v63 = vcombine.high %v1030_v58, %v1034_v60  ;;  %v8505_v47 = vcombine.low %v1030_v58, %v1034_v60 }
 0x2cc   :  { %4495 = vmatprep.mubr.bf16.mxu0 %v10287_v26  ;;  %4507 = vmatpush1.bf16.msra.mxu1 %v8665_v11  ;;  %v10377_v31 = vpop.f32.mrf.mxu0  ;;  %v1166_v59 = vld [vmem:[#allocation8 + $0xd18] sm:$0xff]  ;;  %v8514_v53 = vcombine.high %v1038_v40, %v1042_v35  ;;  %v8513_v62 = vcombine.low %v1038_v40, %v1042_v35 }
 0x2cd   :  { %v4197_v34 = vadd.f32 %v4196_v28, %v4154_v23  ;;  %4538 = vmatprep.mubr.bf16.mxu1 %v10289_v30  ;;  %v10380_v56 = vpop.f32.mrf.mxu1  ;;  %4465 = vmatprep.subr.bf16.mxu0 %v8530_v42  ;;  %v8642_v54 = vcombine.high %v1166_v59, %v1170_v37  ;;  %v1022_v11 = vld [vmem:[#allocation8 + $0x898] sm:$0xff] }
 0x2ce   :  { %v4157_v36 = vpop.f32.mrf.mxu0  ;;  %4508 = vmatprep.subr.bf16.mxu1 %v8658_v52  ;;  %v1026_v42 = vld [vmem:[#allocation8 + $0x8b8] sm:$0xff]  ;;  %v8633_v52 = vcombine.low %v1158_v50, %v1162_v55 }
 0x2cf   :  { %v4158_v26 = vadd.f32 %v4157_v36, %v10367_v1  ;;  %4466 = vmatpush1.bf16.msra.mxu0 %v8529_v29  ;;  %v4200_v15 = vpop.f32.mrf.mxu1  ;;  %v4551_v61 = vmax.f32 %v4197_v34, 0.0  ;;  %v8641_v1 = vcombine.low %v1166_v59, %v1170_v37  ;;  %v8498_v20 = vcombine.high %v1022_v11, %v1026_v42  ;;  %v1014_v23 = vld [vmem:[#allocation8 + $0x858] sm:$0xff] }
 0x2d0   :  { %4509 = vmatpush1.bf16.msra.mxu1 %v8657_v32  ;;  %4467 = vmatprep.subr.bf16.mxu0 %v8522_v33  ;;  %v1018_v28 = vld [vmem:[#allocation8 + $0x878] sm:$0xff]  ;;  %v8497_v33 = vcombine.low %v1022_v11, %v1026_v42  ;;  %v8625_v34 = vcombine.low %v1150_v19, %v1154_v46 }
 0x2d1   :  { %v4201_v30 = vadd.f32 %v4200_v15, %v4158_v26  ;;  %4510 = vmatprep.subr.bf16.mxu1 %v8650_v24  ;;  %v1142_v29 = vld [vmem:[#allocation8 + $0xc58] sm:$0xff]  ;;  %v8490_v24 = vcombine.high %v1014_v23, %v1018_v28  ;;  %v8489_v26 = vcombine.low %v1014_v23, %v1018_v28 }
 0x2d2   :  { %v1146_v32 = vld [vmem:[#allocation8 + $0xc78] sm:$0xff] }
 0x2d3   :  { %v4559_v6 = vmax.f32 %v4201_v30, 0.0  ;;  %4468 = vmatpush1.bf16.msra.mxu0 %v8521_v38  ;;  %v8618_v40 = vcombine.high %v1142_v29, %v1146_v32  ;;  %v1006_v35 = vld [vmem:[#allocation8 + $0x818] sm:$0xff]  ;;  %v8617_v38 = vcombine.low %v1142_v29, %v1146_v32 }
 0x2d4   :  { %4511 = vmatpush1.bf16.msra.mxu1 %v8649_v43  ;;  %4469 = vmatprep.subr.bf16.mxu0 %v8514_v53  ;;  %v1010_v36 = vld [vmem:[#allocation8 + $0x838] sm:$0xff] }
 0x2d5   :  { %v10383_v57 = vpack.c.bf16 %v4559_v6, %v4551_v61  ;;  %4512 = vmatprep.subr.bf16.mxu1 %v8642_v54  ;;  %v1134_v59 = vld [vmem:[#allocation8 + $0xc18] sm:$0xff]  ;;  %v8482_v15 = vcombine.high %v1006_v35, %v1010_v36  ;;  %v8481_v60 = vcombine.low %v1006_v35, %v1010_v36 }
 0x2d6   :  { %v1138_v37 = vld [vmem:[#allocation8 + $0xc38] sm:$0xff] }
 0x2d7   :  { %4470 = vmatpush1.bf16.msra.mxu0 %v8513_v62  ;;  %v8610_v43 = vcombine.high %v1134_v59, %v1138_v37  ;;  %v1126_v53 = vld [vmem:[#allocation8 + $0xbd8] sm:$0xff]  ;;  %v8609_v50 = vcombine.low %v1134_v59, %v1138_v37 }
 0x2d8   :  { %4513 = vmatpush1.bf16.msra.mxu1 %v8641_v1  ;;  %4471 = vmatprep.subr.bf16.mxu0 %v8506_v63  ;;  %v1130_v30 = vld [vmem:[#allocation8 + $0xbf8] sm:$0xff] }
 0x2d9   :  { %4514 = vmatprep.subr.bf16.mxu1 %v8634_v7  ;;  %v1254_v54 = vld [vmem:[#allocation8 + $0xfd8] sm:$0xff]  ;;  %v8602_v55 = vcombine.high %v1126_v53, %v1130_v30  ;;  %v8601_v7 = vcombine.low %v1126_v53, %v1130_v30 }
 0x2da   :  { %v1258_v58 = vld [vmem:[#allocation8 + $0xff8] sm:$0xff] }
 0x2db   :  { %4472 = vmatpush1.bf16.msra.mxu0 %v8505_v47  ;;  %v8730_v61 = vcombine.high %v1254_v54, %v1258_v58  ;;  %v1118_v6 = vld [vmem:[#allocation8 + $0xb98] sm:$0xff]  ;;  %v8729_v11 = vcombine.low %v1254_v54, %v1258_v58 }
 0x2dc   :  { %4515 = vmatpush1.bf16.msra.mxu1 %v8633_v52  ;;  %4473 = vmatprep.subr.bf16.mxu0 %v8498_v20  ;;  %v1122_v62 = vld [vmem:[#allocation8 + $0xbb8] sm:$0xff] }
 0x2dd   :  { %4516 = vmatprep.subr.bf16.mxu1 %v8626_v21  ;;  %v1246_v1 = vld [vmem:[#allocation8 + $0xf98] sm:$0xff]  ;;  %v8594_v42 = vcombine.high %v1118_v6, %v1122_v62  ;;  %v8593_v21 = vcombine.low %v1118_v6, %v1122_v62 }
 0x2de   :  { %v1250_v63 = vld [vmem:[#allocation8 + $0xfb8] sm:$0xff] }
 0x2df   :  { %4474 = vmatpush1.bf16.msra.mxu0 %v8497_v33  ;;  %v8722_v19 = vcombine.high %v1246_v1, %v1250_v63  ;;  %v1110_v46 = vld [vmem:[#allocation8 + $0xb58] sm:$0xff]  ;;  %v8721_v23 = vcombine.low %v1246_v1, %v1250_v63 }
 0x2e0   :  { %4517 = vmatpush1.bf16.msra.mxu1 %v8625_v34  ;;  %4475 = vmatprep.subr.bf16.mxu0 %v8490_v24  ;;  %v1114_v47 = vld [vmem:[#allocation8 + $0xb78] sm:$0xff] }
 0x2e1   :  { %4518 = vmatprep.subr.bf16.mxu1 %v8618_v40  ;;  %v1238_v52 = vld [vmem:[#allocation8 + $0xf58] sm:$0xff]  ;;  %v8586_v28 = vcombine.high %v1110_v46, %v1114_v47  ;;  %v8585_v40 = vcombine.low %v1110_v46, %v1114_v47 }
 0x2e2   :  { %v1242_v20 = vld [vmem:[#allocation8 + $0xf78] sm:$0xff] }
 0x2e3   :  { %4476 = vmatpush1.bf16.msra.mxu0 %v8489_v26  ;;  %v8714_v29 = vcombine.high %v1238_v52, %v1242_v20  ;;  %v1102_v32 = vld [vmem:[#allocation8 + $0xb18] sm:$0xff]  ;;  %v8713_v35 = vcombine.low %v1238_v52, %v1242_v20 }
 0x2e4   :  { %4519 = vmatpush1.bf16.msra.mxu1 %v8617_v38  ;;  %4477 = vmatprep.subr.bf16.mxu0 %v8482_v15  ;;  %v1106_v33 = vld [vmem:[#allocation8 + $0xb38] sm:$0xff] }
 0x2e5   :  { %4520 = vmatprep.subr.bf16.mxu1 %v8610_v43  ;;  %v1230_v34 = vld [vmem:[#allocation8 + $0xf18] sm:$0xff]  ;;  %v8578_v36 = vcombine.high %v1102_v32, %v1106_v33  ;;  %v8577_v43 = vcombine.low %v1102_v32, %v1106_v33 }
 0x2e6   :  { %v1234_v24 = vld [vmem:[#allocation8 + $0xf38] sm:$0xff] }
 0x2e7   :  { %4478 = vmatpush1.bf16.msra.mxu0 %v8481_v60  ;;  %v8706_v59 = vcombine.high %v1230_v34, %v1234_v24  ;;  %v1094_v37 = vld [vmem:[#allocation8 + $0xad8] sm:$0xff]  ;;  %v8705_v53 = vcombine.low %v1230_v34, %v1234_v24 }
 0x2e8   :  { %4521 = vmatpush1.bf16.msra.mxu1 %v8609_v50  ;;  %4479 = vmatprep.subr.bf16.mxu0 %v8602_v55  ;;  %v1098_v26 = vld [vmem:[#allocation8 + $0xaf8] sm:$0xff]  ;;  %v10385_v50 = vld [vmem:[#allocation10] sm:$0xff] }
 0x2e9   :  { %4522 = vmatprep.subr.bf16.mxu1 %v8730_v61  ;;  %v1222_v38 = vld [vmem:[#allocation8 + $0xed8] sm:$0xff]  ;;  %v8570_v30 = vcombine.high %v1094_v37, %v1098_v26  ;;  %v1268_v55 = vrot.slane %v10385_v50, %v10239_v17  ;;  %v1276_v62 = vrot.slane %v10385_v50, %v10242_v18  ;;  %v8569_v1 = vcombine.low %v1094_v37, %v1098_v26 }
 0x2ea   :  { %v1226_v15 = vld [vmem:[#allocation8 + $0xef8] sm:$0xff] }
 0x2eb   :  { %4480 = vmatpush2.bf16.msra.mxu0 %v8601_v7  ;;  %v8698_v54 = vcombine.high %v1222_v38, %v1226_v15  ;;  %v1086_v58 = vld [vmem:[#allocation8 + $0xa98] sm:$0xff]  ;;  %v3902_v63 = vadd.f32 %v10335_v41, %v1268_v55  ;;  %v8697_v7 = vcombine.low %v1222_v38, %v1226_v15  ;;  %v3898_v52 = vadd.f32 %v10326_v49, %v1268_v55 }
 0x2ec   :  { %4523 = vmatpush2.bf16.msra.mxu1 %v8729_v11  ;;  %4481 = vmatprep.subr.bf16.mxu0 %v8594_v42  ;;  %v1090_v60 = vld [vmem:[#allocation8 + $0xab8] sm:$0xff]  ;;  %v4074_v42 = vadd.f32 %v10369_v8, %v1276_v62 }
 0x2ed   :  { %4524 = vmatprep.subr.bf16.mxu1 %v8722_v19  ;;  %v1214_v61 = vld [vmem:[#allocation8 + $0xe98] sm:$0xff]  ;;  %v8562_v11 = vcombine.high %v1086_v58, %v1090_v60  ;;  %v3945_v41 = vadd.f32 %v10337_v48, %v3902_v63  ;;  %v3941_v49 = vadd.f32 %v10331_v2, %v3898_v52  ;;  %v9303_v52 = vld [vmem:[#allocation11 + $0xe0] ss:$28 sps:$4 sm:$0xff]  }
 0x2ee   :  { %v1218_v6 = vld [vmem:[#allocation8 + $0xeb8] sm:$0xff]  ;;  %v4117_v8 = vadd.f32 %v10371_v51, %v4074_v42  ;;  %v9299_v42 = vld [vmem:[#allocation11 + $0x11c] ss:$28 sps:$4 sm:$0xff]  }
 0x2ef   :  { %4482 = vmatpush2.bf16.msra.mxu0 %v8593_v21  ;;  %v8690_v19 = vcombine.high %v1214_v61, %v1218_v6  ;;  %v1078_v46 = vld [vmem:[#allocation8 + $0xa58] sm:$0xff]  ;;  %v8689_v32 = vcombine.low %v1214_v61, %v1218_v6  ;;  %v3984_v26 = vadd.f32 %v10343_v4, %v3941_v49  ;;  %v9287_v4 = vld [vmem:[#allocation11 + $0x18c] ss:$28 sps:$4 sm:$0xff]  }
 0x2f0   :  { %4525 = vmatpush2.bf16.msra.mxu1 %v8721_v23  ;;  %4483 = vmatprep.subr.bf16.mxu0 %v8586_v28  ;;  %v1082_v47 = vld [vmem:[#allocation8 + $0xa78] sm:$0xff]  ;;  %v4070_v23 = vadd.f32 %v10360_v9, %v1276_v62  ;;  %v8561_v28 = vcombine.low %v1086_v58, %v1090_v60  ;;  %v9290_v60 = vld [vmem:[#allocation11 + $0x50c] ss:$28 sps:$4 sm:$0xff]  }
 0x2f1   :  { %4526 = vmatprep.subr.bf16.mxu1 %v8714_v29  ;;  %v1206_v20 = vld [vmem:[#allocation8 + $0xe58] sm:$0xff]  ;;  %v4159_v29 = vpop.f32.mrf.mxu0  ;;  %v8554_v33 = vcombine.high %v1078_v46, %v1082_v47  ;;  %v8553_v37 = vcombine.low %v1078_v46, %v1082_v47  ;;  %v9285_v61 = vld [vmem:[#allocation11 + $0x188] ss:$28 sps:$4 sm:$0xff]  }
 0x2f2   :  { %v1210_v21 = vld [vmem:[#allocation8 + $0xe78] sm:$0xff]  ;;  %v4160_v48 = vadd.f32 %v4159_v29, %v4117_v8  ;;  %v9305_v47 = vld [vmem:[#allocation11 + $0xe4] ss:$28 sps:$4 sm:$0xff]  }
 0x2f3   :  { %4484 = vmatpush2.bf16.msra.mxu0 %v8585_v40  ;;  %v8682_v34 = vcombine.high %v1206_v20, %v1210_v21  ;;  %v1070_v24 = vld [vmem:[#allocation8 + $0xa18] sm:$0xff]  ;;  %v8681_v51 = vcombine.low %v1206_v20, %v1210_v21  ;;  %v9306_v20 = vld [vmem:[#allocation11 + $0x460] ss:$28 sps:$4 sm:$0xff]   ;;  %v9311_v21 = vld [vmem:[#allocation11 + $0xac] ss:$28 sps:$4 sm:$0xff]  }
 0x2f4   :  { %4527 = vmatpush2.bf16.msra.mxu1 %v8713_v35  ;;  %4485 = vmatprep.subr.bf16.mxu0 %v8578_v36  ;;  %v1074_v40 = vld [vmem:[#allocation8 + $0xa38] sm:$0xff]  ;;  %v3988_v35 = vadd.f32 %v10353_v22, %v3945_v41  ;;  %v4202_v22 = vpop.f32.mrf.mxu1  ;;  %v9312_v41 = vld [vmem:[#allocation11 + $0x428] ss:$28 sps:$4 sm:$0xff]  }
 0x2f5   :  { %4528 = vmatprep.subr.bf16.mxu1 %v8706_v59  ;;  %v1198_v9 = vld [vmem:[#allocation8 + $0xe18] sm:$0xff]  ;;  %v4113_v59 = vadd.f32 %v10365_v0, %v4070_v23  ;;  %v8546_v38 = vcombine.high %v1070_v24, %v1074_v40  ;;  %v4027_v0 = vadd.f32 %v10346_v45, %v3984_v26  ;;  %v9314_v23 = vld [vmem:[#allocation11 + $0x42c] ss:$28 sps:$4 sm:$0xff]  }
 0x2f6   :  { %v1202_v36 = vld [vmem:[#allocation8 + $0xe38] sm:$0xff]  ;;  %v4031_v2 = vadd.f32 %v10355_v25, %v3988_v35  ;;  %v9288_v25 = vld [vmem:[#allocation11 + $0x508] ss:$28 sps:$4 sm:$0xff]  }
 0x2f7   :  { %4486 = vmatpush2.bf16.msra.mxu0 %v8577_v43  ;;  %v4156_v15 = vadd.f32 %v10377_v31, %v4113_v59  ;;  %v8674_v43 = vcombine.high %v1198_v9, %v1202_v36  ;;  %v4550_v6 = vmax.f32 %v4027_v0, 0.0  ;;  %v9296_v63 = vld [vmem:[#allocation11 + $0x4d4] ss:$28 sps:$4 sm:$0xff]   ;;  %v9329_v35 = vld [vmem:[#allocation11 + $0x4] ss:$28 sps:$4 sm:$0xff]  }
 0x2f8   :  { %4529 = vmatpush2.bf16.msra.mxu1 %v8705_v53  ;;  %4487 = vmatprep.subr.bf16.mxu0 %v8570_v30  ;;  %v4203_v53 = vadd.f32 %v4202_v22, %v4160_v48  ;;  %v8545_v30 = vcombine.low %v1070_v24, %v1074_v40  ;;  %v4558_v55 = vmax.f32 %v4031_v2, 0.0  ;;  %v9297_v46 = vld [vmem:[#allocation11 + $0x118] ss:$28 sps:$4 sm:$0xff]   ;;  %v9318_v8 = vld [vmem:[#allocation11 + $0x3f0] ss:$28 sps:$4 sm:$0xff]  }
 0x2f9   :  { %4530 = vmatprep.subr.bf16.mxu1 %v8698_v54  ;;  %v8673_v54 = vcombine.low %v1198_v9, %v1202_v36  ;;  %v4199_v58 = vadd.f32 %v10380_v56, %v4156_v15  ;;  %v9291_v56 = vld [vmem:[#allocation11 + $0x150] ss:$28 sps:$4 sm:$0xff]   ;;  %v9326_v24 = vld [vmem:[#allocation11 + $0x3bc] ss:$28 sps:$4 sm:$0xff]   ;;  %v9332_v9 = vld [vmem:[#allocation11 + $0x384] ss:$28 sps:$4 sm:$0xff]  }
 0x2fa   :  { %v4560_v31 = vmax.f32 %v4203_v53, 0.0  ;;  %v10405_v45 = vpack.c.bf16 %v4558_v55, %v4550_v6  ;;  %v9317_v29 = vld [vmem:[#allocation11 + $0x74] ss:$28 sps:$4 sm:$0xff]   ;;  %v9327_v36 = vld [vmem:[#allocation11] ss:$28 sps:$4 sm:$0xff]  }
 0x2fb   :  { %4488 = vmatpush2.bf16.msra.mxu0 %v8569_v1  ;;  %v4552_v62 = vmax.f32 %v4199_v58, 0.0  ;;  %v9293_v1 = vld [vmem:[#allocation11 + $0x154] ss:$28 sps:$4 sm:$0xff]   ;;  %v9330_v59 = vld [vmem:[#allocation11 + $0x380] ss:$28 sps:$4 sm:$0xff]  }
 0x2fc   :  { %4531 = vmatpush2.bf16.msra.mxu1 %v8697_v7  ;;  %4489 = vmatprep.subr.bf16.mxu0 %v8562_v11  ;;  %v9294_v11 = vld [vmem:[#allocation11 + $0x4d0] ss:$28 sps:$4 sm:$0xff]   ;;  %v9321_v40 = vld [vmem:[#allocation11 + $0x38] ss:$28 sps:$4 sm:$0xff]   ;;  %v9333_v26 = vld [vmem:[#allocation11 + $0x348] ss:$28 sps:$4 sm:$0xff]  }
 0x2fd   :  { %4532 = vmatprep.subr.bf16.mxu1 %v8690_v19  ;;  %v10408_v7 = vpack.c.bf16 %v4560_v31, %v4552_v62  ;;  %v9302_v19 = vld [vmem:[#allocation11 + $0x49c] ss:$28 sps:$4 sm:$0xff]   ;;  %v9335_v48 = vld [vmem:[#allocation11 + $0x34c] ss:$28 sps:$4 sm:$0xff]   ;;  %v9344_v15 = vld [vmem:[#allocation11 + $0x694] ss:$28 sps:$4 sm:$0xff]  }
 0x2fe   :  { %v9324_v49 = vld [vmem:[#allocation11 + $0x3b8] ss:$28 sps:$4 sm:$0xff]   ;;  %v9342_v2 = vld [vmem:[#allocation11 + $0x690] ss:$28 sps:$4 sm:$0xff]   ;;  %v9351_v58 = vld [vmem:[#allocation11 + $0x2a0] ss:$28 sps:$4 sm:$0xff]  }
 0x2ff   :  { %4490 = vmatpush2.bf16.msra.mxu0 %v8561_v28  ;;  %v9309_v28 = vld [vmem:[#allocation11 + $0xa8] ss:$28 sps:$4 sm:$0xff]   ;;  %v9347_v22 = vld [vmem:[#allocation11 + $0x2dc] ss:$28 sps:$4 sm:$0xff]   ;;  %v9368_v62 = vld [vmem:[#allocation11 + $0x5b4] ss:$28 sps:$4 sm:$0xff]  }
 0x300   :  { %4533 = vmatpush2.bf16.msra.mxu1 %v8689_v32  ;;  %4491 = vmatprep.subr.bf16.mxu0 %v8554_v33  ;;  %v9320_v32 = vld [vmem:[#allocation11 + $0x3f4] ss:$28 sps:$4 sm:$0xff]   ;;  %v9350_v53 = vld [vmem:[#allocation11 + $0x65c] ss:$28 sps:$4 sm:$0xff]   ;;  %v9359_v55 = vld [vmem:[#allocation11 + $0x26c] ss:$28 sps:$4 sm:$0xff]  }
 0x301   :  { %4534 = vmatprep.subr.bf16.mxu1 %v8682_v34  ;;  %v9315_v33 = vld [vmem:[#allocation11 + $0x70] ss:$28 sps:$4 sm:$0xff]   ;;  %v9323_v34 = vld [vmem:[#allocation11 + $0x3c] ss:$28 sps:$4 sm:$0xff]   ;;  %v9360_v6 = vld [vmem:[#allocation11 + $0x5e8] ss:$28 sps:$4 sm:$0xff]  }
 0x302   :  { %v9348_v0 = vld [vmem:[#allocation11 + $0x658] ss:$28 sps:$4 sm:$0xff]   ;;  %v9362_v31 = vld [vmem:[#allocation11 + $0x5ec] ss:$28 sps:$4 sm:$0xff]  }
 0x303   :  { %4492 = vmatpush2.bf16.msra.mxu0 %v8553_v37  ;;  %v9338_v37 = vld [vmem:[#allocation11 + $0x6cc] ss:$28 sps:$4 sm:$0xff]  }
 0x304   :  { %4535 = vmatpush2.bf16.msra.mxu1 %v8681_v51  ;;  %4493 = vmatprep.subr.bf16.mxu0 %v8546_v38  ;;  %v9336_v51 = vld [vmem:[#allocation11 + $0x6c8] ss:$28 sps:$4 sm:$0xff]   ;;  %v9341_v38 = vld [vmem:[#allocation11 + $0x314] ss:$28 sps:$4 sm:$0xff]  }
 0x305   :  { %4536 = vmatprep.subr.bf16.mxu1 %v8674_v43  ;;  %v9339_v43 = vld [vmem:[#allocation11 + $0x310] ss:$28 sps:$4 sm:$0xff]  }
 0x307   :  { %4494 = vmatpush2.bf16.msra.mxu0 %v8545_v30  ;;  %v9345_v30 = vld [vmem:[#allocation11 + $0x2d8] ss:$28 sps:$4 sm:$0xff]  }
 0x308   :  { %4537 = vmatpush2.bf16.msra.mxu1 %v8673_v54  ;;  %7426 = vmatprep.subr.bf16.mxu0 %v9287_v4  ;;  %v9353_v54 = vld [vmem:[#allocation11 + $0x2a4] ss:$28 sps:$4 sm:$0xff]  }
 0x309   :  { %7469 = vmatprep.subr.bf16.mxu1 %v9290_v60  ;;  %v9356_v4 = vld [vmem:[#allocation11 + $0x624] ss:$28 sps:$4 sm:$0xff]  }
 0x30a   :  { %4496 = vmatmul.mubr.bf16.vlgmr.msra.gmra.mxu0 %v10307_v3  ;;  %v9300_v3 = vld [vmem:[#allocation11 + $0x498] ss:$28 sps:$4 sm:$0xff]   ;;  %v9354_v60 = vld [vmem:[#allocation11 + $0x620] ss:$28 sps:$4 sm:$0xff]  }
 0x30b   :  { %4539 = vmatmul.mubr.bf16.vlgmr.msra.gmra.mxu1 %v10309_v5  ;;  %7427 = vmatpush1.bf16.msra.mxu0 %v9285_v61  ;;  %v9308_v5 = vld [vmem:[#allocation11 + $0x464] ss:$28 sps:$4 sm:$0xff]  }
 0x30c   :  { %7458 = vmatprep.mubr.bf16.mxu0 %v10405_v45  ;;  %7470 = vmatpush1.bf16.msra.mxu1 %v9288_v25  ;;  %v9357_v61 = vld [vmem:[#allocation11 + $0x268] ss:$28 sps:$4 sm:$0xff]   ;;  %v9365_v25 = vld [vmem:[#allocation11 + $0x234] ss:$28 sps:$4 sm:$0xff]  }
 0x30d   :  { %7501 = vmatprep.mubr.bf16.mxu1 %v10408_v7  ;;  %7428 = vmatprep.subr.bf16.mxu0 %v9293_v1  ;;  %v9363_v1 = vld [vmem:[#allocation11 + $0x230] ss:$28 sps:$4 sm:$0xff]  }
 0x30e   :  { %7471 = vmatprep.subr.bf16.mxu1 %v9296_v63  ;;  %v10413_v63 = vpop.f32.mrf.mxu0 }
 0x30f   :  { %7429 = vmatpush1.bf16.msra.mxu0 %v9291_v56  ;;  %v9366_v56 = vld [vmem:[#allocation11 + $0x5b0] ss:$28 sps:$4 sm:$0xff]  }
 0x310   :  { %7472 = vmatpush1.bf16.msra.mxu1 %v9294_v11  ;;  %7430 = vmatprep.subr.bf16.mxu0 %v9299_v42  ;;  %v9371_v11 = vld [vmem:[#allocation11 + $0x1fc] ss:$28 sps:$4 sm:$0xff]   ;;  %v10415_v42 = vpop.f32.mrf.mxu1 }
 0x311   :  { %7473 = vmatprep.subr.bf16.mxu1 %v9302_v19  ;;  %v9374_v19 = vld [vmem:[#allocation11 + $0x57c] ss:$28 sps:$4 sm:$0xff]  }
 0x313   :  { %7431 = vmatpush1.bf16.msra.mxu0 %v9297_v46  ;;  %v9369_v46 = vld [vmem:[#allocation11 + $0x1f8] ss:$28 sps:$4 sm:$0xff]  }
 0x314   :  { %7474 = vmatpush1.bf16.msra.mxu1 %v9300_v3  ;;  %7432 = vmatprep.subr.bf16.mxu0 %v9305_v47  ;;  %v4241_v3 = vpop.f32.mrf.mxu0  ;;  %v9372_v47 = vld [vmem:[#allocation11 + $0x578] ss:$28 sps:$4 sm:$0xff]  }
 0x315   :  { %7475 = vmatprep.subr.bf16.mxu1 %v9308_v5  ;;  %v9377_v5 = vld [vmem:[#allocation11 + $0x1c4] ss:$28 sps:$4 sm:$0xff]  }
 0x317   :  { %7433 = vmatpush1.bf16.msra.mxu0 %v9303_v52  ;;  %v4284_v52 = vpop.f32.mrf.mxu1 }
 0x318   :  { %7476 = vmatpush1.bf16.msra.mxu1 %v9306_v20  ;;  %7434 = vmatprep.subr.bf16.mxu0 %v9311_v21  ;;  %v9380_v20 = vld [vmem:[#allocation11 + $0x544] ss:$28 sps:$4 sm:$0xff]   ;;  %v1284_v21 = vrot.slane %v10385_v50, %v10271_v27 }
 0x319   :  { %7477 = vmatprep.subr.bf16.mxu1 %v9314_v23  ;;  %v9375_v23 = vld [vmem:[#allocation11 + $0x1c0] ss:$28 sps:$4 sm:$0xff]  }
 0x31b   :  { %7435 = vmatpush1.bf16.msra.mxu0 %v9309_v28  ;;  %v10419_v28 = vpop.f32.mrf.mxu0 }
 0x31c   :  { %7478 = vmatpush1.bf16.msra.mxu1 %v9312_v41  ;;  %7436 = vmatprep.subr.bf16.mxu0 %v9317_v29  ;;  %v9378_v41 = vld [vmem:[#allocation11 + $0x540] ss:$28 sps:$4 sm:$0xff]   ;;  %v9383_v29 = vld [vmem:[#allocation11 + $0x88c] ss:$28 sps:$4 sm:$0xff]  }
 0x31d   :  { %7479 = vmatprep.subr.bf16.mxu1 %v9320_v32  ;;  %v10421_v32 = vpop.f32.mrf.mxu1 }
 0x31f   :  { %7437 = vmatpush1.bf16.msra.mxu0 %v9315_v33  ;;  %v9443_v33 = vld [vmem:[#allocation11 + $0xc0c] ss:$28 sps:$4 sm:$0xff]  }
 0x320   :  { %7480 = vmatpush1.bf16.msra.mxu1 %v9318_v8  ;;  %7438 = vmatprep.subr.bf16.mxu0 %v9323_v34  ;;  %v4242_v8 = vadd.f32 %v4241_v3, %v1284_v21  ;;  %v9381_v34 = vld [vmem:[#allocation11 + $0x888] ss:$28 sps:$4 sm:$0xff]  }
 0x321   :  { %7481 = vmatprep.subr.bf16.mxu1 %v9326_v24  ;;  %v4245_v24 = vpop.f32.mrf.mxu0 }
 0x323   :  { %7439 = vmatpush1.bf16.msra.mxu0 %v9321_v40  ;;  %v9386_v40 = vld [vmem:[#allocation11 + $0x854] ss:$28 sps:$4 sm:$0xff]  }
 0x324   :  { %7482 = vmatpush1.bf16.msra.mxu1 %v9324_v49  ;;  %7440 = vmatprep.subr.bf16.mxu0 %v9329_v35  ;;  %v9441_v49 = vld [vmem:[#allocation11 + $0xc08] ss:$28 sps:$4 sm:$0xff]   ;;  %v4288_v35 = vpop.f32.mrf.mxu1 }
 0x325   :  { %7483 = vmatprep.subr.bf16.mxu1 %v9332_v9  ;;  %v9449_v9 = vld [vmem:[#allocation11 + $0xbd4] ss:$28 sps:$4 sm:$0xff]  }
 0x327   :  { %7441 = vmatpush1.bf16.msra.mxu0 %v9327_v36 }
 0x328   :  { %7484 = vmatpush1.bf16.msra.mxu1 %v9330_v59  ;;  %7442 = vmatprep.subr.bf16.mxu0 %v9335_v48  ;;  %v4285_v59 = vadd.f32 %v4284_v52, %v4242_v8  ;;  %v4246_v48 = vadd.f32 %v4245_v24, %v1284_v21  ;;  %v9465_v52 = vld [vmem:[#allocation11 + $0xb28] ss:$28 sps:$4 sm:$0xff]   ;;  %v9396_v21 = vld [vmem:[#allocation11 + $0x770] ss:$28 sps:$4 sm:$0xff]  }
 0x329   :  { %7485 = vmatprep.subr.bf16.mxu1 %v9338_v37  ;;  %v9404_v8 = vld [vmem:[#allocation11 + $0x704] ss:$28 sps:$4 sm:$0xff]  }
 0x32a   :  { %v9485_v24 = vld [vmem:[#allocation11 + $0xa84] ss:$28 sps:$4 sm:$0xff]  }
 0x32b   :  { %7443 = vmatpush2.bf16.msra.mxu0 %v9333_v26  ;;  %v9384_v26 = vld [vmem:[#allocation11 + $0x850] ss:$28 sps:$4 sm:$0xff]  }
 0x32c   :  { %7486 = vmatpush2.bf16.msra.mxu1 %v9336_v51  ;;  %7444 = vmatprep.subr.bf16.mxu0 %v9341_v38  ;;  %v9389_v38 = vld [vmem:[#allocation11 + $0x81c] ss:$28 sps:$4 sm:$0xff]  }
 0x32d   :  { %7487 = vmatprep.subr.bf16.mxu1 %v9344_v15  ;;  %v9447_v15 = vld [vmem:[#allocation11 + $0xbd0] ss:$28 sps:$4 sm:$0xff]  }
 0x32f   :  { %7445 = vmatpush2.bf16.msra.mxu0 %v9339_v43 }
 0x330   :  { %7488 = vmatpush2.bf16.msra.mxu1 %v9342_v2  ;;  %7446 = vmatprep.subr.bf16.mxu0 %v9347_v22  ;;  %v9455_v22 = vld [vmem:[#allocation11 + $0xb9c] ss:$28 sps:$4 sm:$0xff]  }
 0x331   :  { %7489 = vmatprep.subr.bf16.mxu1 %v9350_v53 }
 0x333   :  { %7447 = vmatpush2.bf16.msra.mxu0 %v9345_v30  ;;  %v4289_v30 = vadd.f32 %v4288_v35, %v4246_v48  ;;  %v9483_v35 = vld [vmem:[#allocation11 + $0xa80] ss:$28 sps:$4 sm:$0xff]   ;;  %v9410_v48 = vld [vmem:[#allocation11 + $0xa14] ss:$28 sps:$4 sm:$0xff]  }
 0x334   :  { %7490 = vmatpush2.bf16.msra.mxu1 %v9348_v0  ;;  %7448 = vmatprep.subr.bf16.mxu0 %v9353_v54  ;;  %v9387_v54 = vld [vmem:[#allocation11 + $0x818] ss:$28 sps:$4 sm:$0xff]  }
 0x335   :  { %7491 = vmatprep.subr.bf16.mxu1 %v9356_v4 }
 0x337   :  { %7449 = vmatpush2.bf16.msra.mxu0 %v9351_v58  ;;  %v9392_v58 = vld [vmem:[#allocation11 + $0x7e4] ss:$28 sps:$4 sm:$0xff]  }
 0x338   :  { %7492 = vmatpush2.bf16.msra.mxu1 %v9354_v60  ;;  %7450 = vmatprep.subr.bf16.mxu0 %v9359_v55  ;;  %v9453_v60 = vld [vmem:[#allocation11 + $0xb98] ss:$28 sps:$4 sm:$0xff]  }
 0x339   :  { %7493 = vmatprep.subr.bf16.mxu1 %v9362_v31 }
 0x33b   :  { %7451 = vmatpush2.bf16.msra.mxu0 %v9357_v61  ;;  %v9461_v61 = vld [vmem:[#allocation11 + $0xb64] ss:$28 sps:$4 sm:$0xff]  }
 0x33c   :  { %7494 = vmatpush2.bf16.msra.mxu1 %v9360_v6  ;;  %7452 = vmatprep.subr.bf16.mxu0 %v9365_v25 }
 0x33d   :  { %7495 = vmatprep.subr.bf16.mxu1 %v9368_v62  ;;  %v9390_v62 = vld [vmem:[#allocation11 + $0x7e0] ss:$28 sps:$4 sm:$0xff]  }
 0x33f   :  { %7453 = vmatpush2.bf16.msra.mxu0 %v9363_v1  ;;  %v9395_v1 = vld [vmem:[#allocation11 + $0x7ac] ss:$28 sps:$4 sm:$0xff]  }
 0x340   :  { %7496 = vmatpush2.bf16.msra.mxu1 %v9366_v56  ;;  %7454 = vmatprep.subr.bf16.mxu0 %v9371_v11  ;;  %v9459_v56 = vld [vmem:[#allocation11 + $0xb60] ss:$28 sps:$4 sm:$0xff]  }
 0x341   :  { %7497 = vmatprep.subr.bf16.mxu1 %v9374_v19 }
 0x343   :  { %7455 = vmatpush2.bf16.msra.mxu0 %v9369_v46  ;;  %v9467_v46 = vld [vmem:[#allocation11 + $0xb2c] ss:$28 sps:$4 sm:$0xff]  }
 0x344   :  { %7498 = vmatpush2.bf16.msra.mxu1 %v9372_v47  ;;  %7456 = vmatprep.subr.bf16.mxu0 %v9377_v5  ;;  %v9393_v47 = vld [vmem:[#allocation11 + $0x7a8] ss:$28 sps:$4 sm:$0xff]   ;;  %v9398_v5 = vld [vmem:[#allocation11 + $0x774] ss:$28 sps:$4 sm:$0xff]  }
 0x345   :  { %7499 = vmatprep.subr.bf16.mxu1 %v9380_v20  ;;  %v9473_v20 = vld [vmem:[#allocation11 + $0xaf4] ss:$28 sps:$4 sm:$0xff]  }
 0x347   :  { %7457 = vmatpush2.bf16.msra.mxu0 %v9375_v23  ;;  %v9401_v23 = vld [vmem:[#allocation11 + $0x73c] ss:$28 sps:$4 sm:$0xff]  }
 0x348   :  { %7500 = vmatpush2.bf16.msra.mxu1 %v9378_v41  ;;  %7512 = vmatprep.subr.bf16.mxu0 %v9383_v29  ;;  %v9471_v41 = vld [vmem:[#allocation11 + $0xaf0] ss:$28 sps:$4 sm:$0xff]   ;;  %v9479_v29 = vld [vmem:[#allocation11 + $0xabc] ss:$28 sps:$4 sm:$0xff]  }
 0x349   :  { %7555 = vmatprep.subr.bf16.mxu1 %v9443_v33  ;;  %v9399_v33 = vld [vmem:[#allocation11 + $0x738] ss:$28 sps:$4 sm:$0xff]  }
 0x34a   :  { %v10423_v36 = vpop.f32.mrf.mxu0  ;;  %7459 = vmatmul.mubr.bf16.vlgmr.msra.gmra.mxu0 %v10349_v39 }
 0x34b   :  { %v10426_v37 = vpop.f32.mrf.mxu1  ;;  %7502 = vmatmul.mubr.bf16.vlgmr.msra.gmra.mxu1 %v10383_v57  ;;  %7513 = vmatpush1.bf16.msra.mxu0 %v9381_v34  ;;  %v9477_v34 = vld [vmem:[#allocation11 + $0xab8] ss:$28 sps:$4 sm:$0xff]  }
 0x34c   :  { %v4327_v51 = vpop.f32.mrf.mxu0  ;;  %7514 = vmatprep.subr.bf16.mxu0 %v9386_v40  ;;  %7556 = vmatpush1.bf16.msra.mxu1 %v9441_v49  ;;  %v9402_v40 = vld [vmem:[#allocation11 + $0x700] ss:$28 sps:$4 sm:$0xff]   ;;  %v9407_v49 = vld [vmem:[#allocation11 + $0xa4c] ss:$28 sps:$4 sm:$0xff]  }
 0x34d   :  { %v4328_v43 = vadd.f32 %v4327_v51, %v4285_v59  ;;  %v4370_v2 = vpop.f32.mrf.mxu1  ;;  %7557 = vmatprep.subr.bf16.mxu1 %v9449_v9  ;;  %v9491_v9 = vld [vmem:[#allocation11 + $0xdcc] ss:$28 sps:$4 sm:$0xff]   ;;  %v9497_v51 = vld [vmem:[#allocation11 + $0xd94] ss:$28 sps:$4 sm:$0xff]  }
 0x34e   :  { %v10429_v53 = vpop.f32.mrf.mxu0  ;;  %v9405_v59 = vld [vmem:[#allocation11 + $0xa48] ss:$28 sps:$4 sm:$0xff]  }
 0x34f   :  { %v10431_v0 = vpop.f32.mrf.mxu1  ;;  %7515 = vmatpush1.bf16.msra.mxu0 %v9384_v26  ;;  %v4371_v55 = vadd.f32 %v4370_v2, %v4328_v43  ;;  %v9489_v26 = vld [vmem:[#allocation11 + $0xdc8] ss:$28 sps:$4 sm:$0xff]   ;;  %v9495_v43 = vld [vmem:[#allocation11 + $0xd90] ss:$28 sps:$4 sm:$0xff]   ;;  %v9503_v2 = vld [vmem:[#allocation11 + $0xd5c] ss:$28 sps:$4 sm:$0xff]  }
 0x350   :  { %v4331_v4 = vpop.f32.mrf.mxu0  ;;  %7516 = vmatprep.subr.bf16.mxu0 %v9389_v38  ;;  %7558 = vmatpush1.bf16.msra.mxu1 %v9447_v15  ;;  %v9408_v38 = vld [vmem:[#allocation11 + $0xa10] ss:$28 sps:$4 sm:$0xff]   ;;  %v9413_v15 = vld [vmem:[#allocation11 + $0x9dc] ss:$28 sps:$4 sm:$0xff]  }
 0x351   :  { %v4332_v31 = vadd.f32 %v4331_v4, %v4289_v30  ;;  %7559 = vmatprep.subr.bf16.mxu1 %v9455_v22  ;;  %v4374_v6 = vpop.f32.mrf.mxu1  ;;  %v4554_v11 = vmax.f32 %v4371_v55, 0.0  ;;  %v9411_v22 = vld [vmem:[#allocation11 + $0x9d8] ss:$28 sps:$4 sm:$0xff]   ;;  %v9416_v30 = vld [vmem:[#allocation11 + $0x9a4] ss:$28 sps:$4 sm:$0xff]  }
 0x352   :  { %v9509_v4 = vld [vmem:[#allocation11 + $0xd24] ss:$28 sps:$4 sm:$0xff]   ;;  %v9419_v55 = vld [vmem:[#allocation11 + $0x96c] ss:$28 sps:$4 sm:$0xff]  }
 0x353   :  { %v4375_v25 = vadd.f32 %v4374_v6, %v4332_v31  ;;  %7517 = vmatpush1.bf16.msra.mxu0 %v9387_v54  ;;  %v9501_v54 = vld [vmem:[#allocation11 + $0xd58] ss:$28 sps:$4 sm:$0xff]   ;;  %v9507_v31 = vld [vmem:[#allocation11 + $0xd20] ss:$28 sps:$4 sm:$0xff]  }
 0x354   :  { %7518 = vmatprep.subr.bf16.mxu0 %v9392_v58  ;;  %7560 = vmatpush1.bf16.msra.mxu1 %v9453_v60  ;;  %v9414_v58 = vld [vmem:[#allocation11 + $0x9a0] ss:$28 sps:$4 sm:$0xff]   ;;  %v1280_v60 = vrot.slane %v10385_v50, %v10294_v44 }
 0x355   :  { %v4562_v19 = vmax.f32 %v4375_v25, 0.0  ;;  %7561 = vmatprep.subr.bf16.mxu1 %v9461_v61  ;;  %v9515_v61 = vld [vmem:[#allocation11 + $0xcec] ss:$28 sps:$4 sm:$0xff]  }
 0x356   :  { %v4244_v6 = vadd.f32 %v10419_v28, %v1280_v60  ;;  %v9417_v25 = vld [vmem:[#allocation11 + $0x968] ss:$28 sps:$4 sm:$0xff]   ;;  %v9425_v28 = vld [vmem:[#allocation11 + $0x8fc] ss:$28 sps:$4 sm:$0xff]  }
 0x357   :  { %v10433_v3 = vpack.c.bf16 %v4562_v19, %v4554_v11  ;;  %7519 = vmatpush1.bf16.msra.mxu0 %v9390_v62  ;;  %v4240_v62 = vadd.f32 %v10413_v63, %v1280_v60  ;;  %v9521_v11 = vld [vmem:[#allocation11 + $0xcb4] ss:$28 sps:$4 sm:$0xff]   ;;  %v9527_v63 = vld [vmem:[#allocation11 + $0xc7c] ss:$28 sps:$4 sm:$0xff]  }
 0x358   :  { %7520 = vmatprep.subr.bf16.mxu0 %v9395_v1  ;;  %7562 = vmatpush1.bf16.msra.mxu1 %v9459_v56  ;;  %v9422_v1 = vld [vmem:[#allocation11 + $0x934] ss:$28 sps:$4 sm:$0xff]   ;;  %v9513_v56 = vld [vmem:[#allocation11 + $0xce8] ss:$28 sps:$4 sm:$0xff]   ;;  %v4287_v19 = vadd.f32 %v10421_v32, %v4244_v6 }
 0x359   :  { %7544 = vmatprep.mubr.bf16.mxu0 %v10433_v3  ;;  %7563 = vmatprep.subr.bf16.mxu1 %v9467_v46  ;;  %v9420_v46 = vld [vmem:[#allocation11 + $0x930] ss:$28 sps:$4 sm:$0xff]   ;;  %v9428_v32 = vld [vmem:[#allocation11 + $0x8c4] ss:$28 sps:$4 sm:$0xff]   ;;  %v9474_v60 = vld [vmem:[#allocation11 + $0x318] ss:$28 sps:$4 sm:$0xff]  }
 0x35a   :  { %v9486_v6 = vld [vmem:[#allocation11 + $0x2a8] ss:$28 sps:$4 sm:$0xff]  }
 0x35b   :  { %7521 = vmatpush1.bf16.msra.mxu0 %v9393_v47  ;;  %v4283_v47 = vadd.f32 %v10415_v42, %v4240_v62  ;;  %v9533_v42 = vld [vmem:[#allocation11 + $0xc44] ss:$28 sps:$4 sm:$0xff]   ;;  %v9492_v62 = vld [vmem:[#allocation11 + $0x270] ss:$28 sps:$4 sm:$0xff]  }
 0x35c   :  { %7522 = vmatprep.subr.bf16.mxu0 %v9398_v5  ;;  %7564 = vmatpush1.bf16.msra.mxu1 %v9465_v52  ;;  %v4330_v5 = vadd.f32 %v10429_v53, %v4287_v19  ;;  %v9519_v52 = vld [vmem:[#allocation11 + $0xcb0] ss:$28 sps:$4 sm:$0xff]   ;;  %v9506_v19 = vld [vmem:[#allocation11 + $0x204] ss:$28 sps:$4 sm:$0xff]  }
 0x35d   :  { %7565 = vmatprep.subr.bf16.mxu1 %v9473_v20  ;;  %v4326_v20 = vadd.f32 %v10423_v36, %v4283_v47  ;;  %v9539_v36 = vld [vmem:[#allocation11 + $0x514] ss:$28 sps:$4 sm:$0xff]   ;;  %v9504_v47 = vld [vmem:[#allocation11 + $0x200] ss:$28 sps:$4 sm:$0xff]  }
 0x35f   :  { %7523 = vmatpush1.bf16.msra.mxu0 %v9396_v21  ;;  %v9423_v21 = vld [vmem:[#allocation11 + $0x8f8] ss:$28 sps:$4 sm:$0xff]   ;;  %v4369_v53 = vadd.f32 %v10426_v37, %v4326_v20  ;;  %v9510_v20 = vld [vmem:[#allocation11 + $0x1c8] ss:$28 sps:$4 sm:$0xff]  }
 0x360   :  { %7524 = vmatprep.subr.bf16.mxu0 %v9401_v23  ;;  %7566 = vmatpush1.bf16.msra.mxu1 %v9471_v41  ;;  %v4373_v23 = vadd.f32 %v10431_v0, %v4330_v5  ;;  %v9525_v41 = vld [vmem:[#allocation11 + $0xc78] ss:$28 sps:$4 sm:$0xff]   ;;  %v9429_v0 = vld [vmem:[#allocation11 + $0x190] ss:$28 sps:$4 sm:$0xff]  }
 0x361   :  { %7567 = vmatprep.subr.bf16.mxu1 %v9479_v29  ;;  %v9426_v29 = vld [vmem:[#allocation11 + $0x8c0] ss:$28 sps:$4 sm:$0xff]   ;;  %v9432_v37 = vld [vmem:[#allocation11 + $0x158] ss:$28 sps:$4 sm:$0xff]  }
 0x363   :  { %7525 = vmatpush1.bf16.msra.mxu0 %v9399_v33  ;;  %v4561_v33 = vmax.f32 %v4373_v23, 0.0 }
 0x364   :  { %7526 = vmatprep.subr.bf16.mxu0 %v9404_v8  ;;  %7568 = vmatpush1.bf16.msra.mxu1 %v9477_v34  ;;  %v9431_v8 = vld [vmem:[#allocation11 + $0x194] ss:$28 sps:$4 sm:$0xff]   ;;  %v9531_v34 = vld [vmem:[#allocation11 + $0xc40] ss:$28 sps:$4 sm:$0xff]  }
 0x365   :  { %7569 = vmatprep.subr.bf16.mxu1 %v9485_v24  ;;  %v4553_v24 = vmax.f32 %v4369_v53, 0.0  ;;  %v9516_v53 = vld [vmem:[#allocation11 + $0x890] ss:$28 sps:$4 sm:$0xff]  }
 0x367   :  { %7527 = vmatpush1.bf16.msra.mxu0 %v9402_v40  ;;  %v10446_v40 = vpack.c.bf16 %v4561_v33, %v4553_v24 }
 0x368   :  { %7528 = vmatprep.subr.bf16.mxu0 %v9407_v49  ;;  %7570 = vmatpush1.bf16.msra.mxu1 %v9483_v35  ;;  %v9434_v49 = vld [vmem:[#allocation11 + $0x15c] ss:$28 sps:$4 sm:$0xff]   ;;  %v9437_v35 = vld [vmem:[#allocation11 + $0x124] ss:$28 sps:$4 sm:$0xff]  }
 0x369   :  { %7571 = vmatprep.subr.bf16.mxu1 %v9491_v9  ;;  %v9435_v9 = vld [vmem:[#allocation11 + $0x120] ss:$28 sps:$4 sm:$0xff]  }
 0x36b   :  { %7529 = vmatpush2.bf16.msra.mxu0 %v9405_v59  ;;  %v9440_v59 = vld [vmem:[#allocation11 + $0xec] ss:$28 sps:$4 sm:$0xff]  }
 0x36c   :  { %7530 = vmatprep.subr.bf16.mxu0 %v9410_v48  ;;  %7572 = vmatpush2.bf16.msra.mxu1 %v9489_v26  ;;  %v9438_v48 = vld [vmem:[#allocation11 + $0xe8] ss:$28 sps:$4 sm:$0xff]   ;;  %v9446_v26 = vld [vmem:[#allocation11 + $0xb4] ss:$28 sps:$4 sm:$0xff]  }
 0x36d   :  { %7573 = vmatprep.subr.bf16.mxu1 %v9497_v51  ;;  %v9444_v51 = vld [vmem:[#allocation11 + $0xb0] ss:$28 sps:$4 sm:$0xff]  }
 0x36f   :  { %7531 = vmatpush2.bf16.msra.mxu0 %v9408_v38  ;;  %v9452_v38 = vld [vmem:[#allocation11 + $0x7c] ss:$28 sps:$4 sm:$0xff]  }
 0x370   :  { %7532 = vmatprep.subr.bf16.mxu0 %v9413_v15  ;;  %7574 = vmatpush2.bf16.msra.mxu1 %v9495_v43  ;;  %v9450_v15 = vld [vmem:[#allocation11 + $0x78] ss:$28 sps:$4 sm:$0xff]   ;;  %v9458_v43 = vld [vmem:[#allocation11 + $0x44] ss:$28 sps:$4 sm:$0xff]  }
 0x371   :  { %7575 = vmatprep.subr.bf16.mxu1 %v9503_v2  ;;  %v9456_v2 = vld [vmem:[#allocation11 + $0x40] ss:$28 sps:$4 sm:$0xff]  }
 0x373   :  { %7533 = vmatpush2.bf16.msra.mxu0 %v9411_v22  ;;  %v9464_v22 = vld [vmem:[#allocation11 + $0xc] ss:$28 sps:$4 sm:$0xff]  }
 0x374   :  { %7534 = vmatprep.subr.bf16.mxu0 %v9416_v30  ;;  %7576 = vmatpush2.bf16.msra.mxu1 %v9501_v54  ;;  %v9462_v30 = vld [vmem:[#allocation11 + $0x8] ss:$28 sps:$4 sm:$0xff]   ;;  %v9470_v54 = vld [vmem:[#allocation11 + $0x354] ss:$28 sps:$4 sm:$0xff]  }
 0x375   :  { %7577 = vmatprep.subr.bf16.mxu1 %v9509_v4  ;;  %v9468_v4 = vld [vmem:[#allocation11 + $0x350] ss:$28 sps:$4 sm:$0xff]  }
 0x377   :  { %7535 = vmatpush2.bf16.msra.mxu0 %v9414_v58  ;;  %v9476_v58 = vld [vmem:[#allocation11 + $0x31c] ss:$28 sps:$4 sm:$0xff]  }
 0x378   :  { %7536 = vmatprep.subr.bf16.mxu0 %v9419_v55  ;;  %7578 = vmatpush2.bf16.msra.mxu1 %v9507_v31  ;;  %v9482_v55 = vld [vmem:[#allocation11 + $0x2e4] ss:$28 sps:$4 sm:$0xff]  }
 0x379   :  { %7579 = vmatprep.subr.bf16.mxu1 %v9515_v61  ;;  %v9480_v31 = vld [vmem:[#allocation11 + $0x2e0] ss:$28 sps:$4 sm:$0xff]   ;;  %v9488_v61 = vld [vmem:[#allocation11 + $0x2ac] ss:$28 sps:$4 sm:$0xff]  }
 0x37b   :  { %7537 = vmatpush2.bf16.msra.mxu0 %v9417_v25  ;;  %v9494_v25 = vld [vmem:[#allocation11 + $0x274] ss:$28 sps:$4 sm:$0xff]  }
 0x37c   :  { %7538 = vmatprep.subr.bf16.mxu0 %v9422_v1  ;;  %7580 = vmatpush2.bf16.msra.mxu1 %v9513_v56  ;;  %v9500_v1 = vld [vmem:[#allocation11 + $0x23c] ss:$28 sps:$4 sm:$0xff]  }
 0x37d   :  { %7581 = vmatprep.subr.bf16.mxu1 %v9521_v11  ;;  %v9498_v56 = vld [vmem:[#allocation11 + $0x238] ss:$28 sps:$4 sm:$0xff]  }
 0x37f   :  { %7539 = vmatpush2.bf16.msra.mxu0 %v9420_v46 }
 0x380   :  { %7540 = vmatprep.subr.bf16.mxu0 %v9425_v28  ;;  %7582 = vmatpush2.bf16.msra.mxu1 %v9519_v52  ;;  %v9512_v28 = vld [vmem:[#allocation11 + $0x1cc] ss:$28 sps:$4 sm:$0xff]  }
 0x381   :  { %7583 = vmatprep.subr.bf16.mxu1 %v9527_v63  ;;  %v1292_v63 = vrot.slane %v10385_v50, %v215_v10 }
 0x383   :  { %7541 = vmatpush2.bf16.msra.mxu0 %v9423_v21  ;;  %v1288_v21 = vrot.slane %v10385_v50, %v10297_v12  ;;  %v9522_v50 = vld [vmem:[#allocation11 + $0x858] ss:$28 sps:$4 sm:$0xff]  }
 0x384   :  { %7542 = vmatprep.subr.bf16.mxu0 %v9428_v32  ;;  %7584 = vmatpush2.bf16.msra.mxu1 %v9525_v41  ;;  %v9518_v32 = vld [vmem:[#allocation11 + $0x894] ss:$28 sps:$4 sm:$0xff]  }
 0x385   :  { %7585 = vmatprep.subr.bf16.mxu1 %v9533_v42 }
 0x387   :  { %7543 = vmatpush2.bf16.msra.mxu0 %v9426_v29 }
 0x388   :  { %7598 = vmatprep.subr.bf16.mxu0 %v9431_v8  ;;  %7586 = vmatpush2.bf16.msra.mxu1 %v9531_v34  ;;  %v9524_v8 = vld [vmem:[#allocation11 + $0x85c] ss:$28 sps:$4 sm:$0xff]  }
 0x389   :  { %7641 = vmatprep.subr.bf16.mxu1 %v9539_v36 }
 0x38a   :  { %7545 = vmatmul.mubr.bf16.vlgmr.msra.gmra.mxu0 %v10446_v40  ;;  %v4411_v11 = vpop.f32.mrf.mxu0 }
 0x38b   :  { %7599 = vmatpush1.bf16.msra.mxu0 %v9429_v0  ;;  %7630 = vmatprep.mubr.bf16.mxu0 %v10405_v45  ;;  %v4454_v46 = vpop.f32.mrf.mxu1  ;;  %v4412_v29 = vadd.f32 %v4411_v11, %v1288_v21 }
 0x38c   :  { %7600 = vmatprep.subr.bf16.mxu0 %v9434_v49  ;;  %v4413_v5 = vpop.f32.mrf.mxu0 }
 0x38d   :  { %v4456_v52 = vpop.f32.mrf.mxu1  ;;  %v4414_v42 = vadd.f32 %v4413_v5, %v1292_v63  ;;  %v4455_v49 = vadd.f32 %v4454_v46, %v4412_v29  ;;  %v9545_v5 = vld [vmem:[#allocation11 + $0x4dc] ss:$28 sps:$4 sm:$0xff]   ;;  %v9558_v29 = vld [vmem:[#allocation11 + $0x708] ss:$28 sps:$4 sm:$0xff]  }
 0x38e   :  { %v4415_v23 = vpop.f32.mrf.mxu0 }
 0x38f   :  { %7601 = vmatpush1.bf16.msra.mxu0 %v9432_v37  ;;  %v4458_v41 = vpop.f32.mrf.mxu1  ;;  %v4416_v34 = vadd.f32 %v4415_v23, %v1288_v21  ;;  %v4457_v10 = vadd.f32 %v4456_v52, %v4414_v42  ;;  %v9543_v52 = vld [vmem:[#allocation11 + $0x4d8] ss:$28 sps:$4 sm:$0xff]   ;;  %v9554_v21 = vld [vmem:[#allocation11 + $0x744] ss:$28 sps:$4 sm:$0xff]   ;;  %v9560_v42 = vld [vmem:[#allocation11 + $0x70c] ss:$28 sps:$4 sm:$0xff]  }
 0x390   :  { %7602 = vmatprep.subr.bf16.mxu0 %v9437_v35  ;;  %v4417_v33 = vpop.f32.mrf.mxu0  ;;  %v9530_v35 = vld [vmem:[#allocation11 + $0x824] ss:$28 sps:$4 sm:$0xff]  }
 0x391   :  { %v4460_v13 = vpop.f32.mrf.mxu1  ;;  %v4418_v24 = vadd.f32 %v4417_v33, %v1292_v63  ;;  %v9546_v63 = vld [vmem:[#allocation11 + $0x778] ss:$28 sps:$4 sm:$0xff]   ;;  %v9549_v23 = vld [vmem:[#allocation11 + $0x4a0] ss:$28 sps:$4 sm:$0xff]  }
 0x392   :  { %v9563_v33 = vld [vmem:[#allocation11 + $0x434] ss:$28 sps:$4 sm:$0xff]  }
 0x393   :  { %7603 = vmatpush1.bf16.msra.mxu0 %v9435_v9  ;;  %v4459_v9 = vadd.f32 %v4458_v41, %v4416_v34  ;;  %v9557_v41 = vld [vmem:[#allocation11 + $0x46c] ss:$28 sps:$4 sm:$0xff]  }
 0x394   :  { %7604 = vmatprep.subr.bf16.mxu0 %v9440_v59  ;;  %v9561_v34 = vld [vmem:[#allocation11 + $0x430] ss:$28 sps:$4 sm:$0xff]  }
 0x397   :  { %7605 = vmatpush1.bf16.msra.mxu0 %v9438_v48 }
 0x398   :  { %7606 = vmatprep.subr.bf16.mxu0 %v9446_v26 }
 0x39b   :  { %7607 = vmatpush1.bf16.msra.mxu0 %v9444_v51 }
 0x39c   :  { %7608 = vmatprep.subr.bf16.mxu0 %v9452_v38  ;;  %v4461_v38 = vadd.f32 %v4460_v13, %v4418_v24  ;;  %v9564_v13 = vld [vmem:[#allocation11 + $0xa50] ss:$28 sps:$4 sm:$0xff]   ;;  %v9567_v24 = vld [vmem:[#allocation11 + $0x3f8] ss:$28 sps:$4 sm:$0xff]  }
 0x39f   :  { %7609 = vmatpush1.bf16.msra.mxu0 %v9450_v15 }
 0x3a0   :  { %7610 = vmatprep.subr.bf16.mxu0 %v9458_v43 }
 0x3a3   :  { %7611 = vmatpush1.bf16.msra.mxu0 %v9456_v2  ;;  %v9528_v2 = vld [vmem:[#allocation11 + $0x820] ss:$28 sps:$4 sm:$0xff]  }
 0x3a4   :  { %7612 = vmatprep.subr.bf16.mxu0 %v9464_v22 }
 0x3a7   :  { %7613 = vmatpush1.bf16.msra.mxu0 %v9462_v30  ;;  %v9536_v30 = vld [vmem:[#allocation11 + $0x7ec] ss:$28 sps:$4 sm:$0xff]  }
 0x3a8   :  { %7614 = vmatprep.subr.bf16.mxu0 %v9470_v54 }
 0x3ab   :  { %7615 = vmatpush2.bf16.msra.mxu0 %v9468_v4 }
 0x3ac   :  { %7616 = vmatprep.subr.bf16.mxu0 %v9476_v58 }
 0x3af   :  { %7617 = vmatpush2.bf16.msra.mxu0 %v9474_v60 }
 0x3b0   :  { %7618 = vmatprep.subr.bf16.mxu0 %v9482_v55 }
 0x3b3   :  { %7619 = vmatpush2.bf16.msra.mxu0 %v9480_v31 }
 0x3b4   :  { %7620 = vmatprep.subr.bf16.mxu0 %v9488_v61  ;;  %v9534_v61 = vld [vmem:[#allocation11 + $0x7e8] ss:$28 sps:$4 sm:$0xff]  }
 0x3b7   :  { %7621 = vmatpush2.bf16.msra.mxu0 %v9486_v6 }
 0x3b8   :  { %7622 = vmatprep.subr.bf16.mxu0 %v9494_v25  ;;  %v9542_v25 = vld [vmem:[#allocation11 + $0x7b4] ss:$28 sps:$4 sm:$0xff]  }
 0x3bb   :  { %7623 = vmatpush2.bf16.msra.mxu0 %v9492_v62 }
 0x3bc   :  { %7624 = vmatprep.subr.bf16.mxu0 %v9500_v1 }
 0x3bf   :  { %7625 = vmatpush2.bf16.msra.mxu0 %v9498_v56 }
 0x3c0   :  { %7626 = vmatprep.subr.bf16.mxu0 %v9506_v19  ;;  %v9537_v19 = vld [vmem:[#allocation11 + $0x510] ss:$28 sps:$4 sm:$0xff]  }
 0x3c3   :  { %7627 = vmatpush2.bf16.msra.mxu0 %v9504_v47  ;;  %v9540_v47 = vld [vmem:[#allocation11 + $0x7b0] ss:$28 sps:$4 sm:$0xff]  }
 0x3c4   :  { %7628 = vmatprep.subr.bf16.mxu0 %v9512_v28  ;;  %v9548_v28 = vld [vmem:[#allocation11 + $0x77c] ss:$28 sps:$4 sm:$0xff]  }
 0x3c7   :  { %7629 = vmatpush2.bf16.msra.mxu0 %v9510_v20  ;;  %v9551_v20 = vld [vmem:[#allocation11 + $0x4a4] ss:$28 sps:$4 sm:$0xff]  }
 0x3c8   :  { %7684 = vmatprep.subr.bf16.mxu0 %v9518_v32  ;;  %v9552_v32 = vld [vmem:[#allocation11 + $0x740] ss:$28 sps:$4 sm:$0xff]  }
 0x3ca   :  { %v4497_v36 = vpop.f32.mrf.mxu0  ;;  %7631 = vmatmul.mubr.bf16.vlgmr.msra.gmra.mxu0 %v10349_v39 }
 0x3cb   :  { %v4540_v0 = vpop.f32.mrf.mxu1  ;;  %7685 = vmatpush1.bf16.msra.mxu0 %v9516_v53  ;;  %7716 = vmatprep.mubr.bf16.mxu0 %v10433_v3  ;;  %v4498_v26 = vadd.f32 %v4497_v36, %v4455_v49  ;;  %v9555_v53 = vld [vmem:[#allocation11 + $0x468] ss:$28 sps:$4 sm:$0xff]   ;;  %v9569_v36 = vld [vmem:[#allocation11 + $0x3fc] ss:$28 sps:$4 sm:$0xff]  }
 0x3cc   :  { %v4499_v37 = vpop.f32.mrf.mxu0  ;;  %7686 = vmatprep.subr.bf16.mxu0 %v9524_v8  ;;  %v9566_v8 = vld [vmem:[#allocation11 + $0xa54] ss:$28 sps:$4 sm:$0xff]   ;;  %v9578_v49 = vld [vmem:[#allocation11 + $0x9e4] ss:$28 sps:$4 sm:$0xff]  }
 0x3cd   :  { %v4500_v59 = vadd.f32 %v4499_v37, %v4457_v10  ;;  %v4542_v48 = vpop.f32.mrf.mxu1  ;;  %v4541_v60 = vadd.f32 %v4540_v0, %v4498_v26  ;;  %v9572_v10 = vld [vmem:[#allocation11 + $0xa1c] ss:$28 sps:$4 sm:$0xff]   ;;  %v9582_v26 = vld [vmem:[#allocation11 + $0x9a8] ss:$28 sps:$4 sm:$0xff]  }
 0x3ce   :  { %v4501_v51 = vpop.f32.mrf.mxu0  ;;  %v9570_v0 = vld [vmem:[#allocation11 + $0xa18] ss:$28 sps:$4 sm:$0xff]   ;;  %v9573_v37 = vld [vmem:[#allocation11 + $0x3c0] ss:$28 sps:$4 sm:$0xff]  }
 0x3cf   :  { %v4502_v15 = vadd.f32 %v4501_v51, %v4459_v9  ;;  %v4544_v43 = vpop.f32.mrf.mxu1  ;;  %7687 = vmatpush1.bf16.msra.mxu0 %v9522_v50  ;;  %v4543_v54 = vadd.f32 %v4542_v48, %v4500_v59  ;;  %v4555_v56 = vmax.f32 %v4541_v60, 0.0  ;;  %v9575_v50 = vld [vmem:[#allocation11 + $0x3c4] ss:$28 sps:$4 sm:$0xff]   ;;  %v9581_v9 = vld [vmem:[#allocation11 + $0x38c] ss:$28 sps:$4 sm:$0xff]  }
 0x3d0   :  { %v4503_v22 = vpop.f32.mrf.mxu0  ;;  %7688 = vmatprep.subr.bf16.mxu0 %v9530_v35  ;;  %v9576_v35 = vld [vmem:[#allocation11 + $0x9e0] ss:$28 sps:$4 sm:$0xff]   ;;  %v9584_v59 = vld [vmem:[#allocation11 + $0x9ac] ss:$28 sps:$4 sm:$0xff]   ;;  %v9587_v51 = vld [vmem:[#allocation11 + $0x6d4] ss:$28 sps:$4 sm:$0xff]  }
 0x3d1   :  { %v4545_v4 = vadd.f32 %v4544_v43, %v4502_v15  ;;  %v4504_v58 = vadd.f32 %v4503_v22, %v4461_v38  ;;  %v4546_v55 = vpop.f32.mrf.mxu1  ;;  %v4556_v62 = vmax.f32 %v4543_v54, 0.0  ;;  %v9579_v48 = vld [vmem:[#allocation11 + $0x388] ss:$28 sps:$4 sm:$0xff]   ;;  %v9590_v38 = vld [vmem:[#allocation11 + $0x974] ss:$28 sps:$4 sm:$0xff]  }
 0x3d2   :  { %v9585_v15 = vld [vmem:[#allocation11 + $0x6d0] ss:$28 sps:$4 sm:$0xff]   ;;  %v9596_v22 = vld [vmem:[#allocation11 + $0x93c] ss:$28 sps:$4 sm:$0xff]  }
 0x3d3   :  { %v4547_v31 = vadd.f32 %v4546_v55, %v4504_v58  ;;  %7689 = vmatpush1.bf16.msra.mxu0 %v9528_v2  ;;  %v4563_v6 = vmax.f32 %v4545_v4, 0.0  ;;  %v9588_v43 = vld [vmem:[#allocation11 + $0x970] ss:$28 sps:$4 sm:$0xff]   ;;  %v9593_v2 = vld [vmem:[#allocation11 + $0x69c] ss:$28 sps:$4 sm:$0xff]  }
 0x3d4   :  { %7690 = vmatprep.subr.bf16.mxu0 %v9536_v30  ;;  %v9591_v30 = vld [vmem:[#allocation11 + $0x698] ss:$28 sps:$4 sm:$0xff]   ;;  %v9599_v4 = vld [vmem:[#allocation11 + $0x664] ss:$28 sps:$4 sm:$0xff]  }
 0x3d5   :  { %v4564_v1 = vmax.f32 %v4547_v31, 0.0  ;;  %v10459_v46 = vpack.c.bf16 %v4563_v6, %v4555_v56  ;;  %v9594_v54 = vld [vmem:[#allocation11 + $0x938] ss:$28 sps:$4 sm:$0xff]   ;;  %v9602_v58 = vld [vmem:[#allocation11 + $0x904] ss:$28 sps:$4 sm:$0xff]  }
 0x3d6   :  { %v9597_v60 = vld [vmem:[#allocation11 + $0x660] ss:$28 sps:$4 sm:$0xff]   ;;  %v9605_v31 = vld [vmem:[#allocation11 + $0x62c] ss:$28 sps:$4 sm:$0xff]  }
 0x3d7   :  { %v10457_v11 = vpack.c.bf16 %v4564_v1, %v4556_v62  ;;  %7691 = vmatpush1.bf16.msra.mxu0 %v9534_v61  ;;  %v9600_v55 = vld [vmem:[#allocation11 + $0x900] ss:$28 sps:$4 sm:$0xff]   ;;  %v9608_v61 = vld [vmem:[#allocation11 + $0x8cc] ss:$28 sps:$4 sm:$0xff]   ;;  %v9611_v62 = vld [vmem:[#allocation11 + $0x5f4] ss:$28 sps:$4 sm:$0xff]  }
 0x3d8   :  { %7692 = vmatprep.subr.bf16.mxu0 %v9542_v25  ;;  %v9603_v6 = vld [vmem:[#allocation11 + $0x628] ss:$28 sps:$4 sm:$0xff]   ;;  %v9614_v1 = vld [vmem:[#allocation11 + $0x19c] ss:$28 sps:$4 sm:$0xff]   ;;  %v9609_v56 = vld [vmem:[#allocation11 + $0x5f0] ss:$28 sps:$4 sm:$0xff]  }
 0x3d9   :  { %7587 = vmatprep.mubr.bf16.mxu1 %v10457_v11  ;;  %v9606_v25 = vld [vmem:[#allocation11 + $0x8c8] ss:$28 sps:$4 sm:$0xff]  }
 0x3da   :  { %7588 = vmatmul.mubr.bf16.vlgmr.msra.gmra.mxu1 %v10459_v46 }
 0x3db   :  { %7642 = vmatpush1.bf16.msra.mxu1 %v9537_v19  ;;  %7673 = vmatprep.mubr.bf16.mxu1 %v10408_v7  ;;  %v9612_v19 = vld [vmem:[#allocation11 + $0x198] ss:$28 sps:$4 sm:$0xff]  }
 0x3dc   :  { %7693 = vmatpush1.bf16.msra.mxu0 %v9540_v47  ;;  %7643 = vmatprep.subr.bf16.mxu1 %v9545_v5  ;;  %v9617_v47 = vld [vmem:[#allocation11 + $0x5bc] ss:$28 sps:$4 sm:$0xff]   ;;  %v9620_v5 = vld [vmem:[#allocation11 + $0x164] ss:$28 sps:$4 sm:$0xff]  }
 0x3dd   :  { %7694 = vmatprep.subr.bf16.mxu0 %v9548_v28  ;;  %v9615_v28 = vld [vmem:[#allocation11 + $0x5b8] ss:$28 sps:$4 sm:$0xff]  }
 0x3df   :  { %7644 = vmatpush1.bf16.msra.mxu1 %v9543_v52  ;;  %v9618_v52 = vld [vmem:[#allocation11 + $0x160] ss:$28 sps:$4 sm:$0xff]  }
 0x3e0   :  { %7695 = vmatpush1.bf16.msra.mxu0 %v9546_v63  ;;  %7645 = vmatprep.subr.bf16.mxu1 %v9551_v20  ;;  %v9623_v63 = vld [vmem:[#allocation11 + $0x584] ss:$28 sps:$4 sm:$0xff]   ;;  %v9626_v20 = vld [vmem:[#allocation11 + $0x12c] ss:$28 sps:$4 sm:$0xff]  }
 0x3e1   :  { %7696 = vmatprep.subr.bf16.mxu0 %v9554_v21  ;;  %v9621_v21 = vld [vmem:[#allocation11 + $0x580] ss:$28 sps:$4 sm:$0xff]  }
 0x3e3   :  { %7646 = vmatpush1.bf16.msra.mxu1 %v9549_v23  ;;  %v9624_v23 = vld [vmem:[#allocation11 + $0x128] ss:$28 sps:$4 sm:$0xff]  }
 0x3e4   :  { %7697 = vmatpush1.bf16.msra.mxu0 %v9552_v32  ;;  %7647 = vmatprep.subr.bf16.mxu1 %v9557_v41  ;;  %v9629_v32 = vld [vmem:[#allocation11 + $0x54c] ss:$28 sps:$4 sm:$0xff]   ;;  %v9632_v41 = vld [vmem:[#allocation11 + $0xf4] ss:$28 sps:$4 sm:$0xff]  }
 0x3e5   :  { %7698 = vmatprep.subr.bf16.mxu0 %v9560_v42  ;;  %v9627_v42 = vld [vmem:[#allocation11 + $0x548] ss:$28 sps:$4 sm:$0xff]  }
 0x3e7   :  { %7648 = vmatpush1.bf16.msra.mxu1 %v9555_v53  ;;  %v9630_v53 = vld [vmem:[#allocation11 + $0xf0] ss:$28 sps:$4 sm:$0xff]  }
 0x3e8   :  { %7699 = vmatpush1.bf16.msra.mxu0 %v9558_v29  ;;  %7649 = vmatprep.subr.bf16.mxu1 %v9563_v33  ;;  %v9635_v29 = vld [vmem:[#allocation11 + $0xc14] ss:$28 sps:$4 sm:$0xff]   ;;  %v9638_v33 = vld [vmem:[#allocation11 + $0xbc] ss:$28 sps:$4 sm:$0xff]  }
 0x3e9   :  { %7700 = vmatprep.subr.bf16.mxu0 %v9566_v8  ;;  %v9633_v8 = vld [vmem:[#allocation11 + $0xc10] ss:$28 sps:$4 sm:$0xff]  }
 0x3eb   :  { %7650 = vmatpush1.bf16.msra.mxu1 %v9561_v34  ;;  %v9636_v34 = vld [vmem:[#allocation11 + $0xb8] ss:$28 sps:$4 sm:$0xff]  }
 0x3ec   :  { %7701 = vmatpush2.bf16.msra.mxu0 %v9564_v13  ;;  %7651 = vmatprep.subr.bf16.mxu1 %v9569_v36  ;;  %v9641_v13 = vld [vmem:[#allocation11 + $0xbdc] ss:$28 sps:$4 sm:$0xff]   ;;  %v9644_v36 = vld [vmem:[#allocation11 + $0x84] ss:$28 sps:$4 sm:$0xff]  }
 0x3ed   :  { %7702 = vmatprep.subr.bf16.mxu0 %v9572_v10  ;;  %v9639_v10 = vld [vmem:[#allocation11 + $0xbd8] ss:$28 sps:$4 sm:$0xff]  }
 0x3ef   :  { %7652 = vmatpush1.bf16.msra.mxu1 %v9567_v24  ;;  %v9642_v24 = vld [vmem:[#allocation11 + $0x80] ss:$28 sps:$4 sm:$0xff]  }
 0x3f0   :  { %7703 = vmatpush2.bf16.msra.mxu0 %v9570_v0  ;;  %7653 = vmatprep.subr.bf16.mxu1 %v9575_v50  ;;  %v9647_v0 = vld [vmem:[#allocation11 + $0xba4] ss:$28 sps:$4 sm:$0xff]   ;;  %v9650_v50 = vld [vmem:[#allocation11 + $0x4c] ss:$28 sps:$4 sm:$0xff]  }
 0x3f1   :  { %7704 = vmatprep.subr.bf16.mxu0 %v9578_v49  ;;  %v9645_v49 = vld [vmem:[#allocation11 + $0xba0] ss:$28 sps:$4 sm:$0xff]  }
 0x3f3   :  { %7654 = vmatpush1.bf16.msra.mxu1 %v9573_v37  ;;  %v9648_v37 = vld [vmem:[#allocation11 + $0x48] ss:$28 sps:$4 sm:$0xff]  }
 0x3f4   :  { %7705 = vmatpush2.bf16.msra.mxu0 %v9576_v35  ;;  %7655 = vmatprep.subr.bf16.mxu1 %v9581_v9  ;;  %v9653_v35 = vld [vmem:[#allocation11 + $0xb6c] ss:$28 sps:$4 sm:$0xff]   ;;  %v9656_v9 = vld [vmem:[#allocation11 + $0x14] ss:$28 sps:$4 sm:$0xff]  }
 0x3f5   :  { %7706 = vmatprep.subr.bf16.mxu0 %v9584_v59  ;;  %v9651_v59 = vld [vmem:[#allocation11 + $0xb68] ss:$28 sps:$4 sm:$0xff]  }
 0x3f7   :  { %7656 = vmatpush1.bf16.msra.mxu1 %v9579_v48  ;;  %v9654_v48 = vld [vmem:[#allocation11 + $0x10] ss:$28 sps:$4 sm:$0xff]  }
 0x3f8   :  { %7707 = vmatpush2.bf16.msra.mxu0 %v9582_v26  ;;  %7657 = vmatprep.subr.bf16.mxu1 %v9587_v51  ;;  %v9659_v26 = vld [vmem:[#allocation11 + $0xb34] ss:$28 sps:$4 sm:$0xff]   ;;  %v9662_v51 = vld [vmem:[#allocation11 + $0x35c] ss:$28 sps:$4 sm:$0xff]  }
 0x3f9   :  { %7708 = vmatprep.subr.bf16.mxu0 %v9590_v38  ;;  %v9657_v38 = vld [vmem:[#allocation11 + $0xb30] ss:$28 sps:$4 sm:$0xff]  }
 0x3fb   :  { %7658 = vmatpush2.bf16.msra.mxu1 %v9585_v15  ;;  %v9660_v15 = vld [vmem:[#allocation11 + $0x358] ss:$28 sps:$4 sm:$0xff]  }
 0x3fc   :  { %7709 = vmatpush2.bf16.msra.mxu0 %v9588_v43  ;;  %7659 = vmatprep.subr.bf16.mxu1 %v9593_v2  ;;  %v9665_v43 = vld [vmem:[#allocation11 + $0xafc] ss:$28 sps:$4 sm:$0xff]   ;;  %v9668_v2 = vld [vmem:[#allocation11 + $0x324] ss:$28 sps:$4 sm:$0xff]  }
 0x3fd   :  { %7710 = vmatprep.subr.bf16.mxu0 %v9596_v22  ;;  %v9663_v22 = vld [vmem:[#allocation11 + $0xaf8] ss:$28 sps:$4 sm:$0xff]  }
 0x3ff   :  { %7660 = vmatpush2.bf16.msra.mxu1 %v9591_v30  ;;  %v9666_v30 = vld [vmem:[#allocation11 + $0x320] ss:$28 sps:$4 sm:$0xff]  }
 0x400   :  { %7711 = vmatpush2.bf16.msra.mxu0 %v9594_v54  ;;  %7661 = vmatprep.subr.bf16.mxu1 %v9599_v4  ;;  %v9671_v54 = vld [vmem:[#allocation11 + $0xac4] ss:$28 sps:$4 sm:$0xff]   ;;  %v9674_v4 = vld [vmem:[#allocation11 + $0x2ec] ss:$28 sps:$4 sm:$0xff]  }
 0x401   :  { %7712 = vmatprep.subr.bf16.mxu0 %v9602_v58  ;;  %v9669_v58 = vld [vmem:[#allocation11 + $0xac0] ss:$28 sps:$4 sm:$0xff]  }
 0x403   :  { %7662 = vmatpush2.bf16.msra.mxu1 %v9597_v60  ;;  %v9672_v60 = vld [vmem:[#allocation11 + $0x2e8] ss:$28 sps:$4 sm:$0xff]  }
 0x404   :  { %7713 = vmatpush2.bf16.msra.mxu0 %v9600_v55  ;;  %7663 = vmatprep.subr.bf16.mxu1 %v9605_v31  ;;  %v9677_v55 = vld [vmem:[#allocation11 + $0xa8c] ss:$28 sps:$4 sm:$0xff]   ;;  %v9680_v31 = vld [vmem:[#allocation11 + $0x2b4] ss:$28 sps:$4 sm:$0xff]  }
 0x405   :  { %7714 = vmatprep.subr.bf16.mxu0 %v9608_v61  ;;  %v9675_v61 = vld [vmem:[#allocation11 + $0xa88] ss:$28 sps:$4 sm:$0xff]  }
 0x407   :  { %7664 = vmatpush2.bf16.msra.mxu1 %v9603_v6  ;;  %v9678_v6 = vld [vmem:[#allocation11 + $0x2b0] ss:$28 sps:$4 sm:$0xff]  }
 0x408   :  { %7715 = vmatpush2.bf16.msra.mxu0 %v9606_v25  ;;  %7665 = vmatprep.subr.bf16.mxu1 %v9611_v62  ;;  %v9683_v25 = vld [vmem:[#allocation11 + $0xdd4] ss:$28 sps:$4 sm:$0xff]   ;;  %v9686_v62 = vld [vmem:[#allocation11 + $0x27c] ss:$28 sps:$4 sm:$0xff]  }
 0x409   :  { %7770 = vmatprep.subr.bf16.mxu0 %v9614_v1  ;;  %v9681_v1 = vld [vmem:[#allocation11 + $0xdd0] ss:$28 sps:$4 sm:$0xff]  }
 0x40b   :  { %7666 = vmatpush2.bf16.msra.mxu1 %v9609_v56  ;;  %7717 = vmatmul.mubr.bf16.vlgmr.msra.gmra.mxu0 %v10446_v40  ;;  %v9684_v56 = vld [vmem:[#allocation11 + $0x278] ss:$28 sps:$4 sm:$0xff]  }
 0x40c   :  { %7771 = vmatpush1.bf16.msra.mxu0 %v9612_v19  ;;  %7802 = vmatprep.mubr.bf16.mxu0 %v10405_v45  ;;  %v9689_v19 = vld [vmem:[#allocation11 + $0xd9c] ss:$28 sps:$4 sm:$0xff]  }
 0x40d   :  { %7667 = vmatprep.subr.bf16.mxu1 %v9617_v47  ;;  %7772 = vmatprep.subr.bf16.mxu0 %v9620_v5  ;;  %v9692_v47 = vld [vmem:[#allocation11 + $0x244] ss:$28 sps:$4 sm:$0xff]   ;;  %v9687_v5 = vld [vmem:[#allocation11 + $0xd98] ss:$28 sps:$4 sm:$0xff]  }
 0x40f   :  { %7668 = vmatpush2.bf16.msra.mxu1 %v9615_v28  ;;  %v9690_v28 = vld [vmem:[#allocation11 + $0x240] ss:$28 sps:$4 sm:$0xff]  }
 0x410   :  { %7773 = vmatpush1.bf16.msra.mxu0 %v9618_v52  ;;  %7669 = vmatprep.subr.bf16.mxu1 %v9623_v63  ;;  %v9695_v52 = vld [vmem:[#allocation11 + $0xd64] ss:$28 sps:$4 sm:$0xff]   ;;  %v9698_v63 = vld [vmem:[#allocation11 + $0x20c] ss:$28 sps:$4 sm:$0xff]  }
 0x411   :  { %7774 = vmatprep.subr.bf16.mxu0 %v9626_v20  ;;  %v9693_v20 = vld [vmem:[#allocation11 + $0xd60] ss:$28 sps:$4 sm:$0xff]  }
 0x413   :  { %7670 = vmatpush2.bf16.msra.mxu1 %v9621_v21  ;;  %v9696_v21 = vld [vmem:[#allocation11 + $0x208] ss:$28 sps:$4 sm:$0xff]  }
 0x414   :  { %7775 = vmatpush1.bf16.msra.mxu0 %v9624_v23  ;;  %7671 = vmatprep.subr.bf16.mxu1 %v9629_v32  ;;  %v9701_v23 = vld [vmem:[#allocation11 + $0xd2c] ss:$28 sps:$4 sm:$0xff]   ;;  %v9704_v32 = vld [vmem:[#allocation11 + $0x1d4] ss:$28 sps:$4 sm:$0xff]  }
 0x415   :  { %7776 = vmatprep.subr.bf16.mxu0 %v9632_v41  ;;  %v9699_v41 = vld [vmem:[#allocation11 + $0xd28] ss:$28 sps:$4 sm:$0xff]  }
 0x417   :  { %7672 = vmatpush2.bf16.msra.mxu1 %v9627_v42  ;;  %v9702_v42 = vld [vmem:[#allocation11 + $0x1d0] ss:$28 sps:$4 sm:$0xff]  }
 0x418   :  { %7777 = vmatpush1.bf16.msra.mxu0 %v9630_v53  ;;  %7727 = vmatprep.subr.bf16.mxu1 %v9635_v29  ;;  %v9707_v53 = vld [vmem:[#allocation11 + $0xcf4] ss:$28 sps:$4 sm:$0xff]   ;;  %v9710_v29 = vld [vmem:[#allocation11 + $0x89c] ss:$28 sps:$4 sm:$0xff]  }
 0x419   :  { %7778 = vmatprep.subr.bf16.mxu0 %v9638_v33  ;;  %v9705_v33 = vld [vmem:[#allocation11 + $0xcf0] ss:$28 sps:$4 sm:$0xff]  }
 0x41a   :  { %7674 = vmatmul.mubr.bf16.vlgmr.msra.gmra.mxu1 %v10383_v57 }
 0x41b   :  { %7728 = vmatpush1.bf16.msra.mxu1 %v9633_v8  ;;  %7759 = vmatprep.mubr.bf16.mxu1 %v10457_v11  ;;  %v9708_v8 = vld [vmem:[#allocation11 + $0x898] ss:$28 sps:$4 sm:$0xff]  }
 0x41c   :  { %7779 = vmatpush1.bf16.msra.mxu0 %v9636_v34  ;;  %7729 = vmatprep.subr.bf16.mxu1 %v9641_v13  ;;  %v9713_v34 = vld [vmem:[#allocation11 + $0xcbc] ss:$28 sps:$4 sm:$0xff]   ;;  %v9716_v13 = vld [vmem:[#allocation11 + $0x864] ss:$28 sps:$4 sm:$0xff]  }
 0x41d   :  { %7780 = vmatprep.subr.bf16.mxu0 %v9644_v36  ;;  %v9711_v36 = vld [vmem:[#allocation11 + $0xcb8] ss:$28 sps:$4 sm:$0xff]  }
 0x41f   :  { %7730 = vmatpush1.bf16.msra.mxu1 %v9639_v10  ;;  %v9714_v10 = vld [vmem:[#allocation11 + $0x860] ss:$28 sps:$4 sm:$0xff]  }
 0x420   :  { %7781 = vmatpush1.bf16.msra.mxu0 %v9642_v24  ;;  %7731 = vmatprep.subr.bf16.mxu1 %v9647_v0  ;;  %v9719_v24 = vld [vmem:[#allocation11 + $0xc84] ss:$28 sps:$4 sm:$0xff]   ;;  %v9722_v0 = vld [vmem:[#allocation11 + $0x82c] ss:$28 sps:$4 sm:$0xff]  }
 0x421   :  { %7782 = vmatprep.subr.bf16.mxu0 %v9650_v50  ;;  %v9717_v50 = vld [vmem:[#allocation11 + $0xc80] ss:$28 sps:$4 sm:$0xff]  }
 0x423   :  { %7732 = vmatpush1.bf16.msra.mxu1 %v9645_v49  ;;  %v9720_v49 = vld [vmem:[#allocation11 + $0x828] ss:$28 sps:$4 sm:$0xff]  }
 0x424   :  { %7783 = vmatpush1.bf16.msra.mxu0 %v9648_v37  ;;  %7733 = vmatprep.subr.bf16.mxu1 %v9653_v35  ;;  %v9725_v37 = vld [vmem:[#allocation11 + $0xc4c] ss:$28 sps:$4 sm:$0xff]   ;;  %v9728_v35 = vld [vmem:[#allocation11 + $0x7f4] ss:$28 sps:$4 sm:$0xff]  }
 0x425   :  { %7784 = vmatprep.subr.bf16.mxu0 %v9656_v9  ;;  %v9723_v9 = vld [vmem:[#allocation11 + $0xc48] ss:$28 sps:$4 sm:$0xff]  }
 0x427   :  { %7734 = vmatpush1.bf16.msra.mxu1 %v9651_v59  ;;  %v9726_v59 = vld [vmem:[#allocation11 + $0x7f0] ss:$28 sps:$4 sm:$0xff]  }
 0x428   :  { %7785 = vmatpush1.bf16.msra.mxu0 %v9654_v48  ;;  %7735 = vmatprep.subr.bf16.mxu1 %v9659_v26  ;;  %v9731_v48 = vld [vmem:[#allocation11 + $0x51c] ss:$28 sps:$4 sm:$0xff]  }
 0x429   :  { %7786 = vmatprep.subr.bf16.mxu0 %v9662_v51  ;;  %v9734_v26 = vld [vmem:[#allocation11 + $0x7bc] ss:$28 sps:$4 sm:$0xff]  }
 0x42a   :  { %v9729_v51 = vld [vmem:[#allocation11 + $0x518] ss:$28 sps:$4 sm:$0xff]  }
 0x42b   :  { %7736 = vmatpush1.bf16.msra.mxu1 %v9657_v38  ;;  %v9732_v38 = vld [vmem:[#allocation11 + $0x7b8] ss:$28 sps:$4 sm:$0xff]  }
 0x42c   :  { %7787 = vmatpush2.bf16.msra.mxu0 %v9660_v15  ;;  %7737 = vmatprep.subr.bf16.mxu1 %v9665_v43  ;;  %v9737_v15 = vld [vmem:[#allocation11 + $0x4e4] ss:$28 sps:$4 sm:$0xff]  }
 0x42d   :  { %7788 = vmatprep.subr.bf16.mxu0 %v9668_v2  ;;  %v9740_v43 = vld [vmem:[#allocation11 + $0x784] ss:$28 sps:$4 sm:$0xff]  }
 0x42e   :  { %v9735_v2 = vld [vmem:[#allocation11 + $0x4e0] ss:$28 sps:$4 sm:$0xff]  }
 0x42f   :  { %7738 = vmatpush1.bf16.msra.mxu1 %v9663_v22  ;;  %v9738_v22 = vld [vmem:[#allocation11 + $0x780] ss:$28 sps:$4 sm:$0xff]  }
 0x430   :  { %7789 = vmatpush2.bf16.msra.mxu0 %v9666_v30  ;;  %7739 = vmatprep.subr.bf16.mxu1 %v9671_v54  ;;  %v9743_v30 = vld [vmem:[#allocation11 + $0x4ac] ss:$28 sps:$4 sm:$0xff]  }
 0x431   :  { %7790 = vmatprep.subr.bf16.mxu0 %v9674_v4  ;;  %v9746_v54 = vld [vmem:[#allocation11 + $0x74c] ss:$28 sps:$4 sm:$0xff]  }
 0x432   :  { %v9741_v4 = vld [vmem:[#allocation11 + $0x4a8] ss:$28 sps:$4 sm:$0xff]  }
 0x433   :  { %7740 = vmatpush1.bf16.msra.mxu1 %v9669_v58  ;;  %v9744_v58 = vld [vmem:[#allocation11 + $0x748] ss:$28 sps:$4 sm:$0xff]  }
 0x434   :  { %7791 = vmatpush2.bf16.msra.mxu0 %v9672_v60  ;;  %7741 = vmatprep.subr.bf16.mxu1 %v9677_v55  ;;  %v9749_v60 = vld [vmem:[#allocation11 + $0x474] ss:$28 sps:$4 sm:$0xff]  }
 0x435   :  { %7792 = vmatprep.subr.bf16.mxu0 %v9680_v31  ;;  %v9752_v55 = vld [vmem:[#allocation11 + $0x714] ss:$28 sps:$4 sm:$0xff]  }
 0x436   :  { %v9747_v31 = vld [vmem:[#allocation11 + $0x470] ss:$28 sps:$4 sm:$0xff]  }
 0x437   :  { %7742 = vmatpush1.bf16.msra.mxu1 %v9675_v61  ;;  %v9750_v61 = vld [vmem:[#allocation11 + $0x710] ss:$28 sps:$4 sm:$0xff]  }
 0x438   :  { %7793 = vmatpush2.bf16.msra.mxu0 %v9678_v6  ;;  %7743 = vmatprep.subr.bf16.mxu1 %v9683_v25  ;;  %v9755_v6 = vld [vmem:[#allocation11 + $0x43c] ss:$28 sps:$4 sm:$0xff]  }
 0x439   :  { %7794 = vmatprep.subr.bf16.mxu0 %v9686_v62  ;;  %v9758_v25 = vld [vmem:[#allocation11 + $0xa5c] ss:$28 sps:$4 sm:$0xff]  }
 0x43a   :  { %v9753_v62 = vld [vmem:[#allocation11 + $0x438] ss:$28 sps:$4 sm:$0xff]  }
 0x43b   :  { %7744 = vmatpush2.bf16.msra.mxu1 %v9681_v1  ;;  %v9756_v1 = vld [vmem:[#allocation11 + $0xa58] ss:$28 sps:$4 sm:$0xff]  }
 0x43c   :  { %7795 = vmatpush2.bf16.msra.mxu0 %v9684_v56  ;;  %7745 = vmatprep.subr.bf16.mxu1 %v9689_v19  ;;  %v9761_v56 = vld [vmem:[#allocation11 + $0x404] ss:$28 sps:$4 sm:$0xff]  }
 0x43d   :  { %7796 = vmatprep.subr.bf16.mxu0 %v9692_v47  ;;  %v9764_v19 = vld [vmem:[#allocation11 + $0xa24] ss:$28 sps:$4 sm:$0xff]  }
 0x43e   :  { %v9759_v47 = vld [vmem:[#allocation11 + $0x400] ss:$28 sps:$4 sm:$0xff]  }
 0x43f   :  { %7746 = vmatpush2.bf16.msra.mxu1 %v9687_v5  ;;  %v9762_v5 = vld [vmem:[#allocation11 + $0xa20] ss:$28 sps:$4 sm:$0xff]  }
 0x440   :  { %7797 = vmatpush2.bf16.msra.mxu0 %v9690_v28  ;;  %7747 = vmatprep.subr.bf16.mxu1 %v9695_v52  ;;  %v9767_v28 = vld [vmem:[#allocation11 + $0x3cc] ss:$28 sps:$4 sm:$0xff]  }
 0x441   :  { %7798 = vmatprep.subr.bf16.mxu0 %v9698_v63  ;;  %v9770_v52 = vld [vmem:[#allocation11 + $0x9ec] ss:$28 sps:$4 sm:$0xff]  }
 0x442   :  { %v9765_v63 = vld [vmem:[#allocation11 + $0x3c8] ss:$28 sps:$4 sm:$0xff]  }
 0x443   :  { %7748 = vmatpush2.bf16.msra.mxu1 %v9693_v20  ;;  %v9768_v20 = vld [vmem:[#allocation11 + $0x9e8] ss:$28 sps:$4 sm:$0xff]  }
 0x444   :  { %7799 = vmatpush2.bf16.msra.mxu0 %v9696_v21  ;;  %7749 = vmatprep.subr.bf16.mxu1 %v9701_v23  ;;  %v9773_v21 = vld [vmem:[#allocation11 + $0x394] ss:$28 sps:$4 sm:$0xff]  }
 0x445   :  { %7800 = vmatprep.subr.bf16.mxu0 %v9704_v32  ;;  %v9776_v23 = vld [vmem:[#allocation11 + $0x9b4] ss:$28 sps:$4 sm:$0xff]  }
 0x446   :  { %v9771_v32 = vld [vmem:[#allocation11 + $0x390] ss:$28 sps:$4 sm:$0xff]  }
 0x447   :  { %7750 = vmatpush2.bf16.msra.mxu1 %v9699_v41  ;;  %v9774_v41 = vld [vmem:[#allocation11 + $0x9b0] ss:$28 sps:$4 sm:$0xff]  }
 0x448   :  { %7801 = vmatpush2.bf16.msra.mxu0 %v9702_v42  ;;  %7751 = vmatprep.subr.bf16.mxu1 %v9707_v53  ;;  %v9779_v42 = vld [vmem:[#allocation11 + $0x6dc] ss:$28 sps:$4 sm:$0xff]  }
 0x449   :  { %7856 = vmatprep.subr.bf16.mxu0 %v9710_v29  ;;  %v9782_v53 = vld [vmem:[#allocation11 + $0x97c] ss:$28 sps:$4 sm:$0xff]  }
 0x44a   :  { %v9777_v29 = vld [vmem:[#allocation11 + $0x6d8] ss:$28 sps:$4 sm:$0xff]  }
 0x44b   :  { %7752 = vmatpush2.bf16.msra.mxu1 %v9705_v33  ;;  %7803 = vmatmul.mubr.bf16.vlgmr.msra.gmra.mxu0 %v10349_v39  ;;  %v9780_v33 = vld [vmem:[#allocation11 + $0x978] ss:$28 sps:$4 sm:$0xff]  }
 0x44c   :  { %7857 = vmatpush1.bf16.msra.mxu0 %v9708_v8  ;;  %7888 = vmatprep.mubr.bf16.mxu0 %v10433_v3  ;;  %v9785_v8 = vld [vmem:[#allocation11 + $0x6a4] ss:$28 sps:$4 sm:$0xff]  }
 0x44d   :  { %7753 = vmatprep.subr.bf16.mxu1 %v9713_v34  ;;  %7858 = vmatprep.subr.bf16.mxu0 %v9716_v13  ;;  %v9788_v34 = vld [vmem:[#allocation11 + $0x944] ss:$28 sps:$4 sm:$0xff]  }
 0x44e   :  { %v9783_v13 = vld [vmem:[#allocation11 + $0x6a0] ss:$28 sps:$4 sm:$0xff]  }
 0x44f   :  { %7754 = vmatpush2.bf16.msra.mxu1 %v9711_v36  ;;  %v9786_v36 = vld [vmem:[#allocation11 + $0x940] ss:$28 sps:$4 sm:$0xff]  }
 0x450   :  { %7859 = vmatpush1.bf16.msra.mxu0 %v9714_v10  ;;  %7755 = vmatprep.subr.bf16.mxu1 %v9719_v24  ;;  %v9791_v10 = vld [vmem:[#allocation11 + $0x66c] ss:$28 sps:$4 sm:$0xff]  }
 0x451   :  { %7860 = vmatprep.subr.bf16.mxu0 %v9722_v0  ;;  %v9794_v24 = vld [vmem:[#allocation11 + $0x90c] ss:$28 sps:$4 sm:$0xff]  }
 0x452   :  { %v9789_v0 = vld [vmem:[#allocation11 + $0x668] ss:$28 sps:$4 sm:$0xff]  }
 0x453   :  { %7756 = vmatpush2.bf16.msra.mxu1 %v9717_v50  ;;  %v9792_v50 = vld [vmem:[#allocation11 + $0x908] ss:$28 sps:$4 sm:$0xff]  }
 0x454   :  { %7861 = vmatpush1.bf16.msra.mxu0 %v9720_v49  ;;  %7757 = vmatprep.subr.bf16.mxu1 %v9725_v37  ;;  %v9797_v49 = vld [vmem:[#allocation11 + $0x634] ss:$28 sps:$4 sm:$0xff]  }
 0x455   :  { %7862 = vmatprep.subr.bf16.mxu0 %v9728_v35  ;;  %v9800_v37 = vld [vmem:[#allocation11 + $0x8d4] ss:$28 sps:$4 sm:$0xff]   ;;  %v7460_v35 = vpop.f32.mrf.mxu0 }
 0x457   :  { %7758 = vmatpush2.bf16.msra.mxu1 %v9723_v9  ;;  %v9795_v9 = vld [vmem:[#allocation11 + $0x630] ss:$28 sps:$4 sm:$0xff]  }
 0x458   :  { %7863 = vmatpush1.bf16.msra.mxu0 %v9726_v59  ;;  %7813 = vmatprep.subr.bf16.mxu1 %v9731_v48  ;;  %v9798_v59 = vld [vmem:[#allocation11 + $0x8d0] ss:$28 sps:$4 sm:$0xff]   ;;  %v9803_v48 = vld [vmem:[#allocation11 + $0x5fc] ss:$28 sps:$4 sm:$0xff]  }
 0x459   :  { %7864 = vmatprep.subr.bf16.mxu0 %v9734_v26  ;;  %v9804_v26 = vld [vmem:[#allocation11 + $0x360] ss:$28 sps:$4 sm:$0xff]  }
 0x45a   :  { %7760 = vmatmul.mubr.bf16.vlgmr.msra.gmra.mxu1 %v10459_v46 }
 0x45b   :  { %7814 = vmatpush1.bf16.msra.mxu1 %v9729_v51  ;;  %7845 = vmatprep.mubr.bf16.mxu1 %v10408_v7  ;;  %v7462_v51 = vpop.f32.mrf.mxu0 }
 0x45c   :  { %7865 = vmatpush1.bf16.msra.mxu0 %v9732_v38  ;;  %7815 = vmatprep.subr.bf16.mxu1 %v9737_v15  ;;  %v9801_v38 = vld [vmem:[#allocation11 + $0x5f8] ss:$28 sps:$4 sm:$0xff]   ;;  %v9805_v15 = vld [vmem:[#allocation11 + $0x1a0] ss:$28 sps:$4 sm:$0xff]  }
 0x45d   :  { %7866 = vmatprep.subr.bf16.mxu0 %v9740_v43  ;;  %v9808_v43 = vld [vmem:[#allocation11 + $0x5c4] ss:$28 sps:$4 sm:$0xff]  }
 0x45f   :  { %7816 = vmatpush1.bf16.msra.mxu1 %v9735_v2  ;;  %v9809_v2 = vld [vmem:[#allocation11 + $0x328] ss:$28 sps:$4 sm:$0xff]  }
 0x460   :  { %7867 = vmatpush1.bf16.msra.mxu0 %v9738_v22  ;;  %7817 = vmatprep.subr.bf16.mxu1 %v9743_v30  ;;  %v7464_v22 = vpop.f32.mrf.mxu0  ;;  %v9806_v30 = vld [vmem:[#allocation11 + $0x5c0] ss:$28 sps:$4 sm:$0xff]  }
 0x461   :  { %7868 = vmatprep.subr.bf16.mxu0 %v9746_v54  ;;  %v10473_v54 = vld [vmem:[#allocation13] sm:$0xff] }
 0x463   :  { %7818 = vmatpush1.bf16.msra.mxu1 %v9741_v4  ;;  %v7503_v4 = vpop.f32.mrf.mxu1 }
 0x464   :  { %7869 = vmatpush1.bf16.msra.mxu0 %v9744_v58  ;;  %7819 = vmatprep.subr.bf16.mxu1 %v9749_v60  ;;  %v9810_v58 = vld [vmem:[#allocation11 + $0x168] ss:$28 sps:$4 sm:$0xff]  }
 0x465   :  { %7870 = vmatprep.subr.bf16.mxu0 %v9752_v55  ;;  %v9813_v60 = vld [vmem:[#allocation11 + $0x58c] ss:$28 sps:$4 sm:$0xff]  }
 0x466   :  { %v9814_v55 = vld [vmem:[#allocation11 + $0x2f0] ss:$28 sps:$4 sm:$0xff]  }
 0x467   :  { %7820 = vmatpush1.bf16.msra.mxu1 %v9747_v31  ;;  %v7466_v31 = vpop.f32.mrf.mxu0 }
 0x468   :  { %7871 = vmatpush1.bf16.msra.mxu0 %v9750_v61  ;;  %7821 = vmatprep.subr.bf16.mxu1 %v9755_v6  ;;  %v5090_v61 = vrot.slane %v10473_v54, %v10231_v14  ;;  %v9811_v6 = vld [vmem:[#allocation11 + $0x588] ss:$28 sps:$4 sm:$0xff]   ;;  %v9820_v14 = vld [vmem:[#allocation11 + $0xf8] ss:$28 sps:$4 sm:$0xff]  }
 0x469   :  { %7872 = vmatprep.subr.bf16.mxu0 %v9758_v25  ;;  %v7505_v25 = vpop.f32.mrf.mxu1 }
 0x46b   :  { %7822 = vmatpush1.bf16.msra.mxu1 %v9753_v62  ;;  %v7546_v62 = vpop.f32.mrf.mxu0 }
 0x46c   :  { %7873 = vmatpush2.bf16.msra.mxu0 %v9756_v1  ;;  %7823 = vmatprep.subr.bf16.mxu1 %v9761_v56  ;;  %v9815_v1 = vld [vmem:[#allocation11 + $0x130] ss:$28 sps:$4 sm:$0xff]  }
 0x46d   :  { %7874 = vmatprep.subr.bf16.mxu0 %v9764_v19  ;;  %v9818_v56 = vld [vmem:[#allocation11 + $0x554] ss:$28 sps:$4 sm:$0xff]  }
 0x46e   :  { %v9819_v19 = vld [vmem:[#allocation11 + $0x2b8] ss:$28 sps:$4 sm:$0xff]  }
 0x46f   :  { %7824 = vmatpush1.bf16.msra.mxu1 %v9759_v47  ;;  %v7461_v47 = vadd.f32 %v7460_v35, %v5090_v61  ;;  %v9830_v35 = vld [vmem:[#allocation11 + $0x88] ss:$28 sps:$4 sm:$0xff]  }
 0x470   :  { %7875 = vmatpush2.bf16.msra.mxu0 %v9762_v5  ;;  %7825 = vmatprep.subr.bf16.mxu1 %v9767_v28  ;;  %v9816_v5 = vld [vmem:[#allocation11 + $0x550] ss:$28 sps:$4 sm:$0xff]   ;;  %v7507_v28 = vpop.f32.mrf.mxu1 }
 0x471   :  { %7876 = vmatprep.subr.bf16.mxu0 %v9770_v52  ;;  %v7548_v52 = vpop.f32.mrf.mxu0 }
 0x473   :  { %7826 = vmatpush1.bf16.msra.mxu1 %v9765_v63  ;;  %v9823_v63 = vld [vmem:[#allocation11 + $0xc1c] ss:$28 sps:$4 sm:$0xff]  }
 0x474   :  { %7877 = vmatpush2.bf16.msra.mxu0 %v9768_v20  ;;  %7827 = vmatprep.subr.bf16.mxu1 %v9773_v21  ;;  %v9824_v21 = vld [vmem:[#allocation11 + $0x280] ss:$28 sps:$4 sm:$0xff]  }
 0x475   :  { %7878 = vmatprep.subr.bf16.mxu0 %v9776_v23  ;;  %v7504_v23 = vadd.f32 %v7503_v4, %v7461_v47  ;;  %v9838_v4 = vld [vmem:[#allocation11 + $0xb74] ss:$28 sps:$4 sm:$0xff]  }
 0x477   :  { %7828 = vmatpush1.bf16.msra.mxu1 %v9771_v32  ;;  %v7465_v32 = vadd.f32 %v7464_v22, %v5090_v61  ;;  %v9843_v61 = vld [vmem:[#allocation11 + $0xb3c] ss:$28 sps:$4 sm:$0xff]  }
 0x478   :  { %7879 = vmatpush2.bf16.msra.mxu0 %v9774_v41  ;;  %7829 = vmatprep.subr.bf16.mxu1 %v9779_v42  ;;  %v9821_v41 = vld [vmem:[#allocation11 + $0xc18] ss:$28 sps:$4 sm:$0xff]   ;;  %v7509_v42 = vpop.f32.mrf.mxu1 }
 0x479   :  { %7880 = vmatprep.subr.bf16.mxu0 %v9782_v53  ;;  %v9825_v53 = vld [vmem:[#allocation11 + $0xc0] ss:$28 sps:$4 sm:$0xff]  }
 0x47b   :  { %7830 = vmatpush2.bf16.msra.mxu1 %v9777_v29  ;;  %v9828_v29 = vld [vmem:[#allocation11 + $0xbe4] ss:$28 sps:$4 sm:$0xff]  }
 0x47c   :  { %7881 = vmatpush2.bf16.msra.mxu0 %v9780_v33  ;;  %7831 = vmatprep.subr.bf16.mxu1 %v9785_v8 }
 0x47d   :  { %7882 = vmatprep.subr.bf16.mxu0 %v9788_v34  ;;  %v7547_v34 = vadd.f32 %v7546_v62, %v7504_v23  ;;  %v9845_v62 = vld [vmem:[#allocation11 + $0x8a0] ss:$28 sps:$4 sm:$0xff]   ;;  %v9859_v23 = vld [vmem:[#allocation11 + $0x9b8] ss:$28 sps:$4 sm:$0xff]  }
 0x47f   :  { %7832 = vmatpush2.bf16.msra.mxu1 %v9783_v13  ;;  %v9829_v13 = vld [vmem:[#allocation11 + $0x248] ss:$28 sps:$4 sm:$0xff]  }
 0x480   :  { %7883 = vmatpush2.bf16.msra.mxu0 %v9786_v36  ;;  %7833 = vmatprep.subr.bf16.mxu1 %v9791_v10  ;;  %v7508_v10 = vadd.f32 %v7507_v28, %v7465_v32  ;;  %v9853_v28 = vld [vmem:[#allocation11 + $0xacc] ss:$28 sps:$4 sm:$0xff]   ;;  %v9860_v32 = vld [vmem:[#allocation11 + $0x7f8] ss:$28 sps:$4 sm:$0xff]  }
 0x481   :  { %7884 = vmatprep.subr.bf16.mxu0 %v9794_v24 }
 0x483   :  { %7834 = vmatpush2.bf16.msra.mxu1 %v9789_v0 }
 0x484   :  { %7885 = vmatpush2.bf16.msra.mxu0 %v9792_v50  ;;  %7835 = vmatprep.subr.bf16.mxu1 %v9797_v49  ;;  %v9826_v50 = vld [vmem:[#allocation11 + $0xbe0] ss:$28 sps:$4 sm:$0xff]  }
 0x485   :  { %7886 = vmatprep.subr.bf16.mxu0 %v9800_v37 }
 0x487   :  { %7836 = vmatpush2.bf16.msra.mxu1 %v9795_v9  ;;  %v9833_v9 = vld [vmem:[#allocation11 + $0xbac] ss:$28 sps:$4 sm:$0xff]  }
 0x488   :  { %7887 = vmatpush2.bf16.msra.mxu0 %v9798_v59  ;;  %7837 = vmatprep.subr.bf16.mxu1 %v9803_v48 }
 0x489   :  { %9179 = vmatprep.subr.bf16.mxu0 %v9804_v26 }
 0x48b   :  { %7838 = vmatpush2.bf16.msra.mxu1 %v9801_v38  ;;  %7889 = vmatmul.mubr.bf16.vlgmr.msra.gmra.mxu0 %v10446_v40 }
 0x48c   :  { %9180 = vmatpush3.bf16.msra.mxu0 %v9805_v15  ;;  %7974 = vmatprep.mubr.bf16.mxu0 %v10405_v45  ;;  %v5094_v45 = vrot.slane %v10473_v54, %v10239_v17  ;;  %v7550_v17 = vpop.f32.mrf.mxu0 }
 0x48d   :  { %7839 = vmatprep.subr.bf16.mxu1 %v9808_v43  ;;  %9181 = vmatprep.subr.bf16.mxu0 %v9809_v2  ;;  %v7551_v48 = vadd.f32 %v7550_v17, %v7508_v10  ;;  %v9831_v2 = vld [vmem:[#allocation11 + $0xba8] ss:$28 sps:$4 sm:$0xff]   ;;  %v9861_v17 = vld [vmem:[#allocation11 + $0xdd8] ss:$28 sps:$4 sm:$0xff]  }
 0x48e   :  { %v7463_v20 = vadd.f32 %v7462_v51, %v5094_v45  ;;  %v7467_v8 = vadd.f32 %v7466_v31, %v5094_v45  ;;  %v7552_v49 = vpop.f32.mrf.mxu0  ;;  %v9834_v51 = vld [vmem:[#allocation11 + $0x210] ss:$28 sps:$4 sm:$0xff]   ;;  %v9840_v31 = vld [vmem:[#allocation11 + $0x18] ss:$28 sps:$4 sm:$0xff]   ;;  %v9871_v10 = vld [vmem:[#allocation11 + $0xd68] ss:$28 sps:$4 sm:$0xff]  }
 0x48f   :  { %7840 = vmatpush2.bf16.msra.mxu1 %v9806_v30  ;;  %v9835_v30 = vld [vmem:[#allocation11 + $0x50] ss:$28 sps:$4 sm:$0xff]  }
 0x490   :  { %9182 = vmatpush3.bf16.msra.mxu0 %v9810_v58  ;;  %7841 = vmatprep.subr.bf16.mxu1 %v9813_v60  ;;  %v7506_v33 = vadd.f32 %v7505_v25, %v7463_v20  ;;  %v7510_v59 = vadd.f32 %v7509_v42, %v7467_v8  ;;  %v9839_v60 = vld [vmem:[#allocation11 + $0x1d8] ss:$28 sps:$4 sm:$0xff]   ;;  %v9864_v42 = vld [vmem:[#allocation11 + $0x980] ss:$28 sps:$4 sm:$0xff]  }
 0x491   :  { %9183 = vmatprep.subr.bf16.mxu0 %v9814_v55  ;;  %v9836_v55 = vld [vmem:[#allocation11 + $0xb70] ss:$28 sps:$4 sm:$0xff]   ;;  %v9841_v25 = vld [vmem:[#allocation11 + $0xb38] ss:$28 sps:$4 sm:$0xff]   ;;  %v9866_v8 = vld [vmem:[#allocation11 + $0xda0] ss:$28 sps:$4 sm:$0xff]  }
 0x492   :  { %v7549_v24 = vadd.f32 %v7548_v52, %v7506_v33  ;;  %v7553_v15 = vadd.f32 %v7552_v49, %v7510_v59  ;;  %v9854_v52 = vld [vmem:[#allocation11 + $0x9f0] ss:$28 sps:$4 sm:$0xff]   ;;  %v9869_v33 = vld [vmem:[#allocation11 + $0x948] ss:$28 sps:$4 sm:$0xff]  }
 0x493   :  { %7842 = vmatpush2.bf16.msra.mxu1 %v9811_v6  ;;  %v9844_v6 = vld [vmem:[#allocation11 + $0xa60] ss:$28 sps:$4 sm:$0xff]   ;;  %v9876_v49 = vld [vmem:[#allocation11 + $0xd30] ss:$28 sps:$4 sm:$0xff]  }
 0x494   :  { %9184 = vmatpush3.bf16.msra.mxu0 %v9815_v1  ;;  %7843 = vmatprep.subr.bf16.mxu1 %v9818_v56  ;;  %v9848_v1 = vld [vmem:[#allocation11 + $0xb04] ss:$28 sps:$4 sm:$0xff]  }
 0x495   :  { %9185 = vmatprep.subr.bf16.mxu0 %v9819_v19  ;;  %v9849_v56 = vld [vmem:[#allocation11 + $0xa28] ss:$28 sps:$4 sm:$0xff]   ;;  %v9846_v19 = vld [vmem:[#allocation11 + $0xb00] ss:$28 sps:$4 sm:$0xff]  }
 0x496   :  { %v9886_v59 = vld [vmem:[#allocation11 + $0xcc4] ss:$28 sps:$4 sm:$0xff]  }
 0x497   :  { %7844 = vmatpush2.bf16.msra.mxu1 %v9816_v5  ;;  %v9850_v5 = vld [vmem:[#allocation11 + $0x868] ss:$28 sps:$4 sm:$0xff]  }
 0x498   :  { %9186 = vmatpush3.bf16.msra.mxu0 %v9820_v14  ;;  %7899 = vmatprep.subr.bf16.mxu1 %v9823_v63  ;;  %v9851_v63 = vld [vmem:[#allocation11 + $0xac8] ss:$28 sps:$4 sm:$0xff]  }
 0x499   :  { %9187 = vmatprep.subr.bf16.mxu0 %v9824_v21  ;;  %v9855_v21 = vld [vmem:[#allocation11 + $0x830] ss:$28 sps:$4 sm:$0xff]  }
 0x49a   :  { %7846 = vmatmul.mubr.bf16.vlgmr.msra.gmra.mxu1 %v10383_v57  ;;  %v7589_v36 = vpop.f32.mrf.mxu1 }
 0x49b   :  { %v7590_v0 = vadd.f32 %v7589_v36, %v7547_v34  ;;  %7900 = vmatpush1.bf16.msra.mxu1 %v9821_v41  ;;  %7931 = vmatprep.mubr.bf16.mxu1 %v10457_v11  ;;  %v9863_v41 = vld [vmem:[#allocation11 + $0xddc] ss:$28 sps:$4 sm:$0xff]   ;;  %v9870_v34 = vld [vmem:[#allocation11 + $0x788] ss:$28 sps:$4 sm:$0xff]   ;;  %v9874_v36 = vld [vmem:[#allocation11 + $0x910] ss:$28 sps:$4 sm:$0xff]  }
 0x49c   :  { %9188 = vmatpush3.bf16.msra.mxu0 %v9825_v53  ;;  %v7591_v37 = vpop.f32.mrf.mxu1  ;;  %7901 = vmatprep.subr.bf16.mxu1 %v9828_v29  ;;  %v9865_v53 = vld [vmem:[#allocation11 + $0x7c0] ss:$28 sps:$4 sm:$0xff]  }
 0x49d   :  { %9925 = vtanh.f32 %v7590_v0  ;;  %v7592_v26 = vadd.f32 %v7591_v37, %v7549_v24  ;;  %9189 = vmatprep.subr.bf16.mxu0 %v9829_v13  ;;  %v9868_v29 = vld [vmem:[#allocation11 + $0xda4] ss:$28 sps:$4 sm:$0xff]   ;;  %v9873_v13 = vld [vmem:[#allocation11 + $0xd6c] ss:$28 sps:$4 sm:$0xff]   ;;  %v9878_v0 = vld [vmem:[#allocation11 + $0xd34] ss:$28 sps:$4 sm:$0xff]  }
 0x49e   :  { %v7593_v38 = vpop.f32.mrf.mxu1  ;;  %v9875_v24 = vld [vmem:[#allocation11 + $0x750] ss:$28 sps:$4 sm:$0xff]   ;;  %v9880_v37 = vld [vmem:[#allocation11 + $0x718] ss:$28 sps:$4 sm:$0xff]  }
 0x49f   :  { %9927 = vtanh.f32 %v7592_v26  ;;  %v7594_v43 = vadd.f32 %v7593_v38, %v7551_v48  ;;  %7902 = vmatpush1.bf16.msra.mxu1 %v9826_v50  ;;  %v9879_v50 = vld [vmem:[#allocation11 + $0x8d8] ss:$28 sps:$4 sm:$0xff]   ;;  %v9884_v48 = vld [vmem:[#allocation11 + $0xcc0] ss:$28 sps:$4 sm:$0xff]   ;;  %v9889_v26 = vld [vmem:[#allocation11 + $0xc8c] ss:$28 sps:$4 sm:$0xff]  }
 0x4a0   :  { %9190 = vmatpush3.bf16.msra.mxu0 %v9830_v35  ;;  %v7595_v22 = vpop.f32.mrf.mxu1  ;;  %7903 = vmatprep.subr.bf16.mxu1 %v9833_v9  ;;  %v9883_v35 = vld [vmem:[#allocation11 + $0xcfc] ss:$28 sps:$4 sm:$0xff]   ;;  %v9892_v38 = vld [vmem:[#allocation11 + $0xc54] ss:$28 sps:$4 sm:$0xff]  }
 0x4a1   :  { %9929 = vtanh.f32 %v7594_v43  ;;  %v7596_v58 = vadd.f32 %v7595_v22, %v7553_v15  ;;  %9191 = vmatprep.subr.bf16.mxu0 %v9834_v51  ;;  %v9881_v9 = vld [vmem:[#allocation11 + $0xcf8] ss:$28 sps:$4 sm:$0xff]   ;;  %v9887_v51 = vld [vmem:[#allocation11 + $0xc88] ss:$28 sps:$4 sm:$0xff]   ;;  %v9890_v15 = vld [vmem:[#allocation11 + $0xc50] ss:$28 sps:$4 sm:$0xff]  }
 0x4a2   :  { %v9893_v43 = vld [vmem:[#allocation11 + $0x6e0] ss:$28 sps:$4 sm:$0xff]   ;;  %v9895_v22 = vld [vmem:[#allocation11 + $0x6a8] ss:$28 sps:$4 sm:$0xff]  }
 0x4a3   :  { %9931 = vtanh.f32 %v7596_v58  ;;  %7904 = vmatpush1.bf16.msra.mxu1 %v9831_v2  ;;  %v9894_v2 = vld [vmem:[#allocation11 + $0x520] ss:$28 sps:$4 sm:$0xff]   ;;  %v9899_v58 = vld [vmem:[#allocation11 + $0x638] ss:$28 sps:$4 sm:$0xff]  }
 0x4a4   :  { %9192 = vmatpush3.bf16.msra.mxu0 %v9835_v30  ;;  %7905 = vmatprep.subr.bf16.mxu1 %v9838_v4  ;;  %v9897_v30 = vld [vmem:[#allocation11 + $0x670] ss:$28 sps:$4 sm:$0xff]  }
 0x4a5   :  { %9193 = vmatprep.subr.bf16.mxu0 %v9839_v60  ;;  %v9898_v4 = vld [vmem:[#allocation11 + $0x4b0] ss:$28 sps:$4 sm:$0xff]   ;;  %v9900_v60 = vld [vmem:[#allocation11 + $0x478] ss:$28 sps:$4 sm:$0xff]  }
 0x4a7   :  { %7906 = vmatpush1.bf16.msra.mxu1 %v9836_v55  ;;  %v9901_v55 = vld [vmem:[#allocation11 + $0x600] ss:$28 sps:$4 sm:$0xff]  }
 0x4a8   :  { %9194 = vmatpush3.bf16.msra.mxu0 %v9840_v31  ;;  %7907 = vmatprep.subr.bf16.mxu1 %v9843_v61  ;;  %v9902_v31 = vld [vmem:[#allocation11 + $0x440] ss:$28 sps:$4 sm:$0xff]   ;;  %v9903_v61 = vld [vmem:[#allocation11 + $0x5c8] ss:$28 sps:$4 sm:$0xff]  }
 0x4a9   :  { %9223 = vmatprep.subr.bf16.mxu0 %v9844_v6  ;;  %v9904_v6 = vld [vmem:[#allocation11 + $0x408] ss:$28 sps:$4 sm:$0xff]  }
 0x4aa   :  { %v9926_v45 = vpop.eup %9925 }
 0x4ab   :  { %8120 = vst [vmem:[#allocation14] sm:$0xff] %v9926_v45  ;;  %7908 = vmatpush1.bf16.msra.mxu1 %v9841_v25  ;;  %7975 = vmatmul.mubr.bf16.vlgmr.msra.gmra.mxu0 %v10349_v39  ;;  %v9858_v39 = vld [vmem:[#allocation11 + $0xa94] ss:$28 sps:$4 sm:$0xff]   ;;  %v9910_v45 = vld [vmem:[#allocation11 + $0xc20] ss:$28 sps:$4 sm:$0xff]  }
 0x4ac   :  { %v9928_v47 = vpop.eup %9927  ;;  %9224 = vmatpush3.bf16.msra.mxu0 %v9845_v62  ;;  %8056 = vmatprep.mubr.bf16.mxu0 %v10433_v3  ;;  %v9856_v3 = vld [vmem:[#allocation11 + $0xa90] ss:$28 sps:$4 sm:$0xff]   ;;  %v9907_v62 = vld [vmem:[#allocation11 + $0x558] ss:$28 sps:$4 sm:$0xff]  }
 0x4ad   :  { %8121 = vst [vmem:[#allocation14 + $0x8] sm:$0xff] %v9928_v47  ;;  %7909 = vmatprep.subr.bf16.mxu1 %v9848_v1  ;;  %9225 = vmatprep.subr.bf16.mxu0 %v9849_v56  ;;  %v9905_v25 = vld [vmem:[#allocation11 + $0x590] ss:$28 sps:$4 sm:$0xff]   ;;  %v9908_v1 = vld [vmem:[#allocation11 + $0x398] ss:$28 sps:$4 sm:$0xff]  }
 0x4ae   :  { %v9930_v14 = vpop.eup %9929  ;;  %v9909_v56 = vld [vmem:[#allocation11 + $0xde0] ss:$28 sps:$4 sm:$0xff]   ;;  %v9912_v47 = vld [vmem:[#allocation11 + $0xbe8] ss:$28 sps:$4 sm:$0xff]  }
 0x4af   :  { %8127 = vst [vmem:[#allocation14 + $0x38] sm:$0xff] %v9930_v14  ;;  %7910 = vmatpush1.bf16.msra.mxu1 %v9846_v19  ;;  %v9911_v19 = vld [vmem:[#allocation11 + $0xda8] ss:$28 sps:$4 sm:$0xff]   ;;  %v9916_v14 = vld [vmem:[#allocation11 + $0xb78] ss:$28 sps:$4 sm:$0xff]  }
 0x4b0   :  { %v9932_v20 = vpop.eup %9931  ;;  %9226 = vmatpush3.bf16.msra.mxu0 %v9850_v5  ;;  %7911 = vmatprep.subr.bf16.mxu1 %v9853_v28  ;;  %v9913_v5 = vld [vmem:[#allocation11 + $0xd70] ss:$28 sps:$4 sm:$0xff]  }
 0x4b1   :  { %8128 = vst [vmem:[#allocation14 + $0x40] sm:$0xff] %v9932_v20  ;;  %9227 = vmatprep.subr.bf16.mxu0 %v9854_v52  ;;  %v9914_v28 = vld [vmem:[#allocation11 + $0xbb0] ss:$28 sps:$4 sm:$0xff]   ;;  %v9915_v52 = vld [vmem:[#allocation11 + $0xd38] ss:$28 sps:$4 sm:$0xff]  }
 0x4b2   :  { %v9917_v20 = vld [vmem:[#allocation11 + $0xd00] ss:$28 sps:$4 sm:$0xff]  }
 0x4b3   :  { %7912 = vmatpush1.bf16.msra.mxu1 %v9851_v63  ;;  %v7632_v63 = vpop.f32.mrf.mxu0 }
 0x4b4   :  { %9228 = vmatpush3.bf16.msra.mxu0 %v9855_v21  ;;  %7913 = vmatprep.subr.bf16.mxu1 %v9858_v39  ;;  %v9918_v21 = vld [vmem:[#allocation11 + $0xb40] ss:$28 sps:$4 sm:$0xff]  }
 0x4b5   :  { %9229 = vmatprep.subr.bf16.mxu0 %v9859_v23  ;;  %v7634_v39 = vpop.f32.mrf.mxu0  ;;  %v9920_v23 = vld [vmem:[#allocation11 + $0xb08] ss:$28 sps:$4 sm:$0xff]  }
 0x4b7   :  { %7914 = vmatpush1.bf16.msra.mxu1 %v9856_v3 }
 0x4b8   :  { %9230 = vmatpush3.bf16.msra.mxu0 %v9860_v32  ;;  %7915 = vmatprep.subr.bf16.mxu1 %v9863_v41  ;;  %v9921_v32 = vld [vmem:[#allocation11 + $0xc90] ss:$28 sps:$4 sm:$0xff]   ;;  %v5098_v41 = vrot.slane %v10473_v54, %v10236_v16 }
 0x4b9   :  { %9231 = vmatprep.subr.bf16.mxu0 %v9864_v42  ;;  %v9922_v42 = vld [vmem:[#allocation11 + $0xad0] ss:$28 sps:$4 sm:$0xff]  }
 0x4bb   :  { %7916 = vmatpush2.bf16.msra.mxu1 %v9861_v17 }
 0x4bc   :  { %9232 = vmatpush3.bf16.msra.mxu0 %v9865_v53  ;;  %7917 = vmatprep.subr.bf16.mxu1 %v9868_v29  ;;  %v9923_v29 = vld [vmem:[#allocation11 + $0xc58] ss:$28 sps:$4 sm:$0xff]  }
 0x4bd   :  { %9233 = vmatprep.subr.bf16.mxu0 %v9869_v33  ;;  %v5102_v33 = vrot.slane %v10473_v54, %v10242_v18 }
 0x4bf   :  { %7918 = vmatpush2.bf16.msra.mxu1 %v9866_v8 }
 0x4c0   :  { %9234 = vmatpush3.bf16.msra.mxu0 %v9870_v34  ;;  %7919 = vmatprep.subr.bf16.mxu1 %v9873_v13  ;;  %v7633_v34 = vadd.f32 %v7632_v63, %v5098_v41  ;;  %v9924_v13 = vld [vmem:[#allocation11 + $0xa98] ss:$28 sps:$4 sm:$0xff]  }
 0x4c1   :  { %9235 = vmatprep.subr.bf16.mxu0 %v9874_v36 }
 0x4c3   :  { %7920 = vmatpush2.bf16.msra.mxu1 %v9871_v10  ;;  %v7635_v10 = vadd.f32 %v7634_v39, %v5102_v33 }
 0x4c4   :  { %9236 = vmatpush3.bf16.msra.mxu0 %v9875_v24  ;;  %7921 = vmatprep.subr.bf16.mxu1 %v9878_v0 }
 0x4c5   :  { %9237 = vmatprep.subr.bf16.mxu0 %v9879_v50 }
 0x4c7   :  { %7922 = vmatpush2.bf16.msra.mxu1 %v9876_v49 }
 0x4c8   :  { %9238 = vmatpush3.bf16.msra.mxu0 %v9880_v37  ;;  %7923 = vmatprep.subr.bf16.mxu1 %v9883_v35 }
 0x4cb   :  { %7924 = vmatpush2.bf16.msra.mxu1 %v9881_v9  ;;  %8057 = vmatmul.mubr.bf16.vlgmr.msra.gmra.mxu0 %v10446_v40  ;;  %v9896_v40 = vld [vmem:[#allocation11 + $0x4e8] ss:$28 sps:$4 sm:$0xff]  }
 0x4cc   :  { %7925 = vmatprep.subr.bf16.mxu1 %v9886_v59 }
 0x4cf   :  { %7926 = vmatpush2.bf16.msra.mxu1 %v9884_v48 }
 0x4d0   :  { %7927 = vmatprep.subr.bf16.mxu1 %v9889_v26 }
 0x4d3   :  { %7928 = vmatpush2.bf16.msra.mxu1 %v9887_v51 }
 0x4d4   :  { %7929 = vmatprep.subr.bf16.mxu1 %v9892_v38 }
 0x4d7   :  { %7930 = vmatpush2.bf16.msra.mxu1 %v9890_v15 }
 0x4d8   :  { %9201 = vmatprep.subr.bf16.mxu1 %v9893_v43 }
 0x4da   :  { %7932 = vmatmul.mubr.bf16.vlgmr.msra.gmra.mxu1 %v10459_v46  ;;  %v7675_v3 = vpop.f32.mrf.mxu1 }
 0x4db   :  { %9202 = vmatpush3.bf16.msra.mxu1 %v9894_v2  ;;  %8015 = vmatprep.mubr.bf16.mxu1 %v10408_v7  ;;  %v9906_v7 = vld [vmem:[#allocation11 + $0x3d0] ss:$28 sps:$4 sm:$0xff]   ;;  %v7676_v24 = vadd.f32 %v7675_v3, %v7633_v34 }
 0x4dc   :  { %9203 = vmatprep.subr.bf16.mxu1 %v9895_v22  ;;  %v7677_v53 = vpop.f32.mrf.mxu1 }
 0x4dd   :  { %v7678_v16 = vadd.f32 %v7677_v53, %v7635_v10 }
 0x4de   :  { %v7679_v36 = vpop.f32.mrf.mxu1 }
 0x4df   :  { %9204 = vmatpush3.bf16.msra.mxu1 %v9896_v40 }
 0x4e0   :  { %9205 = vmatprep.subr.bf16.mxu1 %v9897_v30  ;;  %v7681_v49 = vpop.f32.mrf.mxu1 }
 0x4e3   :  { %9206 = vmatpush3.bf16.msra.mxu1 %v9898_v4 }
 0x4e4   :  { %9207 = vmatprep.subr.bf16.mxu1 %v9899_v58 }
 0x4e7   :  { %9208 = vmatpush3.bf16.msra.mxu1 %v9900_v60 }
 0x4e8   :  { %9209 = vmatprep.subr.bf16.mxu1 %v9901_v55 }
 0x4eb   :  { %9210 = vmatpush3.bf16.msra.mxu1 %v9902_v31 }
 0x4ec   :  { %9211 = vmatprep.subr.bf16.mxu1 %v9903_v61 }
 0x4ef   :  { %9212 = vmatpush3.bf16.msra.mxu1 %v9904_v6 }
 0x4f0   :  { %9213 = vmatprep.subr.bf16.mxu1 %v9905_v25 }
 0x4f3   :  { %9214 = vmatpush3.bf16.msra.mxu1 %v9906_v7 }
 0x4f4   :  { %9215 = vmatprep.subr.bf16.mxu1 %v9907_v62  ;;  %v5106_v62 = vrot.slane %v10473_v54, %v10294_v44 }
 0x4f7   :  { %9216 = vmatpush3.bf16.msra.mxu1 %v9908_v1 }
 0x4f8   :  { %9245 = vmatprep.subr.bf16.mxu1 %v9909_v56 }
 0x4fa   :  { %8016 = vmatmul.mubr.bf16.vlgmr.msra.gmra.mxu1 %v10383_v57  ;;  %v9919_v57 = vld [vmem:[#allocation11 + $0xcc8] ss:$28 sps:$4 sm:$0xff]  }
 0x4fb   :  { %9246 = vmatpush3.bf16.msra.mxu1 %v9910_v45  ;;  %8097 = vmatprep.mubr.bf16.mxu1 %v10457_v11  ;;  %v7636_v11 = vpop.f32.mrf.mxu0  ;;  %v5110_v45 = vrot.slane %v10473_v54, %v10271_v27 }
 0x4fc   :  { %9247 = vmatprep.subr.bf16.mxu1 %v9911_v19  ;;  %v7637_v50 = vadd.f32 %v7636_v11, %v5098_v41 }
 0x4fd   :  { %v7638_v17 = vpop.f32.mrf.mxu0 }
 0x4fe   :  { %v7639_v37 = vadd.f32 %v7638_v17, %v5102_v33  ;;  %v7680_v35 = vadd.f32 %v7679_v36, %v7637_v50 }
 0x4ff   :  { %9248 = vmatpush3.bf16.msra.mxu1 %v9912_v47  ;;  %v7718_v8 = vpop.f32.mrf.mxu0 }
 0x500   :  { %9249 = vmatprep.subr.bf16.mxu1 %v9913_v5  ;;  %v7719_v9 = vadd.f32 %v7718_v8, %v7676_v24  ;;  %v7682_v18 = vadd.f32 %v7681_v49, %v7639_v37 }
 0x501   :  { %v7720_v0 = vpop.f32.mrf.mxu0 }
 0x502   :  { %v7721_v51 = vadd.f32 %v7720_v0, %v7678_v16 }
 0x503   :  { %9250 = vmatpush3.bf16.msra.mxu1 %v9914_v28  ;;  %v7722_v59 = vpop.f32.mrf.mxu0 }
 0x504   :  { %9251 = vmatprep.subr.bf16.mxu1 %v9915_v52  ;;  %v7723_v43 = vadd.f32 %v7722_v59, %v7680_v35 }
 0x505   :  { %v7724_v2 = vpop.f32.mrf.mxu0 }
 0x506   :  { %v7725_v30 = vadd.f32 %v7724_v2, %v7682_v18  ;;  %v5114_v18 = vrot.slane %v10473_v54, %v10297_v12 }
 0x507   :  { %9252 = vmatpush3.bf16.msra.mxu1 %v9916_v14 }
 0x508   :  { %9253 = vmatprep.subr.bf16.mxu1 %v9917_v20 }
 0x50b   :  { %9254 = vmatpush3.bf16.msra.mxu1 %v9918_v21  ;;  %v7804_v61 = vpop.f32.mrf.mxu0 }
 0x50c   :  { %9255 = vmatprep.subr.bf16.mxu1 %v9919_v57  ;;  %v7805_v47 = vadd.f32 %v7804_v61, %v5106_v62 }
 0x50d   :  { %v7806_v6 = vpop.f32.mrf.mxu0 }
 0x50e   :  { %v7807_v28 = vadd.f32 %v7806_v6, %v5110_v45 }
 0x50f   :  { %9256 = vmatpush3.bf16.msra.mxu1 %v9920_v23  ;;  %v7808_v25 = vpop.f32.mrf.mxu0 }
 0x510   :  { %9257 = vmatprep.subr.bf16.mxu1 %v9921_v32  ;;  %v7809_v63 = vadd.f32 %v7808_v25, %v5106_v62 }
 0x511   :  { %v7810_v1 = vpop.f32.mrf.mxu0 }
 0x512   :  { %v7811_v39 = vadd.f32 %v7810_v1, %v5110_v45 }
 0x513   :  { %9258 = vmatpush3.bf16.msra.mxu1 %v9922_v42 }
 0x514   :  { %9259 = vmatprep.subr.bf16.mxu1 %v9923_v29 }
 0x517   :  { %9260 = vmatpush3.bf16.msra.mxu1 %v9924_v13 }
 0x51a   :  { %v7761_v48 = vpop.f32.mrf.mxu1  ;;  %8098 = vmatmul.mubr.bf16.vlgmr.msra.gmra.mxu1 %v10459_v46 }
 0x51b   :  { %v7762_v26 = vadd.f32 %v7761_v48, %v7719_v9 }
 0x51c   :  { %v7763_v38 = vpop.f32.mrf.mxu1 }
 0x51d   :  { %9933 = vtanh.f32 %v7762_v26  ;;  %v7764_v15 = vadd.f32 %v7763_v38, %v7721_v51 }
 0x51e   :  { %v7765_v22 = vpop.f32.mrf.mxu1 }
 0x51f   :  { %9935 = vtanh.f32 %v7764_v15  ;;  %v7766_v40 = vadd.f32 %v7765_v22, %v7723_v43 }
 0x520   :  { %v7767_v4 = vpop.f32.mrf.mxu1 }
 0x521   :  { %9937 = vtanh.f32 %v7766_v40  ;;  %v7768_v58 = vadd.f32 %v7767_v4, %v7725_v30 }
 0x523   :  { %9939 = vtanh.f32 %v7768_v58 }
 0x52a   :  { %v9934_v60 = vpop.eup %9933 }
 0x52b   :  { %8122 = vst [vmem:[#allocation14 + $0x10] sm:$0xff] %v9934_v60 }
 0x52c   :  { %v9936_v55 = vpop.eup %9935 }
 0x52d   :  { %8123 = vst [vmem:[#allocation14 + $0x18] sm:$0xff] %v9936_v55 }
 0x52e   :  { %v9938_v46 = vpop.eup %9937 }
 0x52f   :  { %8129 = vst [vmem:[#allocation14 + $0x48] sm:$0xff] %v9938_v46 }
 0x530   :  { %v9940_v31 = vpop.eup %9939 }
 0x531   :  { %8130 = vst [vmem:[#allocation14 + $0x50] sm:$0xff] %v9940_v31 }
 0x54b   :  { %v7890_v19 = vpop.f32.mrf.mxu0 }
 0x54d   :  { %v7892_v14 = vpop.f32.mrf.mxu0 }
 0x54f   :  { %v7894_v11 = vpop.f32.mrf.mxu0 }
 0x551   :  { %v7896_v53 = vpop.f32.mrf.mxu0 }
 0x55a   :  { %v7847_v7 = vpop.f32.mrf.mxu1 }
 0x55b   :  { %v7848_v52 = vadd.f32 %v7847_v7, %v7805_v47 }
 0x55c   :  { %v7849_v56 = vpop.f32.mrf.mxu1 }
 0x55d   :  { %v7850_v20 = vadd.f32 %v7849_v56, %v7807_v28  ;;  %v7891_v23 = vadd.f32 %v7890_v19, %v7848_v52 }
 0x55e   :  { %v7851_v5 = vpop.f32.mrf.mxu1 }
 0x55f   :  { %v7852_v57 = vadd.f32 %v7851_v5, %v7809_v63  ;;  %v7893_v41 = vadd.f32 %v7892_v14, %v7850_v20 }
 0x560   :  { %v7853_v21 = vpop.f32.mrf.mxu1 }
 0x561   :  { %v7854_v44 = vadd.f32 %v7853_v21, %v7811_v39  ;;  %v7895_v17 = vadd.f32 %v7894_v11, %v7852_v57 }
 0x563   :  { %v7897_v8 = vadd.f32 %v7896_v53, %v7854_v44 }
 0x56b   :  { %v9195_v50 = vpop.f32.mrf.mxu0 }
 0x56d   :  { %v9196_v16 = vpop.f32.mrf.mxu0 }
 0x56e   :  { %v9197_v26 = vadd.f32 %v9196_v16, %v9195_v50 }
 0x56f   :  { %v9198_v49 = vpop.f32.mrf.mxu0 }
 0x570   :  { %v7977_v43 = vadd.f32 %v9197_v26, %v5114_v18 }
 0x571   :  { %v9199_v35 = vpop.f32.mrf.mxu0 }
 0x572   :  { %v9200_v2 = vadd.f32 %v9199_v35, %v9198_v49 }
 0x574   :  { %v7980_v58 = vadd.f32 %v9200_v2, %v5114_v18 }
 0x58b   :  { %v9239_v59 = vpop.f32.mrf.mxu0 }
 0x58d   :  { %v9240_v51 = vpop.f32.mrf.mxu0 }
 0x58e   :  { %v9241_v60 = vadd.f32 %v9240_v51, %v9239_v59 }
 0x58f   :  { %v9242_v22 = vpop.f32.mrf.mxu0 }
 0x591   :  { %v9243_v55 = vpop.f32.mrf.mxu0 }
 0x592   :  { %v9244_v7 = vadd.f32 %v9243_v55, %v9242_v22 }
 0x59a   :  { %v7933_v3 = vpop.f32.mrf.mxu1 }
 0x59b   :  { %v7934_v32 = vadd.f32 %v7933_v3, %v7891_v23 }
 0x59c   :  { %v7935_v42 = vpop.f32.mrf.mxu1 }
 0x59d   :  { %9941 = vtanh.f32 %v7934_v32  ;;  %v7936_v27 = vadd.f32 %v7935_v42, %v7893_v41 }
 0x59e   :  { %v7937_v29 = vpop.f32.mrf.mxu1 }
 0x59f   :  { %9943 = vtanh.f32 %v7936_v27  ;;  %v7938_v33 = vadd.f32 %v7937_v29, %v7895_v17 }
 0x5a0   :  { %v7939_v34 = vpop.f32.mrf.mxu1 }
 0x5a1   :  { %9945 = vtanh.f32 %v7938_v33  ;;  %v7940_v13 = vadd.f32 %v7939_v34, %v7897_v8 }
 0x5a3   :  { %9947 = vtanh.f32 %v7940_v13 }
 0x5aa   :  { %v9942_v36 = vpop.eup %9941 }
 0x5ab   :  { %8124 = vst [vmem:[#allocation14 + $0x20] sm:$0xff] %v9942_v36 }
 0x5ac   :  { %v9944_v10 = vpop.eup %9943 }
 0x5ad   :  { %8125 = vst [vmem:[#allocation14 + $0x28] sm:$0xff] %v9944_v10 }
 0x5ae   :  { %v9946_v24 = vpop.eup %9945 }
 0x5af   :  { %8131 = vst [vmem:[#allocation14 + $0x58] sm:$0xff] %v9946_v24 }
 0x5b0   :  { %v9948_v0 = vpop.eup %9947 }
 0x5b1   :  { %8132 = vst [vmem:[#allocation14 + $0x60] sm:$0xff] %v9948_v0 }
 0x5ba   :  { %v9217_v37 = vpop.f32.mrf.mxu1 }
 0x5bc   :  { %v9218_v9 = vpop.f32.mrf.mxu1 }
 0x5bd   :  { %v9219_v38 = vadd.f32 %v9218_v9, %v9217_v37 }
 0x5be   :  { %v9220_v48 = vpop.f32.mrf.mxu1 }
 0x5bf   :  { %v8018_v40 = vadd.f32 %v9219_v38, %v7977_v43 }
 0x5c0   :  { %v9221_v15 = vpop.f32.mrf.mxu1 }
 0x5c1   :  { %v9222_v30 = vadd.f32 %v9221_v15, %v9220_v48  ;;  %v8059_v61 = vadd.f32 %v9241_v60, %v8018_v40 }
 0x5c3   :  { %v8021_v31 = vadd.f32 %v9222_v30, %v7980_v58 }
 0x5c5   :  { %v8062_v62 = vadd.f32 %v9244_v7, %v8021_v31 }
 0x5da   :  { %v9261_v4 = vpop.f32.mrf.mxu1 }
 0x5dc   :  { %v9262_v46 = vpop.f32.mrf.mxu1 }
 0x5dd   :  { %v9263_v6 = vadd.f32 %v9262_v46, %v9261_v4 }
 0x5de   :  { %v9264_v25 = vpop.f32.mrf.mxu1 }
 0x5df   :  { %v8100_v12 = vadd.f32 %v9263_v6, %v8059_v61 }
 0x5e0   :  { %v9265_v54 = vpop.f32.mrf.mxu1 }
 0x5e1   :  { %9949 = vtanh.f32 %v8100_v12  ;;  %v9266_v1 = vadd.f32 %v9265_v54, %v9264_v25 }
 0x5e3   :  { %v8103_v56 = vadd.f32 %v9266_v1, %v8062_v62 }
 0x5e5   :  { %9951 = vtanh.f32 %v8103_v56 }
 0x5ee   :  { %v9950_v45 = vpop.eup %9949 }
 0x5ef   :  { %8126 = vst [vmem:[#allocation14 + $0x30] sm:$0xff] %v9950_v45 }
 0x5f2   :  { %v9952_v19 = vpop.eup %9951 }
 0x5f3   :  { %8133 = vst [vmem:[#allocation14 + $0x68] sm:$0xff] %v9952_v19 }
 0x5f4   :  { %10105 = shalt.err (!%p10102_p11)
}
 0x5f5   :  { %s10139_s1 = smov 896   ;;  %s10140_s16 = smov 56  }
 0x5f6   :  { %8145 = dma.vmem_to_hbm [thread:$0]  %s8140_s6, 1792, %s10510_s7, [#allocation4], %s10139_s1, %s10139_s1, %s10140_s16  }
 0x5f7   :  { %10122 = dma.done.wait [#allocation4], 1792  }
 0x5f8   :  { %10123 = vsyncadd [#allocation4], 4294965504 }
 0x5f9   :  { %8149 = vsyncpa [#allocation3], 1 }
 0x5fa   :  { %8150 = vsyncpa [#allocation6], 1 }
 0x5fb   :  { %8151 = vsyncpa [#allocation9], 1 }
 0x5fc   :  { %8152 = vsyncpa [#allocation12], 1 }
 0x5fd   :  { %8153 = vsyncpa [#allocation4], 1 }

</bundles_post_ra>
